<compile_context>
chip_gen: v6e
topology: v6e:2x2x1
jax: 0.10.0
libtpu: 0.0.40
codegen_flags: <defaults>
</compile_context>

<pallas_src>
import functools

import jax
import jax.numpy as jnp
from jax import lax
from jax.experimental import pallas as pl
from jax.experimental.pallas import tpu as pltpu

EPS = 1e-6
INV_SQRT2 = 0.7071067811865476  # rsqrt(2.0)

# Set to jnp.bfloat16 on v6e/v7x for MXU-bound channel counts (re-validate tol).
MATMUL_DTYPE = jnp.float32


# ------------------------------ fused kernel ---------------------------------
def _make_fused_kernel(h, w, cin, cout, downsample, learned_sc, mm_dtype):
    hm, wm = (h // 2, w // 2) if downsample else (h, w)

    def frn(t2d, p_ref):
        # t2d: (rows, cin) f32 NHWC-flat; p_ref rows = [tau, gamma, beta]
        p = p_ref[...]
        nu2 = jnp.mean(t2d * t2d, axis=0, keepdims=True)            # (1, cin)
        xn = t2d * lax.rsqrt(nu2 + EPS)                              # EUP rsqrt
        return jnp.maximum(p[1:2, :] * xn + p[2:3, :], p[0:1, :])

    def pool2x2(t2d, hh, ww, c, scale):
        # 2x2 stride-2 average pool as pure VPU adds (no pooling matmul).
        hp, wp = hh // 2, ww // 2
        t = t2d.reshape(hh, wp, 2, c)
        tw = t[:, :, 0, :] + t[:, :, 1, :]                           # (hh, wp, c)
        tv = tw.reshape(hp, 2, wp, c)
        return ((tv[:, 0, :, :] + tv[:, 1, :, :]) * scale).reshape(hp * wp, c)

    def conv3x3(t2d, hh, ww, co, pad_ref, w_ref, b_ref):
        # 3x3, stride 1, pad 1:  (hh*ww, cin) -> (hh*ww, co)
        # Zero only the 1-pixel halo border; the interior is fully overwritten.
        pad_ref[0:1, :, :] = jnp.zeros((1, ww + 2, cin), jnp.float32)
        pad_ref[hh + 1:hh + 2, :, :] = jnp.zeros((1, ww + 2, cin), jnp.float32)
        pad_ref[1:hh + 1, 0:1, :] = jnp.zeros((hh, 1, cin), jnp.float32)
        pad_ref[1:hh + 1, ww + 1:ww + 2, :] = jnp.zeros((hh, 1, cin), jnp.float32)
        # One contiguous interior store (replaces the per-row fill loop).
        pad_ref[1:hh + 1, 1:ww + 1, :] = t2d.reshape(hh, ww, cin)
        # Nine K=cin matmuls accumulated in f32; no materialized im2col buffer.
        acc = None
        for dy in range(3):
            for dx in range(3):
                t = dy * 3 + dx
                tap = pad_ref[dy:dy + hh, dx:dx + ww, :].reshape(hh * ww, cin)
                wt = w_ref[t * cin:(t + 1) * cin, :]
                part = jnp.dot(tap.astype(mm_dtype), wt.astype(mm_dtype),
                               preferred_element_type=jnp.float32)
                acc = part if acc is None else acc + part
        return acc + b_ref[...]

    def kernel(*refs):
        (x_ref, frn1_ref, c1w_ref, c1b_ref, frn2_ref, c2w_ref, c2b_ref) = refs[:7]
        idx = 7
        scw_ref = None
        if learned_sc:
            scw_ref = refs[idx]
            idx += 1
        o_ref, pad1_ref, pad2_ref = refs[idx:]

        x2 = x_ref[0].astype(jnp.float32).reshape(h * w, cin)       # NHWC-flat

        # ---------------- shortcut (rsqrt(2) pre-folded) ----------------
        if learned_sc:
            # pool and 1x1 conv commute: pool first (4x fewer matmul FLOPs)
            s_in = pool2x2(x2, h, w, cin, 0.25) if downsample else x2
            s = jnp.dot(s_in.astype(mm_dtype), scw_ref[...].astype(mm_dtype),
                        preferred_element_type=jnp.float32)          # (Hm*Wm, Cout)
        else:
            if downsample:
                s = pool2x2(x2, h, w, cin, 0.25 * INV_SQRT2)
            else:
                s = x2 * INV_SQRT2

        # ---------------- residual ----------------
        r = frn(x2, frn1_ref)
        r = conv3x3(r, h, w, cin, pad1_ref, c1w_ref, c1b_ref)
        if downsample:
            r = pool2x2(r, h, w, cin, 0.25)
        r = frn(r, frn2_ref)
        r = conv3x3(r, hm, wm, cout, pad2_ref, c2w_ref, c2b_ref)     # scaled w/b

        out = s + r                                                  # (Hm*Wm, Cout)
        # NHWC store: no in-kernel transpose; layout handled in the wrapper.
        o_ref[...] = out.reshape(1, hm, wm, cout).astype(o_ref.dtype)

    return kernel


# ------------------------------ wrapper ---------------------------------------
def act_first_res_blk(x_nchw, params, downsample=True):
    n, cin, h, w = x_nchw.shape
    cout = params["conv2_w"].shape[-1]
    learned_sc = cin != cout
    hm, wm = (h // 2, w // 2) if downsample else (h, w)

    x = jnp.transpose(x_nchw, (0, 2, 3, 1)).astype(jnp.float32)     # NCHW -> NHWC

    frn1 = jnp.stack([params["tau1"].reshape(cin),
                      params["gamma1"].reshape(cin),
                      params["beta1"].reshape(cin)])                 # (3, cin)
    frn2 = jnp.stack([params["tau2"].reshape(cin),
                      params["gamma2"].reshape(cin),
                      params["beta2"].reshape(cin)])
    c1w = params["conv1_w"].reshape(9 * cin, cin)                    # (ky,kx,cin) major
    c1b = params["conv1_b"].reshape(1, cin)
    # fold rsqrt(2) into the last conv and the learned shortcut weight
    c2w = params["conv2_w"].reshape(9 * cin, cout) * INV_SQRT2
    c2b = params["conv2_b"].reshape(1, cout) * INV_SQRT2

    inputs = [x, frn1, c1w, c1b, frn2, c2w, c2b]
    in_specs = [
        pl.BlockSpec((1, h, w, cin), lambda i: (i, 0, 0, 0)),
        pl.BlockSpec((3, cin), lambda i: (0, 0)),
        pl.BlockSpec((9 * cin, cin), lambda i: (0, 0)),
        pl.BlockSpec((1, cin), lambda i: (0, 0)),
        pl.BlockSpec((3, cin), lambda i: (0, 0)),
        pl.BlockSpec((9 * cin, cout), lambda i: (0, 0)),
        pl.BlockSpec((1, cout), lambda i: (0, 0)),
    ]
    if learned_sc:
        inputs.append(params["conv1x1_w"] * INV_SQRT2)
        in_specs.append(pl.BlockSpec((cin, cout), lambda i: (0, 0)))

    kernel = _make_fused_kernel(h, w, cin, cout, downsample, learned_sc,
                                MATMUL_DTYPE)

    # VMEM budget: double-buffered blocks + single-buffered scratch, 2x headroom.
    fbytes = 4
    block_elems = (h * w * cin + hm * wm * cout
                   + 2 * 3 * cin + 9 * cin * cin + cin
                   + 9 * cin * cout + cout
                   + (cin * cout if learned_sc else 0))
    scratch_elems = (h + 2) * (w + 2) * cin + (hm + 2) * (wm + 2) * cin
    footprint = (2 * block_elems + scratch_elems) * fbytes
    vmem_limit = int(min(64 << 20, max(16 << 20, 2 * footprint + (2 << 20))))

    out = pl.pallas_call(
        kernel,
        out_shape=jax.ShapeDtypeStruct((n, hm, wm, cout), jnp.float32),
        grid=(n,),
        in_specs=in_specs,
        out_specs=pl.BlockSpec((1, hm, wm, cout), lambda i: (i, 0, 0, 0)),
        scratch_shapes=[
            pltpu.VMEM((h + 2, w + 2, cin), jnp.float32),     # conv1 halo buffer
            pltpu.VMEM((hm + 2, wm + 2, cin), jnp.float32),   # conv2 halo buffer
        ],
        compiler_params=pltpu.CompilerParams(
            dimension_semantics=("parallel",),                # batch across cores
            vmem_limit_bytes=vmem_limit),
    )(*inputs)

    return jnp.transpose(out, (0, 3, 1, 2)).astype(x_nchw.dtype)    # NHWC -> NCHW


# ------------------------------ pure-JAX reference -----------------------------
def reference_forward(x, params, downsample=True):
    cin = x.shape[1]
    cout = params["conv2_w"].shape[-1]
    learned_sc = cin != cout

    def frn_ref(t, tau, gamma, beta):
        nu2 = jnp.mean(t * t, axis=(2, 3), keepdims=True)
        tn = t * lax.rsqrt(nu2 + EPS)
        return jnp.maximum(gamma.reshape(1, -1, 1, 1) * tn + beta.reshape(1, -1, 1, 1),
                           tau.reshape(1, -1, 1, 1))

    def conv_ref(t, w_hwio, b):
        y = lax.conv_general_dilated(t, w_hwio, (1, 1), [(1, 1), (1, 1)],
                                     dimension_numbers=("NCHW", "HWIO", "NCHW"))
        return y + b.reshape(1, -1, 1, 1)

    def pool_ref(t):
        n_, c_, hh, ww = t.shape
        return t.reshape(n_, c_, hh // 2, 2, ww // 2, 2).mean(axis=(3, 5))

    s = x
    if learned_sc:
        s = jnp.einsum("nchw,cd->ndhw", s, params["conv1x1_w"])
    if downsample:
        s = pool_ref(s)

    r = frn_ref(x, params["tau1"], params["gamma1"], params["beta1"])
    r = conv_ref(r, params["conv1_w"], params["conv1_b"])
    if downsample:
        r = pool_ref(r)
    r = frn_ref(r, params["tau2"], params["gamma2"], params["beta2"])
    r = conv_ref(r, params["conv2_w"], params["conv2_b"])

    return INV_SQRT2 * s + INV_SQRT2 * r


# ------------------------------ main -------------------------------------------
def make_params(key, cin, cout):
    keys = jax.random.split(key, 11)
    return {
        "tau1":   jax.random.normal(keys[0], (cin,), jnp.float32) * 0.1,
        "gamma1": 1.0 + jax.random.normal(keys[1], (cin,), jnp.float32) * 0.1,
        "beta1":  jax.random.normal(keys[2], (cin,), jnp.float32) * 0.1,
        "tau2":   jax.random.normal(keys[3], (cin,), jnp.float32) * 0.1,
        "gamma2": 1.0 + jax.random.normal(keys[4], (cin,), jnp.float32) * 0.1,
        "beta2":  jax.random.normal(keys[5], (cin,), jnp.float32) * 0.1,
        "conv1_w": jax.random.normal(keys[6], (3, 3, cin, cin), jnp.float32) * 0.1,
        "conv1_b": jax.random.normal(keys[7], (cin,), jnp.float32) * 0.1,
        "conv2_w": jax.random.normal(keys[8], (3, 3, cin, cout), jnp.float32) * 0.1,
        "conv2_b": jax.random.normal(keys[9], (cout,), jnp.float32) * 0.1,
        "conv1x1_w": jax.random.normal(keys[10], (cin, cout), jnp.float32) * 0.1,
    }


if __name__ == "__main__":
    configs = [
        # (N, C_in, C_out, H, W, downsample)
        (2, 4, 8, 16, 16, True),    # learned 1x1 shortcut + avg-pool
        (2, 8, 8, 16, 16, False),   # identity shortcut, no downsample
    ]
    key = jax.random.PRNGKey(0)
    for (n, cin, cout, h, w, ds) in configs:
        key, pkey, xkey = jax.random.split(key, 3)
        params = make_params(pkey, cin, cout)
        x = jax.random.normal(xkey, (n, cin, h, w), jnp.float32)

        fwd = jax.jit(functools.partial(act_first_res_blk, downsample=ds))
        out = jax.block_until_ready(fwd(x, params))
        ref = jax.block_until_ready(reference_forward(x, params, downsample=ds))

        expected_shape = (n, cout, h // 2 if ds else h, w // 2 if ds else w)
        assert out.shape == expected_shape, (out.shape, expected_shape)
        err = float(jnp.max(jnp.abs(out - ref)))
        assert err < 2e-3, err

    print("KERNEL_OK")
</pallas_src>

<mosaic_0001>
module attributes {stable_mosaic.version = 11 : i64} {
  func.func @kernel(%arg0: i32, %arg1: memref<1x16x16x4xf32, #tpu.memory_space<vmem>>, %arg2: memref<3x4xf32, #tpu.memory_space<vmem>>, %arg3: memref<36x4xf32, #tpu.memory_space<vmem>>, %arg4: memref<1x4xf32, #tpu.memory_space<vmem>>, %arg5: memref<3x4xf32, #tpu.memory_space<vmem>>, %arg6: memref<36x8xf32, #tpu.memory_space<vmem>>, %arg7: memref<1x8xf32, #tpu.memory_space<vmem>>, %arg8: memref<4x8xf32, #tpu.memory_space<vmem>>, %arg9: memref<1x8x8x8xf32, #tpu.memory_space<vmem>>, %arg10: memref<18x18x4xf32, #tpu.memory_space<vmem>>, %arg11: memref<10x10x4xf32, #tpu.memory_space<vmem>>) attributes {dimension_semantics = [#tpu.dimension_semantics<parallel>], iteration_bounds = array<i64: 2>, scalar_prefetch = 0 : i64, scratch_operands = 2 : i64, tpu.core_type = #tpu.core_type<tc>, window_params = [{transform_indices = @transform_0, window_bounds = array<i64: 1, 16, 16, 4>}, {pipeline_mode = #tpu.pipeline_mode<synchronous>, transform_indices = @transform_1, window_bounds = array<i64: 3, 4>}, {pipeline_mode = #tpu.pipeline_mode<synchronous>, transform_indices = @transform_2, window_bounds = array<i64: 36, 4>}, {pipeline_mode = #tpu.pipeline_mode<synchronous>, transform_indices = @transform_3, window_bounds = array<i64: 1, 4>}, {pipeline_mode = #tpu.pipeline_mode<synchronous>, transform_indices = @transform_4, window_bounds = array<i64: 3, 4>}, {pipeline_mode = #tpu.pipeline_mode<synchronous>, transform_indices = @transform_5, window_bounds = array<i64: 36, 8>}, {pipeline_mode = #tpu.pipeline_mode<synchronous>, transform_indices = @transform_6, window_bounds = array<i64: 1, 8>}, {pipeline_mode = #tpu.pipeline_mode<synchronous>, transform_indices = @transform_7, window_bounds = array<i64: 4, 8>}, {transform_indices = @transform_8, window_bounds = array<i64: 1, 8, 8, 8>}]} {
    %c0 = arith.constant 0 : index
    %c0_0 = arith.constant 0 : index
    %c0_1 = arith.constant 0 : index
    %c0_2 = arith.constant 0 : index
    %0 = vector.load %arg1[%c0, %c0_0, %c0_1, %c0_2] : memref<1x16x16x4xf32, #tpu.memory_space<vmem>>, vector<1x16x16x4xf32>
    %1 = vector.shape_cast %0 : vector<1x16x16x4xf32> to vector<16x16x4xf32>
    %2 = vector.shape_cast %1 : vector<16x16x4xf32> to vector<256x4xf32>
    %3 = vector.shape_cast %2 : vector<256x4xf32> to vector<16x8x2x4xf32>
    %4 = vector.extract_strided_slice %3 {offsets = [0, 0, 0, 0], sizes = [16, 8, 1, 4], strides = [1, 1, 1, 1]} : vector<16x8x2x4xf32> to vector<16x8x1x4xf32>
    %5 = vector.shape_cast %4 : vector<16x8x1x4xf32> to vector<16x8x4xf32>
    %6 = vector.extract_strided_slice %3 {offsets = [0, 0, 1, 0], sizes = [16, 8, 1, 4], strides = [1, 1, 1, 1]} : vector<16x8x2x4xf32> to vector<16x8x1x4xf32>
    %7 = vector.shape_cast %6 : vector<16x8x1x4xf32> to vector<16x8x4xf32>
    %8 = arith.addf %5, %7 : vector<16x8x4xf32>
    %9 = vector.shape_cast %8 : vector<16x8x4xf32> to vector<8x2x8x4xf32>
    %10 = vector.extract_strided_slice %9 {offsets = [0, 0, 0, 0], sizes = [8, 1, 8, 4], strides = [1, 1, 1, 1]} : vector<8x2x8x4xf32> to vector<8x1x8x4xf32>
    %11 = vector.shape_cast %10 : vector<8x1x8x4xf32> to vector<8x8x4xf32>
    %12 = vector.extract_strided_slice %9 {offsets = [0, 1, 0, 0], sizes = [8, 1, 8, 4], strides = [1, 1, 1, 1]} : vector<8x2x8x4xf32> to vector<8x1x8x4xf32>
    %13 = vector.shape_cast %12 : vector<8x1x8x4xf32> to vector<8x8x4xf32>
    %14 = arith.addf %11, %13 : vector<8x8x4xf32>
    %cst = arith.constant 2.500000e-01 : f32
    %15 = vector.broadcast %cst : f32 to vector<8x8x4xf32>
    %16 = arith.mulf %14, %15 : vector<8x8x4xf32>
    %17 = vector.shape_cast %16 : vector<8x8x4xf32> to vector<64x4xf32>
    %c0_3 = arith.constant 0 : index
    %c0_4 = arith.constant 0 : index
    %18 = vector.load %arg8[%c0_3, %c0_4] : memref<4x8xf32, #tpu.memory_space<vmem>>, vector<4x8xf32>
    %cst_5 = arith.constant dense<0.000000e+00> : vector<64x8xf32>
    %19 = tpu.matmul %17, %18, %cst_5 {dimension_numbers = #tpu.dot_dimension_numbers<[1], [0], [0], [1], [0, 0, 1, 1], [], []>} : vector<64x4xf32>, vector<4x8xf32>, vector<64x8xf32> -> vector<64x8xf32>
    %c0_6 = arith.constant 0 : index
    %c0_7 = arith.constant 0 : index
    %20 = vector.load %arg2[%c0_6, %c0_7] : memref<3x4xf32, #tpu.memory_space<vmem>>, vector<3x4xf32>
    %21 = arith.mulf %2, %2 : vector<256x4xf32>
    %cst_8 = arith.constant dense<0.000000e+00> : vector<4xf32>
    %22 = vector.multi_reduction <add>, %21, %cst_8 [0] : vector<256x4xf32> to vector<4xf32>
    %23 = vector.shape_cast %22 : vector<4xf32> to vector<1x4xf32>
    %cst_9 = arith.constant 2.560000e+02 : f32
    %24 = vector.broadcast %cst_9 : f32 to vector<1x4xf32>
    %25 = arith.divf %23, %24 : vector<1x4xf32>
    %cst_10 = arith.constant 9.99999997E-7 : f32
    %26 = vector.broadcast %cst_10 : f32 to vector<1x4xf32>
    %27 = arith.addf %25, %26 : vector<1x4xf32>
    %28 = math.rsqrt %27 : vector<1x4xf32>
    %29 = vector.broadcast %28 : vector<1x4xf32> to vector<256x4xf32>
    %30 = arith.mulf %2, %29 : vector<256x4xf32>
    %31 = vector.extract_strided_slice %20 {offsets = [1, 0], sizes = [1, 4], strides = [1, 1]} : vector<3x4xf32> to vector<1x4xf32>
    %32 = vector.broadcast %31 : vector<1x4xf32> to vector<256x4xf32>
    %33 = arith.mulf %32, %30 : vector<256x4xf32>
    %34 = vector.extract_strided_slice %20 {offsets = [2, 0], sizes = [1, 4], strides = [1, 1]} : vector<3x4xf32> to vector<1x4xf32>
    %35 = vector.broadcast %34 : vector<1x4xf32> to vector<256x4xf32>
    %36 = arith.addf %33, %35 : vector<256x4xf32>
    %37 = vector.extract_strided_slice %20 {offsets = [0, 0], sizes = [1, 4], strides = [1, 1]} : vector<3x4xf32> to vector<1x4xf32>
    %38 = vector.broadcast %37 : vector<1x4xf32> to vector<256x4xf32>
    %39 = arith.maximumf %36, %38 : vector<256x4xf32>
    %cst_11 = arith.constant 0.000000e+00 : f32
    %40 = vector.broadcast %cst_11 : f32 to vector<1x18x4xf32>
    %c0_12 = arith.constant 0 : index
    %c0_13 = arith.constant 0 : index
    %c0_14 = arith.constant 0 : index
    %41 = vector.load %arg10[%c0_12, %c0_13, %c0_14] : memref<18x18x4xf32, #tpu.memory_space<vmem>>, vector<1x18x4xf32>
    tpu.vector_store %arg10[%c0_12, %c0_13, %c0_14], %40 {strides = array<i32>} : memref<18x18x4xf32, #tpu.memory_space<vmem>>, vector<1x18x4xf32>,
    %cst_15 = arith.constant 0.000000e+00 : f32
    %42 = vector.broadcast %cst_15 : f32 to vector<1x18x4xf32>
    %c17 = arith.constant 17 : index
    %c0_16 = arith.constant 0 : index
    %c0_17 = arith.constant 0 : index
    %43 = vector.load %arg10[%c17, %c0_16, %c0_17] : memref<18x18x4xf32, #tpu.memory_space<vmem>>, vector<1x18x4xf32>
    tpu.vector_store %arg10[%c17, %c0_16, %c0_17], %42 {strides = array<i32>} : memref<18x18x4xf32, #tpu.memory_space<vmem>>, vector<1x18x4xf32>,
    %cst_18 = arith.constant 0.000000e+00 : f32
    %44 = vector.broadcast %cst_18 : f32 to vector<16x1x4xf32>
    %c1 = arith.constant 1 : index
    %c0_19 = arith.constant 0 : index
    %c0_20 = arith.constant 0 : index
    %45 = vector.load %arg10[%c1, %c0_19, %c0_20] : memref<18x18x4xf32, #tpu.memory_space<vmem>>, vector<16x1x4xf32>
    tpu.vector_store %arg10[%c1, %c0_19, %c0_20], %44 {strides = array<i32>} : memref<18x18x4xf32, #tpu.memory_space<vmem>>, vector<16x1x4xf32>,
    %cst_21 = arith.constant 0.000000e+00 : f32
    %46 = vector.broadcast %cst_21 : f32 to vector<16x1x4xf32>
    %c1_22 = arith.constant 1 : index
    %c17_23 = arith.constant 17 : index
    %c0_24 = arith.constant 0 : index
    %47 = vector.load %arg10[%c1_22, %c17_23, %c0_24] : memref<18x18x4xf32, #tpu.memory_space<vmem>>, vector<16x1x4xf32>
    tpu.vector_store %arg10[%c1_22, %c17_23, %c0_24], %46 {strides = array<i32>} : memref<18x18x4xf32, #tpu.memory_space<vmem>>, vector<16x1x4xf32>,
    %48 = vector.shape_cast %39 : vector<256x4xf32> to vector<16x16x4xf32>
    %c1_25 = arith.constant 1 : index
    %c1_26 = arith.constant 1 : index
    %c0_27 = arith.constant 0 : index
    %49 = vector.load %arg10[%c1_25, %c1_26, %c0_27] : memref<18x18x4xf32, #tpu.memory_space<vmem>>, vector<16x16x4xf32>
    tpu.vector_store %arg10[%c1_25, %c1_26, %c0_27], %48 {strides = array<i32>} : memref<18x18x4xf32, #tpu.memory_space<vmem>>, vector<16x16x4xf32>,
    %c0_28 = arith.constant 0 : index
    %c0_29 = arith.constant 0 : index
    %c0_30 = arith.constant 0 : index
    %50 = vector.load %arg10[%c0_28, %c0_29, %c0_30] : memref<18x18x4xf32, #tpu.memory_space<vmem>>, vector<16x16x4xf32>
    %51 = vector.shape_cast %50 : vector<16x16x4xf32> to vector<256x4xf32>
    %c0_31 = arith.constant 0 : index
    %c0_32 = arith.constant 0 : index
    %52 = vector.load %arg3[%c0_31, %c0_32] : memref<36x4xf32, #tpu.memory_space<vmem>>, vector<4x4xf32>
    %cst_33 = arith.constant dense<0.000000e+00> : vector<256x4xf32>
    %53 = tpu.matmul %51, %52, %cst_33 {dimension_numbers = #tpu.dot_dimension_numbers<[1], [0], [0], [1], [0, 0, 1, 1], [], []>} : vector<256x4xf32>, vector<4x4xf32>, vector<256x4xf32> -> vector<256x4xf32>
    %c0_34 = arith.constant 0 : index
    %c1_35 = arith.constant 1 : index
    %c0_36 = arith.constant 0 : index
    %54 = vector.load %arg10[%c0_34, %c1_35, %c0_36] : memref<18x18x4xf32, #tpu.memory_space<vmem>>, vector<16x16x4xf32>
    %55 = vector.shape_cast %54 : vector<16x16x4xf32> to vector<256x4xf32>
    %c4 = arith.constant 4 : index
    %c0_37 = arith.constant 0 : index
    %56 = vector.load %arg3[%c4, %c0_37] : memref<36x4xf32, #tpu.memory_space<vmem>>, vector<4x4xf32>
    %cst_38 = arith.constant dense<0.000000e+00> : vector<256x4xf32>
    %57 = tpu.matmul %55, %56, %cst_38 {dimension_numbers = #tpu.dot_dimension_numbers<[1], [0], [0], [1], [0, 0, 1, 1], [], []>} : vector<256x4xf32>, vector<4x4xf32>, vector<256x4xf32> -> vector<256x4xf32>
    %58 = arith.addf %53, %57 : vector<256x4xf32>
    %c0_39 = arith.constant 0 : index
    %c2 = arith.constant 2 : index
    %c0_40 = arith.constant 0 : index
    %59 = vector.load %arg10[%c0_39, %c2, %c0_40] : memref<18x18x4xf32, #tpu.memory_space<vmem>>, vector<16x16x4xf32>
    %60 = vector.shape_cast %59 : vector<16x16x4xf32> to vector<256x4xf32>
    %c8 = arith.constant 8 : index
    %c0_41 = arith.constant 0 : index
    %61 = vector.load %arg3[%c8, %c0_41] : memref<36x4xf32, #tpu.memory_space<vmem>>, vector<4x4xf32>
    %cst_42 = arith.constant dense<0.000000e+00> : vector<256x4xf32>
    %62 = tpu.matmul %60, %61, %cst_42 {dimension_numbers = #tpu.dot_dimension_numbers<[1], [0], [0], [1], [0, 0, 1, 1], [], []>} : vector<256x4xf32>, vector<4x4xf32>, vector<256x4xf32> -> vector<256x4xf32>
    %63 = arith.addf %58, %62 : vector<256x4xf32>
    %c1_43 = arith.constant 1 : index
    %c0_44 = arith.constant 0 : index
    %c0_45 = arith.constant 0 : index
    %64 = vector.load %arg10[%c1_43, %c0_44, %c0_45] : memref<18x18x4xf32, #tpu.memory_space<vmem>>, vector<16x16x4xf32>
    %65 = vector.shape_cast %64 : vector<16x16x4xf32> to vector<256x4xf32>
    %c12 = arith.constant 12 : index
    %c0_46 = arith.constant 0 : index
    %66 = vector.load %arg3[%c12, %c0_46] : memref<36x4xf32, #tpu.memory_space<vmem>>, vector<4x4xf32>
    %cst_47 = arith.constant dense<0.000000e+00> : vector<256x4xf32>
    %67 = tpu.matmul %65, %66, %cst_47 {dimension_numbers = #tpu.dot_dimension_numbers<[1], [0], [0], [1], [0, 0, 1, 1], [], []>} : vector<256x4xf32>, vector<4x4xf32>, vector<256x4xf32> -> vector<256x4xf32>
    %68 = arith.addf %63, %67 : vector<256x4xf32>
    %c1_48 = arith.constant 1 : index
    %c1_49 = arith.constant 1 : index
    %c0_50 = arith.constant 0 : index
    %69 = vector.load %arg10[%c1_48, %c1_49, %c0_50] : memref<18x18x4xf32, #tpu.memory_space<vmem>>, vector<16x16x4xf32>
    %70 = vector.shape_cast %69 : vector<16x16x4xf32> to vector<256x4xf32>
    %c16 = arith.constant 16 : index
    %c0_51 = arith.constant 0 : index
    %71 = vector.load %arg3[%c16, %c0_51] : memref<36x4xf32, #tpu.memory_space<vmem>>, vector<4x4xf32>
    %cst_52 = arith.constant dense<0.000000e+00> : vector<256x4xf32>
    %72 = tpu.matmul %70, %71, %cst_52 {dimension_numbers = #tpu.dot_dimension_numbers<[1], [0], [0], [1], [0, 0, 1, 1], [], []>} : vector<256x4xf32>, vector<4x4xf32>, vector<256x4xf32> -> vector<256x4xf32>
    %73 = arith.addf %68, %72 : vector<256x4xf32>
    %c1_53 = arith.constant 1 : index
    %c2_54 = arith.constant 2 : index
    %c0_55 = arith.constant 0 : index
    %74 = vector.load %arg10[%c1_53, %c2_54, %c0_55] : memref<18x18x4xf32, #tpu.memory_space<vmem>>, vector<16x16x4xf32>
    %75 = vector.shape_cast %74 : vector<16x16x4xf32> to vector<256x4xf32>
    %c20 = arith.constant 20 : index
    %c0_56 = arith.constant 0 : index
    %76 = vector.load %arg3[%c20, %c0_56] : memref<36x4xf32, #tpu.memory_space<vmem>>, vector<4x4xf32>
    %cst_57 = arith.constant dense<0.000000e+00> : vector<256x4xf32>
    %77 = tpu.matmul %75, %76, %cst_57 {dimension_numbers = #tpu.dot_dimension_numbers<[1], [0], [0], [1], [0, 0, 1, 1], [], []>} : vector<256x4xf32>, vector<4x4xf32>, vector<256x4xf32> -> vector<256x4xf32>
    %78 = arith.addf %73, %77 : vector<256x4xf32>
    %c2_58 = arith.constant 2 : index
    %c0_59 = arith.constant 0 : index
    %c0_60 = arith.constant 0 : index
    %79 = vector.load %arg10[%c2_58, %c0_59, %c0_60] : memref<18x18x4xf32, #tpu.memory_space<vmem>>, vector<16x16x4xf32>
    %80 = vector.shape_cast %79 : vector<16x16x4xf32> to vector<256x4xf32>
    %c24 = arith.constant 24 : index
    %c0_61 = arith.constant 0 : index
    %81 = vector.load %arg3[%c24, %c0_61] : memref<36x4xf32, #tpu.memory_space<vmem>>, vector<4x4xf32>
    %cst_62 = arith.constant dense<0.000000e+00> : vector<256x4xf32>
    %82 = tpu.matmul %80, %81, %cst_62 {dimension_numbers = #tpu.dot_dimension_numbers<[1], [0], [0], [1], [0, 0, 1, 1], [], []>} : vector<256x4xf32>, vector<4x4xf32>, vector<256x4xf32> -> vector<256x4xf32>
    %83 = arith.addf %78, %82 : vector<256x4xf32>
    %c2_63 = arith.constant 2 : index
    %c1_64 = arith.constant 1 : index
    %c0_65 = arith.constant 0 : index
    %84 = vector.load %arg10[%c2_63, %c1_64, %c0_65] : memref<18x18x4xf32, #tpu.memory_space<vmem>>, vector<16x16x4xf32>
    %85 = vector.shape_cast %84 : vector<16x16x4xf32> to vector<256x4xf32>
    %c28 = arith.constant 28 : index
    %c0_66 = arith.constant 0 : index
    %86 = vector.load %arg3[%c28, %c0_66] : memref<36x4xf32, #tpu.memory_space<vmem>>, vector<4x4xf32>
    %cst_67 = arith.constant dense<0.000000e+00> : vector<256x4xf32>
    %87 = tpu.matmul %85, %86, %cst_67 {dimension_numbers = #tpu.dot_dimension_numbers<[1], [0], [0], [1], [0, 0, 1, 1], [], []>} : vector<256x4xf32>, vector<4x4xf32>, vector<256x4xf32> -> vector<256x4xf32>
    %88 = arith.addf %83, %87 : vector<256x4xf32>
    %c2_68 = arith.constant 2 : index
    %c2_69 = arith.constant 2 : index
    %c0_70 = arith.constant 0 : index
    %89 = vector.load %arg10[%c2_68, %c2_69, %c0_70] : memref<18x18x4xf32, #tpu.memory_space<vmem>>, vector<16x16x4xf32>
    %90 = vector.shape_cast %89 : vector<16x16x4xf32> to vector<256x4xf32>
    %c32 = arith.constant 32 : index
    %c0_71 = arith.constant 0 : index
    %91 = vector.load %arg3[%c32, %c0_71] : memref<36x4xf32, #tpu.memory_space<vmem>>, vector<4x4xf32>
    %cst_72 = arith.constant dense<0.000000e+00> : vector<256x4xf32>
    %92 = tpu.matmul %90, %91, %cst_72 {dimension_numbers = #tpu.dot_dimension_numbers<[1], [0], [0], [1], [0, 0, 1, 1], [], []>} : vector<256x4xf32>, vector<4x4xf32>, vector<256x4xf32> -> vector<256x4xf32>
    %93 = arith.addf %88, %92 : vector<256x4xf32>
    %c0_73 = arith.constant 0 : index
    %c0_74 = arith.constant 0 : index
    %94 = vector.load %arg4[%c0_73, %c0_74] : memref<1x4xf32, #tpu.memory_space<vmem>>, vector<1x4xf32>
    %95 = vector.broadcast %94 : vector<1x4xf32> to vector<256x4xf32>
    %96 = arith.addf %93, %95 : vector<256x4xf32>
    %97 = vector.shape_cast %96 : vector<256x4xf32> to vector<16x8x2x4xf32>
    %98 = vector.extract_strided_slice %97 {offsets = [0, 0, 0, 0], sizes = [16, 8, 1, 4], strides = [1, 1, 1, 1]} : vector<16x8x2x4xf32> to vector<16x8x1x4xf32>
    %99 = vector.shape_cast %98 : vector<16x8x1x4xf32> to vector<16x8x4xf32>
    %100 = vector.extract_strided_slice %97 {offsets = [0, 0, 1, 0], sizes = [16, 8, 1, 4], strides = [1, 1, 1, 1]} : vector<16x8x2x4xf32> to vector<16x8x1x4xf32>
    %101 = vector.shape_cast %100 : vector<16x8x1x4xf32> to vector<16x8x4xf32>
    %102 = arith.addf %99, %101 : vector<16x8x4xf32>
    %103 = vector.shape_cast %102 : vector<16x8x4xf32> to vector<8x2x8x4xf32>
    %104 = vector.extract_strided_slice %103 {offsets = [0, 0, 0, 0], sizes = [8, 1, 8, 4], strides = [1, 1, 1, 1]} : vector<8x2x8x4xf32> to vector<8x1x8x4xf32>
    %105 = vector.shape_cast %104 : vector<8x1x8x4xf32> to vector<8x8x4xf32>
    %106 = vector.extract_strided_slice %103 {offsets = [0, 1, 0, 0], sizes = [8, 1, 8, 4], strides = [1, 1, 1, 1]} : vector<8x2x8x4xf32> to vector<8x1x8x4xf32>
    %107 = vector.shape_cast %106 : vector<8x1x8x4xf32> to vector<8x8x4xf32>
    %108 = arith.addf %105, %107 : vector<8x8x4xf32>
    %cst_75 = arith.constant 2.500000e-01 : f32
    %109 = vector.broadcast %cst_75 : f32 to vector<8x8x4xf32>
    %110 = arith.mulf %108, %109 : vector<8x8x4xf32>
    %111 = vector.shape_cast %110 : vector<8x8x4xf32> to vector<64x4xf32>
    %c0_76 = arith.constant 0 : index
    %c0_77 = arith.constant 0 : index
    %112 = vector.load %arg5[%c0_76, %c0_77] : memref<3x4xf32, #tpu.memory_space<vmem>>, vector<3x4xf32>
    %113 = arith.mulf %111, %111 : vector<64x4xf32>
    %cst_78 = arith.constant dense<0.000000e+00> : vector<4xf32>
    %114 = vector.multi_reduction <add>, %113, %cst_78 [0] : vector<64x4xf32> to vector<4xf32>
    %115 = vector.shape_cast %114 : vector<4xf32> to vector<1x4xf32>
    %cst_79 = arith.constant 6.400000e+01 : f32
    %116 = vector.broadcast %cst_79 : f32 to vector<1x4xf32>
    %117 = arith.divf %115, %116 : vector<1x4xf32>
    %cst_80 = arith.constant 9.99999997E-7 : f32
    %118 = vector.broadcast %cst_80 : f32 to vector<1x4xf32>
    %119 = arith.addf %117, %118 : vector<1x4xf32>
    %120 = math.rsqrt %119 : vector<1x4xf32>
    %121 = vector.broadcast %120 : vector<1x4xf32> to vector<64x4xf32>
    %122 = arith.mulf %111, %121 : vector<64x4xf32>
    %123 = vector.extract_strided_slice %112 {offsets = [1, 0], sizes = [1, 4], strides = [1, 1]} : vector<3x4xf32> to vector<1x4xf32>
    %124 = vector.broadcast %123 : vector<1x4xf32> to vector<64x4xf32>
    %125 = arith.mulf %124, %122 : vector<64x4xf32>
    %126 = vector.extract_strided_slice %112 {offsets = [2, 0], sizes = [1, 4], strides = [1, 1]} : vector<3x4xf32> to vector<1x4xf32>
    %127 = vector.broadcast %126 : vector<1x4xf32> to vector<64x4xf32>
    %128 = arith.addf %125, %127 : vector<64x4xf32>
    %129 = vector.extract_strided_slice %112 {offsets = [0, 0], sizes = [1, 4], strides = [1, 1]} : vector<3x4xf32> to vector<1x4xf32>
    %130 = vector.broadcast %129 : vector<1x4xf32> to vector<64x4xf32>
    %131 = arith.maximumf %128, %130 : vector<64x4xf32>
    %cst_81 = arith.constant 0.000000e+00 : f32
    %132 = vector.broadcast %cst_81 : f32 to vector<1x10x4xf32>
    %c0_82 = arith.constant 0 : index
    %c0_83 = arith.constant 0 : index
    %c0_84 = arith.constant 0 : index
    %133 = vector.load %arg11[%c0_82, %c0_83, %c0_84] : memref<10x10x4xf32, #tpu.memory_space<vmem>>, vector<1x10x4xf32>
    tpu.vector_store %arg11[%c0_82, %c0_83, %c0_84], %132 {strides = array<i32>} : memref<10x10x4xf32, #tpu.memory_space<vmem>>, vector<1x10x4xf32>,
    %cst_85 = arith.constant 0.000000e+00 : f32
    %134 = vector.broadcast %cst_85 : f32 to vector<1x10x4xf32>
    %c9 = arith.constant 9 : index
    %c0_86 = arith.constant 0 : index
    %c0_87 = arith.constant 0 : index
    %135 = vector.load %arg11[%c9, %c0_86, %c0_87] : memref<10x10x4xf32, #tpu.memory_space<vmem>>, vector<1x10x4xf32>
    tpu.vector_store %arg11[%c9, %c0_86, %c0_87], %134 {strides = array<i32>} : memref<10x10x4xf32, #tpu.memory_space<vmem>>, vector<1x10x4xf32>,
    %cst_88 = arith.constant 0.000000e+00 : f32
    %136 = vector.broadcast %cst_88 : f32 to vector<8x1x4xf32>
    %c1_89 = arith.constant 1 : index
    %c0_90 = arith.constant 0 : index
    %c0_91 = arith.constant 0 : index
    %137 = vector.load %arg11[%c1_89, %c0_90, %c0_91] : memref<10x10x4xf32, #tpu.memory_space<vmem>>, vector<8x1x4xf32>
    tpu.vector_store %arg11[%c1_89, %c0_90, %c0_91], %136 {strides = array<i32>} : memref<10x10x4xf32, #tpu.memory_space<vmem>>, vector<8x1x4xf32>,
    %cst_92 = arith.constant 0.000000e+00 : f32
    %138 = vector.broadcast %cst_92 : f32 to vector<8x1x4xf32>
    %c1_93 = arith.constant 1 : index
    %c9_94 = arith.constant 9 : index
    %c0_95 = arith.constant 0 : index
    %139 = vector.load %arg11[%c1_93, %c9_94, %c0_95] : memref<10x10x4xf32, #tpu.memory_space<vmem>>, vector<8x1x4xf32>
    tpu.vector_store %arg11[%c1_93, %c9_94, %c0_95], %138 {strides = array<i32>} : memref<10x10x4xf32, #tpu.memory_space<vmem>>, vector<8x1x4xf32>,
    %140 = vector.shape_cast %131 : vector<64x4xf32> to vector<8x8x4xf32>
    %c1_96 = arith.constant 1 : index
    %c1_97 = arith.constant 1 : index
    %c0_98 = arith.constant 0 : index
    %141 = vector.load %arg11[%c1_96, %c1_97, %c0_98] : memref<10x10x4xf32, #tpu.memory_space<vmem>>, vector<8x8x4xf32>
    tpu.vector_store %arg11[%c1_96, %c1_97, %c0_98], %140 {strides = array<i32>} : memref<10x10x4xf32, #tpu.memory_space<vmem>>, vector<8x8x4xf32>,
    %c0_99 = arith.constant 0 : index
    %c0_100 = arith.constant 0 : index
    %c0_101 = arith.constant 0 : index
    %142 = vector.load %arg11[%c0_99, %c0_100, %c0_101] : memref<10x10x4xf32, #tpu.memory_space<vmem>>, vector<8x8x4xf32>
    %143 = vector.shape_cast %142 : vector<8x8x4xf32> to vector<64x4xf32>
    %c0_102 = arith.constant 0 : index
    %c0_103 = arith.constant 0 : index
    %144 = vector.load %arg6[%c0_102, %c0_103] : memref<36x8xf32, #tpu.memory_space<vmem>>, vector<4x8xf32>
    %cst_104 = arith.constant dense<0.000000e+00> : vector<64x8xf32>
    %145 = tpu.matmul %143, %144, %cst_104 {dimension_numbers = #tpu.dot_dimension_numbers<[1], [0], [0], [1], [0, 0, 1, 1], [], []>} : vector<64x4xf32>, vector<4x8xf32>, vector<64x8xf32> -> vector<64x8xf32>
    %c0_105 = arith.constant 0 : index
    %c1_106 = arith.constant 1 : index
    %c0_107 = arith.constant 0 : index
    %146 = vector.load %arg11[%c0_105, %c1_106, %c0_107] : memref<10x10x4xf32, #tpu.memory_space<vmem>>, vector<8x8x4xf32>
    %147 = vector.shape_cast %146 : vector<8x8x4xf32> to vector<64x4xf32>
    %c4_108 = arith.constant 4 : index
    %c0_109 = arith.constant 0 : index
    %148 = vector.load %arg6[%c4_108, %c0_109] : memref<36x8xf32, #tpu.memory_space<vmem>>, vector<4x8xf32>
    %cst_110 = arith.constant dense<0.000000e+00> : vector<64x8xf32>
    %149 = tpu.matmul %147, %148, %cst_110 {dimension_numbers = #tpu.dot_dimension_numbers<[1], [0], [0], [1], [0, 0, 1, 1], [], []>} : vector<64x4xf32>, vector<4x8xf32>, vector<64x8xf32> -> vector<64x8xf32>
    %150 = arith.addf %145, %149 : vector<64x8xf32>
    %c0_111 = arith.constant 0 : index
    %c2_112 = arith.constant 2 : index
    %c0_113 = arith.constant 0 : index
    %151 = vector.load %arg11[%c0_111, %c2_112, %c0_113] : memref<10x10x4xf32, #tpu.memory_space<vmem>>, vector<8x8x4xf32>
    %152 = vector.shape_cast %151 : vector<8x8x4xf32> to vector<64x4xf32>
    %c8_114 = arith.constant 8 : index
    %c0_115 = arith.constant 0 : index
    %153 = vector.load %arg6[%c8_114, %c0_115] : memref<36x8xf32, #tpu.memory_space<vmem>>, vector<4x8xf32>
    %cst_116 = arith.constant dense<0.000000e+00> : vector<64x8xf32>
    %154 = tpu.matmul %152, %153, %cst_116 {dimension_numbers = #tpu.dot_dimension_numbers<[1], [0], [0], [1], [0, 0, 1, 1], [], []>} : vector<64x4xf32>, vector<4x8xf32>, vector<64x8xf32> -> vector<64x8xf32>
    %155 = arith.addf %150, %154 : vector<64x8xf32>
    %c1_117 = arith.constant 1 : index
    %c0_118 = arith.constant 0 : index
    %c0_119 = arith.constant 0 : index
    %156 = vector.load %arg11[%c1_117, %c0_118, %c0_119] : memref<10x10x4xf32, #tpu.memory_space<vmem>>, vector<8x8x4xf32>
    %157 = vector.shape_cast %156 : vector<8x8x4xf32> to vector<64x4xf32>
    %c12_120 = arith.constant 12 : index
    %c0_121 = arith.constant 0 : index
    %158 = vector.load %arg6[%c12_120, %c0_121] : memref<36x8xf32, #tpu.memory_space<vmem>>, vector<4x8xf32>
    %cst_122 = arith.constant dense<0.000000e+00> : vector<64x8xf32>
    %159 = tpu.matmul %157, %158, %cst_122 {dimension_numbers = #tpu.dot_dimension_numbers<[1], [0], [0], [1], [0, 0, 1, 1], [], []>} : vector<64x4xf32>, vector<4x8xf32>, vector<64x8xf32> -> vector<64x8xf32>
    %160 = arith.addf %155, %159 : vector<64x8xf32>
    %c1_123 = arith.constant 1 : index
    %c1_124 = arith.constant 1 : index
    %c0_125 = arith.constant 0 : index
    %161 = vector.load %arg11[%c1_123, %c1_124, %c0_125] : memref<10x10x4xf32, #tpu.memory_space<vmem>>, vector<8x8x4xf32>
    %162 = vector.shape_cast %161 : vector<8x8x4xf32> to vector<64x4xf32>
    %c16_126 = arith.constant 16 : index
    %c0_127 = arith.constant 0 : index
    %163 = vector.load %arg6[%c16_126, %c0_127] : memref<36x8xf32, #tpu.memory_space<vmem>>, vector<4x8xf32>
    %cst_128 = arith.constant dense<0.000000e+00> : vector<64x8xf32>
    %164 = tpu.matmul %162, %163, %cst_128 {dimension_numbers = #tpu.dot_dimension_numbers<[1], [0], [0], [1], [0, 0, 1, 1], [], []>} : vector<64x4xf32>, vector<4x8xf32>, vector<64x8xf32> -> vector<64x8xf32>
    %165 = arith.addf %160, %164 : vector<64x8xf32>
    %c1_129 = arith.constant 1 : index
    %c2_130 = arith.constant 2 : index
    %c0_131 = arith.constant 0 : index
    %166 = vector.load %arg11[%c1_129, %c2_130, %c0_131] : memref<10x10x4xf32, #tpu.memory_space<vmem>>, vector<8x8x4xf32>
    %167 = vector.shape_cast %166 : vector<8x8x4xf32> to vector<64x4xf32>
    %c20_132 = arith.constant 20 : index
    %c0_133 = arith.constant 0 : index
    %168 = vector.load %arg6[%c20_132, %c0_133] : memref<36x8xf32, #tpu.memory_space<vmem>>, vector<4x8xf32>
    %cst_134 = arith.constant dense<0.000000e+00> : vector<64x8xf32>
    %169 = tpu.matmul %167, %168, %cst_134 {dimension_numbers = #tpu.dot_dimension_numbers<[1], [0], [0], [1], [0, 0, 1, 1], [], []>} : vector<64x4xf32>, vector<4x8xf32>, vector<64x8xf32> -> vector<64x8xf32>
    %170 = arith.addf %165, %169 : vector<64x8xf32>
    %c2_135 = arith.constant 2 : index
    %c0_136 = arith.constant 0 : index
    %c0_137 = arith.constant 0 : index
    %171 = vector.load %arg11[%c2_135, %c0_136, %c0_137] : memref<10x10x4xf32, #tpu.memory_space<vmem>>, vector<8x8x4xf32>
    %172 = vector.shape_cast %171 : vector<8x8x4xf32> to vector<64x4xf32>
    %c24_138 = arith.constant 24 : index
    %c0_139 = arith.constant 0 : index
    %173 = vector.load %arg6[%c24_138, %c0_139] : memref<36x8xf32, #tpu.memory_space<vmem>>, vector<4x8xf32>
    %cst_140 = arith.constant dense<0.000000e+00> : vector<64x8xf32>
    %174 = tpu.matmul %172, %173, %cst_140 {dimension_numbers = #tpu.dot_dimension_numbers<[1], [0], [0], [1], [0, 0, 1, 1], [], []>} : vector<64x4xf32>, vector<4x8xf32>, vector<64x8xf32> -> vector<64x8xf32>
    %175 = arith.addf %170, %174 : vector<64x8xf32>
    %c2_141 = arith.constant 2 : index
    %c1_142 = arith.constant 1 : index
    %c0_143 = arith.constant 0 : index
    %176 = vector.load %arg11[%c2_141, %c1_142, %c0_143] : memref<10x10x4xf32, #tpu.memory_space<vmem>>, vector<8x8x4xf32>
    %177 = vector.shape_cast %176 : vector<8x8x4xf32> to vector<64x4xf32>
    %c28_144 = arith.constant 28 : index
    %c0_145 = arith.constant 0 : index
    %178 = vector.load %arg6[%c28_144, %c0_145] : memref<36x8xf32, #tpu.memory_space<vmem>>, vector<4x8xf32>
    %cst_146 = arith.constant dense<0.000000e+00> : vector<64x8xf32>
    %179 = tpu.matmul %177, %178, %cst_146 {dimension_numbers = #tpu.dot_dimension_numbers<[1], [0], [0], [1], [0, 0, 1, 1], [], []>} : vector<64x4xf32>, vector<4x8xf32>, vector<64x8xf32> -> vector<64x8xf32>
    %180 = arith.addf %175, %179 : vector<64x8xf32>
    %c2_147 = arith.constant 2 : index
    %c2_148 = arith.constant 2 : index
    %c0_149 = arith.constant 0 : index
    %181 = vector.load %arg11[%c2_147, %c2_148, %c0_149] : memref<10x10x4xf32, #tpu.memory_space<vmem>>, vector<8x8x4xf32>
    %182 = vector.shape_cast %181 : vector<8x8x4xf32> to vector<64x4xf32>
    %c32_150 = arith.constant 32 : index
    %c0_151 = arith.constant 0 : index
    %183 = vector.load %arg6[%c32_150, %c0_151] : memref<36x8xf32, #tpu.memory_space<vmem>>, vector<4x8xf32>
    %cst_152 = arith.constant dense<0.000000e+00> : vector<64x8xf32>
    %184 = tpu.matmul %182, %183, %cst_152 {dimension_numbers = #tpu.dot_dimension_numbers<[1], [0], [0], [1], [0, 0, 1, 1], [], []>} : vector<64x4xf32>, vector<4x8xf32>, vector<64x8xf32> -> vector<64x8xf32>
    %185 = arith.addf %180, %184 : vector<64x8xf32>
    %c0_153 = arith.constant 0 : index
    %c0_154 = arith.constant 0 : index
    %186 = vector.load %arg7[%c0_153, %c0_154] : memref<1x8xf32, #tpu.memory_space<vmem>>, vector<1x8xf32>
    %187 = vector.broadcast %186 : vector<1x8xf32> to vector<64x8xf32>
    %188 = arith.addf %185, %187 : vector<64x8xf32>
    %189 = arith.addf %19, %188 : vector<64x8xf32>
    %190 = vector.shape_cast %189 : vector<64x8xf32> to vector<1x8x8x8xf32>
    %c0_155 = arith.constant 0 : index
    %c0_156 = arith.constant 0 : index
    %c0_157 = arith.constant 0 : index
    %c0_158 = arith.constant 0 : index
    %191 = vector.load %arg9[%c0_155, %c0_156, %c0_157, %c0_158] : memref<1x8x8x8xf32, #tpu.memory_space<vmem>>, vector<1x8x8x8xf32>
    tpu.vector_store %arg9[%c0_155, %c0_156, %c0_157, %c0_158], %190 {strides = array<i32>} : memref<1x8x8x8xf32, #tpu.memory_space<vmem>>, vector<1x8x8x8xf32>,
    return
  }
  func.func @transform_0(%arg0: i32) -> (i32, i32, i32, i32) {
    %c0_i32 = arith.constant 0 : i32
    %c0_i32_0 = arith.constant 0 : i32
    %c0_i32_1 = arith.constant 0 : i32
    %c0_i32_2 = arith.constant 0 : i32
    return %arg0, %c0_i32, %c0_i32_0, %c0_i32_1 : i32, i32, i32, i32
  }
  func.func @transform_1(%arg0: i32) -> (i32, i32) {
    %c0_i32 = arith.constant 0 : i32
    %c0_i32_0 = arith.constant 0 : i32
    %c0_i32_1 = arith.constant 0 : i32
    return %c0_i32, %c0_i32_0 : i32, i32
  }
  func.func @transform_2(%arg0: i32) -> (i32, i32) {
    %c0_i32 = arith.constant 0 : i32
    %c0_i32_0 = arith.constant 0 : i32
    %c0_i32_1 = arith.constant 0 : i32
    return %c0_i32, %c0_i32_0 : i32, i32
  }
  func.func @transform_3(%arg0: i32) -> (i32, i32) {
    %c0_i32 = arith.constant 0 : i32
    %c0_i32_0 = arith.constant 0 : i32
    %c0_i32_1 = arith.constant 0 : i32
    return %c0_i32, %c0_i32_0 : i32, i32
  }
  func.func @transform_4(%arg0: i32) -> (i32, i32) {
    %c0_i32 = arith.constant 0 : i32
    %c0_i32_0 = arith.constant 0 : i32
    %c0_i32_1 = arith.constant 0 : i32
    return %c0_i32, %c0_i32_0 : i32, i32
  }
  func.func @transform_5(%arg0: i32) -> (i32, i32) {
    %c0_i32 = arith.constant 0 : i32
    %c0_i32_0 = arith.constant 0 : i32
    %c0_i32_1 = arith.constant 0 : i32
    return %c0_i32, %c0_i32_0 : i32, i32
  }
  func.func @transform_6(%arg0: i32) -> (i32, i32) {
    %c0_i32 = arith.constant 0 : i32
    %c0_i32_0 = arith.constant 0 : i32
    %c0_i32_1 = arith.constant 0 : i32
    return %c0_i32, %c0_i32_0 : i32, i32
  }
  func.func @transform_7(%arg0: i32) -> (i32, i32) {
    %c0_i32 = arith.constant 0 : i32
    %c0_i32_0 = arith.constant 0 : i32
    %c0_i32_1 = arith.constant 0 : i32
    return %c0_i32, %c0_i32_0 : i32, i32
  }
  func.func @transform_8(%arg0: i32) -> (i32, i32, i32, i32) {
    %c0_i32 = arith.constant 0 : i32
    %c0_i32_0 = arith.constant 0 : i32
    %c0_i32_1 = arith.constant 0 : i32
    %c0_i32_2 = arith.constant 0 : i32
    return %arg0, %c0_i32, %c0_i32_0, %c0_i32_1 : i32, i32, i32, i32
  }
}

</mosaic_0001>

<bundles_post_ra>
// kernel: act_first_res_blk.1
= control target key start
LH: loop header
LB: loop body
LE: loop exit
PB: predicated region body
PF: predicated region fallthrough
CT: control target
= control target key end

     0   :  { %s11497_s27 = smov 0   ;;  %s14988_s0 = inlined_call_operand.vmem [shape: f32[2,16,16,4], index: 0, kind: input, shape index: {}]   ;;  %s14989_s1 = inlined_call_operand.vmem [shape: f32[3,4], index: 1, kind: input, shape index: {}]   ;;  %s14990_s2 = inlined_call_operand.vmem [shape: f32[36,4], index: 2, kind: input, shape index: {}]   ;;  %s14991_s3 = inlined_call_operand.vmem [shape: f32[1,4], index: 3, kind: input, shape index: {}]   ;;  %s14992_s4 = inlined_call_operand.vmem [shape: f32[3,4], index: 4, kind: input, shape index: {}]   ;;  %s14993_s5 = inlined_call_operand.vmem [shape: f32[36,8], index: 5, kind: input, shape index: {}]   ;;  %s14994_s6 = inlined_call_operand.vmem [shape: f32[1,8], index: 6, kind: input, shape index: {}]   ;;  %s14995_s7 = inlined_call_operand.vmem [shape: f32[4,8], index: 7, kind: input, shape index: {}]   ;;  %s14996_s8 = inlined_call_operand.vmem [shape: f32[2,8,8,8], index: 8, kind: output, shape index: {}]  }
   0x1 LB: > { %s9760_s28 = sadd.s32 4294967295, %s11448_s27   ;;  %p9764_p0 = scmp.ge.s32.totalorder %s11448_s27, 1  ;;  %s11448_s27 = sphi %s11497_s27, %s18_s27  }
   0x2   : > { %p262_p1 = scmp.lt.s32.totalorder %s11448_s27, 3 }
   0x4   : > { %p263_p2 = pnand %p9764_p0, %p262_p1 }
   0x6   : > { %266 = sbr.rel (%p263_p2) target bundleno = 1253 (0x4e5), region = 52 }
   0xb   : > { %v2069_v0 = vld [vmem:[%s14990_s2 + $0x4] sm:$0xf]  ;;  %vm2166_vm0 = vcmask 1043456   ;;  %v2036_v1 = vld [vmem:[%s14990_s2] sm:$0xf]  ;;  %vm1716_vm1 = vcmask 31744  }
   0xc   : > { %10805 = vmatprep.subr.msk.mxu0 %vm2166_vm0, %v2069_v0  ;;  %10855 = vmatprep.subr.msk.mxu1 %vm2166_vm0, %v2036_v1  ;;  %vm1932_vm2 = vcmask 25600   ;;  %v11516_v2 = vld [vmem:[%s14990_s2 + $0x8] sm:$0xf]  ;;  %p11520_p3 = scmp.lt.s32.totalorder %s9760_s28, 1  ;;  %vm1939_vm3 = vcmask 24576   ;;  %v11450_v3 = vmov 0.0  }
   0xd   : > { %10806 = vmatpush3.msk.msra.mxu0 %vm2166_vm0, %v2069_v0  ;;  %1930 = vst.msk [vmem:[#allocation2] sm:$0xff] %vm1716_vm1, %v11450_v3  ;;  %1931 = vst.msk [vmem:[#allocation2 + $0x8] sm:$0xff] %vm1716_vm1, %v11450_v3  ;;  %10856 = vmatpush3.msk.msra.mxu1 %vm2166_vm0, %v2036_v1  ;;  %vm7211_vm4 = vcmask 1041409   ;;  %vm7213_vm5 = vcmask 1042434   ;;  %vm7215_vm6 = vcmask 1043459   ;;  %vm7217_vm7 = vcmask 1044484  }
   0xe   : > { %1935 = vst.msk [vmem:[#allocation2 + $0x198] sm:$0xff] %vm1716_vm1, %v11450_v3  ;;  %1936 = vst.msk [vmem:[#allocation2 + $0x1a0] sm:$0xff] %vm1716_vm1, %v11450_v3  ;;  %10905 = vmatprep.subr.msk.mxu0 %vm2166_vm0, %v11516_v2  ;;  %s15326_s28 = smov (!%p11520_p3, %s9760_s28), 1  ;;  %vm7219_vm8 = vcmask 1045509   ;;  %vm7221_vm9 = vcmask 1046534   ;;  %vm7223_vm10 = vcmask 1047559  }
   0xf   : > { %7825 = vst.msk [vmem:[#allocation3] sm:$0xff] %vm1716_vm1, %v11450_v3  ;;  %7828 = vst.msk [vmem:[#allocation3 + $0x90] sm:$0xff] %vm1716_vm1, %v11450_v3  ;;  %s10416_s14 = sshll.u32 %s15326_s28, 8  ;;  %s10417_s21 = sshll.u32 %s15326_s28, 6  ;;  %vm9696_vm11 = vcmask 64512  }
  0x10   : > { %1933 = vst.msk [vmem:[#allocation2 + $0x10] sm:$0x3] %vm1932_vm2, %v11450_v3  ;;  %1937 = vst.msk [vmem:[#allocation2 + $0x1a8] sm:$0x3] %vm1932_vm2, %v11450_v3  ;;  %s11596_s17 = scalar_lea.vmem %s14988_s0, %s10416_s14  ;;  %s14957_s24 = scalar_lea.vmem %s14996_s8, %s10417_s21 }
  0x11   : > { %7826 = vst.msk [vmem:[#allocation3 + $0x8] sm:$0x3] %vm1932_vm2, %v11450_v3  ;;  %7829 = vst.msk [vmem:[#allocation3 + $0x98] sm:$0x3] %vm1932_vm2, %v11450_v3  ;;  %v11599_v4 = vld [vmem:[%s11596_s17] sm:$0xff]  ;;  %v11602_v5 = vld [vmem:[%s11596_s17 + $0x8] sm:$0xff] }
  0x12   : > { %1940 = vst.msk [vmem:[#allocation2 + $0x18] sm:$0x1] %vm1939_vm3, %v11450_v3  ;;  %1941 = vst.msk [vmem:[#allocation2 + $0x30] sm:$0x1] %vm1939_vm3, %v11450_v3  ;;  %v11605_v6 = vld [vmem:[%s11596_s17 + $0x10] sm:$0xff]  ;;  %v11608_v7 = vld [vmem:[%s11596_s17 + $0x18] sm:$0xff]  ;;  %v1684_v10 = vmul.f32 %v11599_v4, %v11599_v4  ;;  %v1685_v11 = vmul.f32 %v11602_v5, %v11602_v5 }
  0x13   : > { %1942 = vst.msk [vmem:[#allocation2 + $0x48] sm:$0x1] %vm1939_vm3, %v11450_v3  ;;  %1943 = vst.msk [vmem:[#allocation2 + $0x60] sm:$0x1] %vm1939_vm3, %v11450_v3  ;;  %v11611_v8 = vld [vmem:[%s11596_s17 + $0x20] sm:$0xff]  ;;  %v11614_v9 = vld [vmem:[%s11596_s17 + $0x28] sm:$0xff]  ;;  %v1686_v12 = vmul.f32 %v11605_v6, %v11605_v6  ;;  %v1687_v16 = vmul.f32 %v11608_v7, %v11608_v7 }
  0x14   : > { %1944 = vst.msk [vmem:[#allocation2 + $0x78] sm:$0x1] %vm1939_vm3, %v11450_v3  ;;  %1945 = vst.msk [vmem:[#allocation2 + $0x90] sm:$0x1] %vm1939_vm3, %v11450_v3  ;;  %v2037_v13 = vld [vmem:[#allocation2 + $0x1] sm:$0xff]  ;;  %v1688_v18 = vmul.f32 %v11611_v8, %v11611_v8  ;;  %v1717_v19 = vsel %vm1716_vm1, %v1684_v10, 0.0  ;;  %v1689_v24 = vmul.f32 %v11614_v9, %v11614_v9 }
  0x15   : > { %1946 = vst.msk [vmem:[#allocation2 + $0xa8] sm:$0x1] %vm1939_vm3, %v11450_v3  ;;  %1947 = vst.msk [vmem:[#allocation2 + $0xc0] sm:$0x1] %vm1939_vm3, %v11450_v3  ;;  %v2004_v14 = vld [vmem:[#allocation2] sm:$0xff]  ;;  %10807 = vmatprep.mubr.msk.f32.mxu0 %vm1716_vm1, %v2037_v13  ;;  %v2005_v17 = vld [vmem:[#allocation2 + $0x8] sm:$0xff] }
  0x16   : > { %1948 = vst.msk [vmem:[#allocation2 + $0xd8] sm:$0x1] %vm1939_vm3, %v11450_v3  ;;  %1949 = vst.msk [vmem:[#allocation2 + $0xf0] sm:$0x1] %vm1939_vm3, %v11450_v3  ;;  %10857 = vmatprep.mubr.msk.f32.mxu1 %vm1716_vm1, %v2004_v14  ;;  %v1718_v20 = vsel %vm1716_vm1, %v1685_v11, 0.0  ;;  %v1720_v21 = vsel %vm1716_vm1, %v1686_v12, 0.0 }
  0x17   : > { %1950 = vst.msk [vmem:[#allocation2 + $0x108] sm:$0x1] %vm1939_vm3, %v11450_v3  ;;  %1951 = vst.msk [vmem:[#allocation2 + $0x120] sm:$0x1] %vm1939_vm3, %v11450_v3  ;;  %v2038_v15 = vld [vmem:[#allocation2 + $0x9] sm:$0xff]  ;;  %10858 = vmatmul.mubr.msk.f32.vlgmr.msra.gmra.mxu1 %vm1716_vm1, %v2005_v17  ;;  %v1719_v23 = vadd.f32 %v1718_v20, %v1717_v19  ;;  %v1722_v25 = vsel %vm1716_vm1, %v1687_v16, 0.0 }
  0x18   : > { %1952 = vst.msk [vmem:[#allocation2 + $0x138] sm:$0x1] %vm1939_vm3, %v11450_v3  ;;  %1953 = vst.msk [vmem:[#allocation2 + $0x150] sm:$0x1] %vm1939_vm3, %v11450_v3  ;;  %10808 = vmatmul.mubr.msk.f32.vlgmr.msra.gmra.mxu0 %vm1716_vm1, %v2038_v15  ;;  %v11634_v22 = vld [vmem:[%s11596_s17 + $0x30] sm:$0xff]  ;;  %v11642_v26 = vld [vmem:[%s11596_s17 + $0x38] sm:$0xff] }
  0x19   : > { %1954 = vst.msk [vmem:[#allocation2 + $0x168] sm:$0x1] %vm1939_vm3, %v11450_v3  ;;  %1955 = vst.msk [vmem:[#allocation2 + $0x180] sm:$0x1] %vm1939_vm3, %v11450_v3  ;;  %10906 = vmatpush3.msk.msra.mxu0 %vm2166_vm0, %v11516_v2  ;;  %v1721_v27 = vadd.f32 %v1720_v21, %v1719_v23  ;;  %v1690_v28 = vmul.f32 %v11634_v22, %v11634_v22  ;;  %v1724_v29 = vsel %vm1716_vm1, %v1688_v18, 0.0  ;;  %v11648_v30 = vld [vmem:[%s11596_s17 + $0x40] sm:$0xff] }
  0x1a   : > { %1956 = vst.msk [vmem:[#allocation2 + $0x29] sm:$0x1] %vm1939_vm3, %v11450_v3  ;;  %1957 = vst.msk [vmem:[#allocation2 + $0x41] sm:$0x1] %vm1939_vm3, %v11450_v3  ;;  %v1691_v32 = vmul.f32 %v11642_v26, %v11642_v26  ;;  %v1726_v33 = vsel %vm1716_vm1, %v1689_v24, 0.0  ;;  %v11654_v34 = vld [vmem:[%s11596_s17 + $0x48] sm:$0xff]  ;;  %v1692_v36 = vmul.f32 %v11648_v30, %v11648_v30 }
  0x1b   : > { %1958 = vst.msk [vmem:[#allocation2 + $0x59] sm:$0x1] %vm1939_vm3, %v11450_v3  ;;  %1959 = vst.msk [vmem:[#allocation2 + $0x71] sm:$0x1] %vm1939_vm3, %v11450_v3  ;;  %v1723_v31 = vadd.f32 %v1722_v25, %v1721_v27  ;;  %v1728_v37 = vsel %vm1716_vm1, %v1690_v28, 0.0  ;;  %v11660_v38 = vld [vmem:[%s11596_s17 + $0x50] sm:$0xff]  ;;  %v1693_v40 = vmul.f32 %v11654_v34, %v11654_v34 }
  0x1c   : > { %1960 = vst.msk [vmem:[#allocation2 + $0x89] sm:$0x1] %vm1939_vm3, %v11450_v3  ;;  %1961 = vst.msk [vmem:[#allocation2 + $0xa1] sm:$0x1] %vm1939_vm3, %v11450_v3  ;;  %v1730_v41 = vsel %vm1716_vm1, %v1691_v32, 0.0  ;;  %v11666_v42 = vld [vmem:[%s11596_s17 + $0x58] sm:$0xff]  ;;  %v1694_v44 = vmul.f32 %v11660_v38, %v11660_v38 }
  0x1d   : > { %1962 = vst.msk [vmem:[#allocation2 + $0xb9] sm:$0x1] %vm1939_vm3, %v11450_v3  ;;  %1963 = vst.msk [vmem:[#allocation2 + $0xd1] sm:$0x1] %vm1939_vm3, %v11450_v3  ;;  %v1725_v35 = vadd.f32 %v1724_v29, %v1723_v31  ;;  %v1732_v45 = vsel %vm1716_vm1, %v1692_v36, 0.0  ;;  %v11672_v46 = vld [vmem:[%s11596_s17 + $0x60] sm:$0xff]  ;;  %v1695_v48 = vmul.f32 %v11666_v42, %v11666_v42 }
  0x1e   : > { %1964 = vst.msk [vmem:[#allocation2 + $0xe9] sm:$0x1] %vm1939_vm3, %v11450_v3  ;;  %1965 = vst.msk [vmem:[#allocation2 + $0x101] sm:$0x1] %vm1939_vm3, %v11450_v3  ;;  %v1734_v49 = vsel %vm1716_vm1, %v1693_v40, 0.0  ;;  %v11678_v50 = vld [vmem:[%s11596_s17 + $0x68] sm:$0xff]  ;;  %v1696_v52 = vmul.f32 %v11672_v46, %v11672_v46 }
  0x1f   : > { %1966 = vst.msk [vmem:[#allocation2 + $0x119] sm:$0x1] %vm1939_vm3, %v11450_v3  ;;  %1967 = vst.msk [vmem:[#allocation2 + $0x131] sm:$0x1] %vm1939_vm3, %v11450_v3  ;;  %v1727_v39 = vadd.f32 %v1726_v33, %v1725_v35  ;;  %v1736_v53 = vsel %vm1716_vm1, %v1694_v44, 0.0  ;;  %v11684_v54 = vld [vmem:[%s11596_s17 + $0x70] sm:$0xff]  ;;  %v1697_v56 = vmul.f32 %v11678_v50, %v11678_v50 }
  0x20   : > { %1968 = vst.msk [vmem:[#allocation2 + $0x149] sm:$0x1] %vm1939_vm3, %v11450_v3  ;;  %1969 = vst.msk [vmem:[#allocation2 + $0x161] sm:$0x1] %vm1939_vm3, %v11450_v3  ;;  %v1738_v57 = vsel %vm1716_vm1, %v1695_v48, 0.0  ;;  %v11690_v58 = vld [vmem:[%s11596_s17 + $0x78] sm:$0xff]  ;;  %v1698_v60 = vmul.f32 %v11684_v54, %v11684_v54 }
  0x21   : > { %1970 = vst.msk [vmem:[#allocation2 + $0x179] sm:$0x1] %vm1939_vm3, %v11450_v3  ;;  %1971 = vst.msk [vmem:[#allocation2 + $0x191] sm:$0x1] %vm1939_vm3, %v11450_v3  ;;  %v1729_v43 = vadd.f32 %v1728_v37, %v1727_v39  ;;  %v1740_v61 = vsel %vm1716_vm1, %v1696_v52, 0.0  ;;  %v11696_v62 = vld [vmem:[%s11596_s17 + $0x80] sm:$0xff]  ;;  %v1699_v0 = vmul.f32 %v11690_v58, %v11690_v58 }
  0x22   : > { %7831 = vst.msk [vmem:[#allocation3 + $0x10] sm:$0x1] %vm1939_vm3, %v11450_v3  ;;  %7832 = vst.msk [vmem:[#allocation3 + $0x20] sm:$0x1] %vm1939_vm3, %v11450_v3  ;;  %v1742_v1 = vsel %vm1716_vm1, %v1697_v56, 0.0  ;;  %v11702_v2 = vld [vmem:[%s11596_s17 + $0x88] sm:$0xff]  ;;  %v1700_v10 = vmul.f32 %v11696_v62, %v11696_v62 }
  0x23   : > { %7833 = vst.msk [vmem:[#allocation3 + $0x30] sm:$0x1] %vm1939_vm3, %v11450_v3  ;;  %7834 = vst.msk [vmem:[#allocation3 + $0x40] sm:$0x1] %vm1939_vm3, %v11450_v3  ;;  %v1731_v47 = vadd.f32 %v1730_v41, %v1729_v43  ;;  %v1744_v11 = vsel %vm1716_vm1, %v1698_v60, 0.0  ;;  %v11708_v12 = vld [vmem:[%s11596_s17 + $0x90] sm:$0xff]  ;;  %v1701_v14 = vmul.f32 %v11702_v2, %v11702_v2 }
  0x24   : > { %7835 = vst.msk [vmem:[#allocation3 + $0x50] sm:$0x1] %vm1939_vm3, %v11450_v3  ;;  %7836 = vst.msk [vmem:[#allocation3 + $0x60] sm:$0x1] %vm1939_vm3, %v11450_v3  ;;  %v1746_v15 = vsel %vm1716_vm1, %v1699_v0, 0.0  ;;  %v11714_v16 = vld [vmem:[%s11596_s17 + $0x98] sm:$0xff]  ;;  %v1702_v18 = vmul.f32 %v11708_v12, %v11708_v12 }
  0x25   : > { %7837 = vst.msk [vmem:[#allocation3 + $0x70] sm:$0x1] %vm1939_vm3, %v11450_v3  ;;  %7838 = vst.msk [vmem:[#allocation3 + $0x80] sm:$0x1] %vm1939_vm3, %v11450_v3  ;;  %v1733_v51 = vadd.f32 %v1732_v45, %v1731_v47  ;;  %v1748_v19 = vsel %vm1716_vm1, %v1700_v10, 0.0  ;;  %v11720_v20 = vld [vmem:[%s11596_s17 + $0xa0] sm:$0xff]  ;;  %v1703_v23 = vmul.f32 %v11714_v16, %v11714_v16 }
  0x26   : > { %7839 = vst.msk [vmem:[#allocation3 + $0x19] sm:$0x1] %vm1939_vm3, %v11450_v3  ;;  %7840 = vst.msk [vmem:[#allocation3 + $0x29] sm:$0x1] %vm1939_vm3, %v11450_v3  ;;  %v1750_v24 = vsel %vm1716_vm1, %v1701_v14, 0.0  ;;  %v11726_v25 = vld [vmem:[%s11596_s17 + $0xa8] sm:$0xff]  ;;  %v1704_v28 = vmul.f32 %v11720_v20, %v11720_v20 }
  0x27   : > { %7841 = vst.msk [vmem:[#allocation3 + $0x39] sm:$0x1] %vm1939_vm3, %v11450_v3  ;;  %7842 = vst.msk [vmem:[#allocation3 + $0x49] sm:$0x1] %vm1939_vm3, %v11450_v3  ;;  %v1735_v55 = vadd.f32 %v1734_v49, %v1733_v51  ;;  %v1752_v29 = vsel %vm1716_vm1, %v1702_v18, 0.0  ;;  %v11732_v31 = vld [vmem:[%s11596_s17 + $0xb0] sm:$0xff]  ;;  %v1705_v33 = vmul.f32 %v11726_v25, %v11726_v25 }
  0x28   : > { %7843 = vst.msk [vmem:[#allocation3 + $0x59] sm:$0x1] %vm1939_vm3, %v11450_v3  ;;  %7844 = vst.msk [vmem:[#allocation3 + $0x69] sm:$0x1] %vm1939_vm3, %v11450_v3  ;;  %v1754_v35 = vsel %vm1716_vm1, %v1703_v23, 0.0  ;;  %v11738_v36 = vld [vmem:[%s11596_s17 + $0xb8] sm:$0xff]  ;;  %v1706_v39 = vmul.f32 %v11732_v31, %v11732_v31 }
  0x29   : > { %7845 = vst.msk [vmem:[#allocation3 + $0x79] sm:$0x1] %vm1939_vm3, %v11450_v3  ;;  %7846 = vst.msk [vmem:[#allocation3 + $0x89] sm:$0x1] %vm1939_vm3, %v11450_v3  ;;  %v1737_v59 = vadd.f32 %v1736_v53, %v1735_v55  ;;  %v1756_v40 = vsel %vm1716_vm1, %v1704_v28, 0.0  ;;  %v11744_v41 = vld [vmem:[%s11596_s17 + $0xc0] sm:$0xff]  ;;  %v1707_v44 = vmul.f32 %v11738_v36, %v11738_v36 }
  0x2a   : > { %v1758_v45 = vsel %vm1716_vm1, %v1705_v33, 0.0  ;;  %v3140_v47 = vld [vmem:[%s14990_s2 + $0xc] sm:$0xf]  ;;  %v11759_v51 = vld [vmem:[%s14990_s2 + $0x10] sm:$0xf]  ;;  %v1708_v52 = vmul.f32 %v11744_v41, %v11744_v41  ;;  %v1760_v53 = vsel %vm1716_vm1, %v1706_v39, 0.0 }
  0x2b   : > { %v1739_v63 = vadd.f32 %v1738_v57, %v1737_v59  ;;  %v11753_v48 = vld [vmem:[%s11596_s17 + $0xc8] sm:$0xff]  ;;  %10955 = vmatprep.subr.msk.mxu1 %vm2166_vm0, %v3140_v47  ;;  %11005 = vmatprep.subr.msk.mxu0 %vm2166_vm0, %v11759_v51  ;;  %v11768_v55 = vld [vmem:[%s11596_s17 + $0xd0] sm:$0xff]  ;;  %v1762_v59 = vsel %vm1716_vm1, %v1707_v44, 0.0  ;;  %v11774_v60 = vld [vmem:[%s11596_s17 + $0xd8] sm:$0xff] }
  0x2c   : > { %10956 = vmatpush3.msk.msra.mxu1 %vm2166_vm0, %v3140_v47  ;;  %v1709_v57 = vmul.f32 %v11753_v48, %v11753_v48  ;;  %v1764_v0 = vsel %vm1716_vm1, %v1708_v52, 0.0  ;;  %v1711_v10 = vmul.f32 %v11774_v60, %v11774_v60  ;;  %v11792_v18 = vld [vmem:[%s11596_s17 + $0xf0] sm:$0xff] }
  0x2d   : > { %v1741_v3 = vadd.f32 %v1740_v61, %v1739_v63  ;;  %v1710_v63 = vmul.f32 %v11768_v55, %v11768_v55  ;;  %v1714_v28 = vmul.f32 %v11792_v18, %v11792_v18 }
  0x2e   : > { %v1770_v23 = vsel %vm1716_vm1, %v1711_v10, 0.0  ;;  %v1683_v10 = vld [vmem:[%s14989_s1] sm:$0x7] }
  0x2f   : > { %v1743_v13 = vadd.f32 %v1742_v1, %v1741_v3  ;;  %v11780_v1 = vld [vmem:[%s11596_s17 + $0xe0] sm:$0xff]  ;;  %v1776_v39 = vsel %vm1716_vm1, %v1714_v28, 0.0 }
  0x31   : > { %v1745_v17 = vadd.f32 %v1744_v11, %v1743_v13  ;;  %v1766_v11 = vsel %vm1716_vm1, %v1709_v57, 0.0  ;;  %v11786_v13 = vld [vmem:[%s11596_s17 + $0xe8] sm:$0xff] }
  0x33   : > { %v1747_v21 = vadd.f32 %v1746_v15, %v1745_v17  ;;  %v1712_v15 = vmul.f32 %v11780_v1, %v11780_v1  ;;  %v1768_v17 = vsel %vm1716_vm1, %v1710_v63, 0.0  ;;  %v374_v63 = vlaneseq }
  0x35   : > { %v1749_v27 = vadd.f32 %v1748_v19, %v1747_v21  ;;  %v1713_v21 = vmul.f32 %v11786_v13, %v11786_v13 }
  0x37   : > { %v1751_v32 = vadd.f32 %v1750_v24, %v1749_v27  ;;  %v11798_v24 = vld [vmem:[%s11596_s17 + $0xf8] sm:$0xff] }
  0x38   : > { %v1715_v33 = vmul.f32 %v11798_v24, %v11798_v24 }
  0x39   : > { %v1753_v37 = vadd.f32 %v1752_v29, %v1751_v32  ;;  %v1772_v29 = vsel %vm1716_vm1, %v1712_v15, 0.0 }
  0x3b   : > { %v1755_v43 = vadd.f32 %v1754_v35, %v1753_v37  ;;  %v1774_v35 = vsel %vm1716_vm1, %v1713_v21, 0.0 }
  0x3d   : > { %v1757_v49 = vadd.f32 %v1756_v40, %v1755_v43  ;;  %v1778_v43 = vsel %vm1716_vm1, %v1715_v33, 0.0 }
  0x3f   : > { %v1759_v56 = vadd.f32 %v1758_v45, %v1757_v49 }
  0x41   : > { %v1761_v61 = vadd.f32 %v1760_v53, %v1759_v56 }
  0x43   : > { %v1763_v3 = vadd.f32 %v1762_v59, %v1761_v61 }
  0x45   : > { %v1765_v14 = vadd.f32 %v1764_v0, %v1763_v3  ;;  %v11808_v0 = vshrl.u32 %v374_v63, 7 }
  0x47   : > { %v1767_v19 = vadd.f32 %v1766_v11, %v1765_v14  ;;  %15077 = vst [vmem:[#allocation4_spill] sm:$0xff] %v11808_v0  ;;  %v14998_v3 = vsub.s32 1, %v11808_v0  ;;  %v14997_v11 = vsub.s32 2, %v11808_v0  ;;  %v11816_v14 = vsub.s32 0, %v11808_v0  ;;  %v2720_v0 = vld [vmem:[#allocation2 + $0xa] sm:$0xff] }
  0x49   : > { %v1769_v27 = vadd.f32 %v1768_v17, %v1767_v19  ;;  %15078 = vst [vmem:[#allocation5_spill] sm:$0xff] %v11816_v14  ;;  %v11820_v15 = vrot.slane %v1683_v10, %v14998_v3  ;;  %v11826_v19 = vrot.slane %v1683_v10, %v14997_v11  ;;  %v11829_v21 = vrot.slane %v1683_v10, %v11816_v14  ;;  %v2719_v14 = vld [vmem:[#allocation2 + $0x2] sm:$0xff] }
  0x4b   : > { %v1771_v32 = vadd.f32 %v1770_v23, %v1769_v27 }
  0x4d   : > { %v1773_v37 = vadd.f32 %v1772_v29, %v1771_v32 }
  0x4f   : > { %v1775_v40 = vadd.f32 %v1774_v35, %v1773_v37 }
  0x51   : > { %v1777_v44 = vadd.f32 %v1776_v39, %v1775_v40 }
  0x53   : > { %v1779_v45 = vadd.f32 %v1778_v43, %v1777_v44 }
  0x55   : > { %v1780_v47 = vrot.slane %v1779_v45, 4 }
  0x57   : > { %v1781_v49 = vadd.f32 %v1780_v47, %v1779_v45 }
  0x59   : > { %v1782_v52 = vrot.slane %v1781_v49, 2 }
  0x5b   : > { %v1783_v53 = vadd.f32 %v1782_v52, %v1781_v49 }
  0x5d   : > { %v1784_v56 = vrot.slane %v1783_v53, 1 }
  0x5f   : > { %v1785_v57 = vadd.f32 %v1784_v56, %v1783_v53 }
  0x61   : > { %v1787_v59 = vmul.f32 0.00390625, %v1785_v57 }
  0x63   : > { %v1788_v61 = vadd.f32 1e-06, %v1787_v59 }
  0x65   : > { %11405 = vrsqrt.f32 %v1788_v61 }
  0x72   : > { %v11822_v17 = vpop.eup %11405 }
  0x73   : > { %v1790_v23 = vmul.f32 %v11822_v17, %v11599_v4  ;;  %v1791_v27 = vmul.f32 %v11822_v17, %v11602_v5  ;;  %v1792_v28 = vmul.f32 %v11822_v17, %v11605_v6  ;;  %v1793_v29 = vmul.f32 %v11822_v17, %v11608_v7 }
  0x74   : > { %v1794_v32 = vmul.f32 %v11822_v17, %v11611_v8  ;;  %v1795_v33 = vmul.f32 %v11822_v17, %v11614_v9  ;;  %v1796_v35 = vmul.f32 %v11822_v17, %v11634_v22  ;;  %v1797_v4 = vmul.f32 %v11822_v17, %v11642_v26 }
  0x75   : > { %v1826_v5 = vmul.f32 %v11820_v15, %v1790_v23  ;;  %v1827_v37 = vmul.f32 %v11820_v15, %v1791_v27  ;;  %v1828_v6 = vmul.f32 %v11820_v15, %v1792_v28  ;;  %v1829_v7 = vmul.f32 %v11820_v15, %v1793_v29 }
  0x76   : > { %v1830_v39 = vmul.f32 %v11820_v15, %v1794_v32  ;;  %v1831_v8 = vmul.f32 %v11820_v15, %v1795_v33  ;;  %v1832_v9 = vmul.f32 %v11820_v15, %v1796_v35  ;;  %v1833_v40 = vmul.f32 %v11820_v15, %v1797_v4  ;;  %v11898_v33 = vld [vmem:[%s14990_s2 + $0x14] sm:$0xf] }
  0x77   : > { %v1862_v22 = vadd.f32 %v11826_v19, %v1826_v5  ;;  %v1863_v26 = vadd.f32 %v11826_v19, %v1827_v37  ;;  %v1864_v43 = vadd.f32 %v11826_v19, %v1828_v6  ;;  %v1865_v44 = vadd.f32 %v11826_v19, %v1829_v7  ;;  %11055 = vmatprep.subr.msk.mxu1 %vm2166_vm0, %v11898_v33 }
  0x78   : > { %v1866_v45 = vadd.f32 %v11826_v19, %v1830_v39  ;;  %v1867_v47 = vadd.f32 %v11826_v19, %v1831_v8  ;;  %v1868_v49 = vadd.f32 %v11826_v19, %v1832_v9  ;;  %v1869_v52 = vadd.f32 %v11826_v19, %v1833_v40 }
  0x79   : > { %v1898_v53 = vmax.f32 %v1862_v22, %v11829_v21  ;;  %v1899_v56 = vmax.f32 %v1863_v26, %v11829_v21  ;;  %v1900_v57 = vmax.f32 %v1864_v43, %v11829_v21  ;;  %v1901_v59 = vmax.f32 %v1865_v44, %v11829_v21 }
  0x7a   : > { %v1902_v61 = vmax.f32 %v1866_v45, %v11829_v21  ;;  %v1903_v63 = vmax.f32 %v1867_v47, %v11829_v21  ;;  %v1904_v10 = vmax.f32 %v1868_v49, %v11829_v21  ;;  %v1905_v23 = vmax.f32 %v1869_v52, %v11829_v21 }
  0x7b   : > { %1972 = vst.msk [vmem:[#allocation2 + $0x19] sm:$0xff] %vm1716_vm1, %v1898_v53  ;;  %1973 = vst.msk [vmem:[#allocation2 + $0x21] sm:$0xff] %vm1716_vm1, %v1899_v56  ;;  %v1798_v27 = vmul.f32 %v11822_v17, %v11648_v30  ;;  %v1799_v28 = vmul.f32 %v11822_v17, %v11654_v34  ;;  %v1800_v29 = vmul.f32 %v11822_v17, %v11660_v38 }
  0x7c   : > { %1974 = vst.msk [vmem:[#allocation2 + $0x31] sm:$0xff] %vm1716_vm1, %v1900_v57  ;;  %1975 = vst.msk [vmem:[#allocation2 + $0x39] sm:$0xff] %vm1716_vm1, %v1901_v59  ;;  %v1801_v32 = vmul.f32 %v11822_v17, %v11666_v42  ;;  %v1802_v30 = vmul.f32 %v11822_v17, %v11672_v46  ;;  %v1803_v34 = vmul.f32 %v11822_v17, %v11678_v50 }
  0x7d   : > { %1976 = vst.msk [vmem:[#allocation2 + $0x49] sm:$0xff] %vm1716_vm1, %v1902_v61  ;;  %1977 = vst.msk [vmem:[#allocation2 + $0x51] sm:$0xff] %vm1716_vm1, %v1903_v63  ;;  %v1804_v38 = vmul.f32 %v11822_v17, %v11684_v54  ;;  %v1805_v42 = vmul.f32 %v11822_v17, %v11690_v58  ;;  %v1834_v35 = vmul.f32 %v11820_v15, %v1798_v27 }
  0x7e   : > { %1978 = vst.msk [vmem:[#allocation2 + $0x61] sm:$0xff] %vm1716_vm1, %v1904_v10  ;;  %1979 = vst.msk [vmem:[#allocation2 + $0x69] sm:$0xff] %vm1716_vm1, %v1905_v23  ;;  %v1835_v4 = vmul.f32 %v11820_v15, %v1799_v28  ;;  %v1836_v46 = vmul.f32 %v11820_v15, %v1800_v29  ;;  %v1837_v5 = vmul.f32 %v11820_v15, %v1801_v32 }
  0x7f   : > { %v1838_v50 = vmul.f32 %v11820_v15, %v1802_v30  ;;  %v1839_v54 = vmul.f32 %v11820_v15, %v1803_v34  ;;  %v1840_v58 = vmul.f32 %v11820_v15, %v1804_v38  ;;  %v1841_v37 = vmul.f32 %v11820_v15, %v1805_v42 }
  0x80   : > { %v1870_v6 = vadd.f32 %v11826_v19, %v1834_v35  ;;  %v1871_v7 = vadd.f32 %v11826_v19, %v1835_v4  ;;  %v1872_v39 = vadd.f32 %v11826_v19, %v1836_v46  ;;  %v1873_v8 = vadd.f32 %v11826_v19, %v1837_v5 }
  0x81   : > { %v1874_v9 = vadd.f32 %v11826_v19, %v1838_v50  ;;  %v1875_v40 = vadd.f32 %v11826_v19, %v1839_v54  ;;  %v1876_v22 = vadd.f32 %v11826_v19, %v1840_v58  ;;  %v1877_v26 = vadd.f32 %v11826_v19, %v1841_v37 }
  0x82   : > { %v1906_v43 = vmax.f32 %v1870_v6, %v11829_v21  ;;  %v1907_v44 = vmax.f32 %v1871_v7, %v11829_v21  ;;  %v1908_v45 = vmax.f32 %v1872_v39, %v11829_v21  ;;  %v1909_v47 = vmax.f32 %v1873_v8, %v11829_v21  ;;  %v11922_v49 = vld [vmem:[#allocation2 + $0x19] sm:$0xff]  ;;  %v11926_v53 = vld [vmem:[#allocation2 + $0x21] sm:$0xff] }
  0x83   : > { %v11924_v52 = vld [vmem:[#allocation2 + $0x18] sm:$0xff]  ;;  %v1910_v56 = vmax.f32 %v1874_v9, %v11829_v21  ;;  %v1911_v57 = vmax.f32 %v1875_v40, %v11829_v21  ;;  %v1912_v59 = vmax.f32 %v1876_v22, %v11829_v21  ;;  %v1913_v61 = vmax.f32 %v1877_v26, %v11829_v21  ;;  %10810 = vmatprep.mubr.msk.f32.mxu0 %vm1716_vm1, %v11922_v49  ;;  %v11936_v63 = vld [vmem:[#allocation2 + $0x20] sm:$0xff]  ;;  %v11940_v23 = vld [vmem:[#allocation2 + $0x30] sm:$0xff] }
  0x84   : > { %10860 = vmatprep.mubr.msk.f32.mxu1 %vm1716_vm1, %v11924_v52  ;;  %v11938_v10 = vld [vmem:[#allocation2 + $0x31] sm:$0xff]  ;;  %1980 = vst.msk [vmem:[#allocation2 + $0x79] sm:$0xff] %vm1716_vm1, %v1906_v43  ;;  %1981 = vst.msk [vmem:[#allocation2 + $0x81] sm:$0xff] %vm1716_vm1, %v1907_v44  ;;  %v1806_v27 = vmul.f32 %v11822_v17, %v11696_v62  ;;  %v1807_v28 = vmul.f32 %v11822_v17, %v11702_v2  ;;  %v1808_v29 = vmul.f32 %v11822_v17, %v11708_v12  ;;  %v11970_v32 = vld [vmem:[#allocation2 + $0x39] sm:$0xff] }
  0x85   : > { %1982 = vst.msk [vmem:[#allocation2 + $0x91] sm:$0xff] %vm1716_vm1, %v1908_v45  ;;  %1983 = vst.msk [vmem:[#allocation2 + $0x99] sm:$0xff] %vm1716_vm1, %v1909_v47  ;;  %10811 = vmatmul.mubr.msk.f32.gmra.mxu0 %vm1716_vm1, %v11926_v53  ;;  %10861 = vmatmul.mubr.msk.f32.gmra.mxu1 %vm1716_vm1, %v11936_v63  ;;  %v1809_v62 = vmul.f32 %v11822_v17, %v11714_v16  ;;  %v1810_v2 = vmul.f32 %v11822_v17, %v11720_v20  ;;  %v11972_v30 = vld [vmem:[#allocation2 + $0x38] sm:$0xff]  ;;  %v11977_v20 = vld [vmem:[#allocation2 + $0x49] sm:$0xff] }
  0x86   : > { %1984 = vst.msk [vmem:[#allocation2 + $0xa9] sm:$0xff] %vm1716_vm1, %v1910_v56  ;;  %1985 = vst.msk [vmem:[#allocation2 + $0xb1] sm:$0xff] %vm1716_vm1, %v1911_v57  ;;  %v1811_v12 = vmul.f32 %v11822_v17, %v11726_v25  ;;  %10813 = vmatprep.mubr.msk.f32.mxu0 %vm1716_vm1, %v11938_v10  ;;  %10863 = vmatprep.mubr.msk.f32.mxu1 %vm1716_vm1, %v11940_v23  ;;  %v1842_v34 = vmul.f32 %v11820_v15, %v1806_v27  ;;  %v11979_v42 = vld [vmem:[#allocation2 + $0x48] sm:$0xff]  ;;  %v12002_v7 = vld [vmem:[#allocation2 + $0x51] sm:$0xff] }
  0x87   : > { %1986 = vst.msk [vmem:[#allocation2 + $0xc1] sm:$0xff] %vm1716_vm1, %v1912_v59  ;;  %1987 = vst.msk [vmem:[#allocation2 + $0xc9] sm:$0xff] %vm1716_vm1, %v1913_v61  ;;  %v1843_v16 = vmul.f32 %v11820_v15, %v1807_v28  ;;  %v1844_v38 = vmul.f32 %v11820_v15, %v1808_v29  ;;  %v1845_v25 = vmul.f32 %v11820_v15, %v1809_v62  ;;  %v12009_v40 = vld [vmem:[#allocation2 + $0x61] sm:$0xff]  ;;  %v12043_v61 = vld [vmem:[#allocation2 + $0x69] sm:$0xff] }
  0x88   : > { %v1846_v35 = vmul.f32 %v11820_v15, %v1810_v2  ;;  %v1847_v4 = vmul.f32 %v11820_v15, %v1811_v12  ;;  %v1812_v46 = vmul.f32 %v11822_v17, %v11732_v31  ;;  %v1878_v5 = vadd.f32 %v11826_v19, %v1842_v34  ;;  %v12011_v22 = vld [vmem:[#allocation2 + $0x60] sm:$0xff]  ;;  %v12045_v27 = vld [vmem:[#allocation2 + $0x68] sm:$0xff] }
  0x89   : > { %v1879_v50 = vadd.f32 %v11826_v19, %v1843_v16  ;;  %v1880_v54 = vadd.f32 %v11826_v19, %v1844_v38  ;;  %v1813_v58 = vmul.f32 %v11822_v17, %v11738_v36  ;;  %10814 = vmatmul.mubr.msk.f32.gmra.mxu0 %vm1716_vm1, %v11970_v32  ;;  %10864 = vmatmul.mubr.msk.f32.gmra.mxu1 %vm1716_vm1, %v11972_v30  ;;  %v12004_v36 = vld [vmem:[#allocation2 + $0x50] sm:$0xff] }
  0x8a   : > { %v1881_v37 = vadd.f32 %v11826_v19, %v1845_v25  ;;  %v1882_v6 = vadd.f32 %v11826_v19, %v1846_v35  ;;  %v1883_v31 = vadd.f32 %v11826_v19, %v1847_v4  ;;  %10816 = vmatprep.mubr.msk.f32.mxu0 %vm1716_vm1, %v11977_v20  ;;  %10866 = vmatprep.mubr.msk.f32.mxu1 %vm1716_vm1, %v11979_v42 }
  0x8b   : > { %v1914_v39 = vmax.f32 %v1878_v5, %v11829_v21  ;;  %v1915_v8 = vmax.f32 %v1879_v50, %v11829_v21  ;;  %v1916_v9 = vmax.f32 %v1880_v54, %v11829_v21  ;;  %v1848_v45 = vmul.f32 %v11820_v15, %v1812_v46  ;;  %v12052_v2 = vld [vmem:[#allocation2 + $0x78] sm:$0xff]  ;;  %v12077_v54 = vld [vmem:[#allocation2 + $0x80] sm:$0xff] }
  0x8c   : > { %v1917_v26 = vmax.f32 %v1881_v37, %v11829_v21  ;;  %v1918_v43 = vmax.f32 %v1882_v6, %v11829_v21  ;;  %v1919_v44 = vmax.f32 %v1883_v31, %v11829_v21  ;;  %v1849_v47 = vmul.f32 %v11820_v15, %v1813_v58  ;;  %v12083_v31 = vld [vmem:[#allocation2 + $0x91] sm:$0xff] }
  0x8d   : > { %1988 = vst.msk [vmem:[#allocation2 + $0xd9] sm:$0xff] %vm1716_vm1, %v1914_v39  ;;  %1989 = vst.msk [vmem:[#allocation2 + $0xe1] sm:$0xff] %vm1716_vm1, %v1915_v8  ;;  %v1814_v56 = vmul.f32 %v11822_v17, %v11744_v41  ;;  %v1815_v57 = vmul.f32 %v11822_v17, %v11753_v48  ;;  %v1816_v59 = vmul.f32 %v11822_v17, %v11768_v55  ;;  %10817 = vmatmul.mubr.msk.f32.gmra.mxu0 %vm1716_vm1, %v12002_v7  ;;  %v12085_v39 = vld [vmem:[#allocation2 + $0x90] sm:$0xff] }
  0x8e   : > { %1990 = vst.msk [vmem:[#allocation2 + $0xf1] sm:$0xff] %vm1716_vm1, %v1916_v9  ;;  %10867 = vmatmul.mubr.msk.f32.gmra.mxu1 %vm1716_vm1, %v12004_v36  ;;  %1991 = vst.msk [vmem:[#allocation2 + $0xf9] sm:$0xff] %vm1716_vm1, %v1917_v26  ;;  %v1884_v41 = vadd.f32 %v11826_v19, %v1848_v45  ;;  %v1817_v48 = vmul.f32 %v11822_v17, %v11774_v60  ;;  %v1818_v55 = vmul.f32 %v11822_v17, %v11780_v1  ;;  %v12050_v60 = vld [vmem:[#allocation2 + $0x79] sm:$0xff] }
  0x8f   : > { %1992 = vst.msk [vmem:[#allocation2 + $0x109] sm:$0xff] %vm1716_vm1, %v1918_v43  ;;  %1993 = vst.msk [vmem:[#allocation2 + $0x111] sm:$0xff] %vm1716_vm1, %v1919_v44  ;;  %10819 = vmatprep.mubr.msk.f32.mxu0 %vm1716_vm1, %v12009_v40  ;;  %10869 = vmatprep.mubr.msk.f32.mxu1 %vm1716_vm1, %v12011_v22  ;;  %v1885_v28 = vadd.f32 %v11826_v19, %v1849_v47  ;;  %v1850_v29 = vmul.f32 %v11820_v15, %v1814_v56 }
  0x90   : > { %v1851_v62 = vmul.f32 %v11820_v15, %v1815_v57  ;;  %v1920_v1 = vmax.f32 %v1884_v41, %v11829_v21  ;;  %v1852_v12 = vmul.f32 %v11820_v15, %v1816_v59  ;;  %v1853_v34 = vmul.f32 %v11820_v15, %v1817_v48  ;;  %v12115_v57 = vld [vmem:[#allocation2 + $0xa9] sm:$0xff] }
  0x91   : > { %v1854_v16 = vmul.f32 %v11820_v15, %v1818_v55  ;;  %v1921_v38 = vmax.f32 %v1885_v28, %v11829_v21  ;;  %v1886_v25 = vadd.f32 %v11826_v19, %v1850_v29  ;;  %v1819_v4 = vmul.f32 %v11822_v17, %v11786_v13  ;;  %10820 = vmatmul.mubr.msk.f32.gmra.mxu0 %vm1716_vm1, %v12043_v61  ;;  %v12075_v13 = vld [vmem:[#allocation2 + $0x81] sm:$0xff]  ;;  %v12133_v28 = vld [vmem:[#allocation2 + $0xb0] sm:$0xff] }
  0x92   : > { %v1887_v35 = vadd.f32 %v11826_v19, %v1851_v62  ;;  %10870 = vmatmul.mubr.msk.f32.gmra.mxu1 %vm1716_vm1, %v12045_v27  ;;  %1994 = vst.msk [vmem:[#allocation2 + $0x121] sm:$0xff] %vm1716_vm1, %v1920_v1  ;;  %v1888_v46 = vadd.f32 %v11826_v19, %v1852_v12  ;;  %v1889_v5 = vadd.f32 %v11826_v19, %v1853_v34  ;;  %v12117_v59 = vld [vmem:[#allocation2 + $0xa8] sm:$0xff]  ;;  %v12138_v62 = vld [vmem:[#allocation2 + $0xc0] sm:$0xff] }
  0x93   : > { %v1890_v50 = vadd.f32 %v11826_v19, %v1854_v16  ;;  %10822 = vmatprep.mubr.msk.f32.mxu0 %vm1716_vm1, %v12050_v60  ;;  %10872 = vmatprep.mubr.msk.f32.mxu1 %vm1716_vm1, %v12052_v2  ;;  %1995 = vst.msk [vmem:[#allocation2 + $0x129] sm:$0xff] %vm1716_vm1, %v1921_v38  ;;  %v1922_v58 = vmax.f32 %v1886_v25, %v11829_v21  ;;  %15080 = vst [vmem:[#allocation7_spill] sm:$0xff] %v12117_v59  ;;  %v12136_v29 = vld [vmem:[#allocation2 + $0xc1] sm:$0xff] }
  0x94   : > { %v1923_v37 = vmax.f32 %v1887_v35, %v11829_v21  ;;  %v1855_v6 = vmul.f32 %v11820_v15, %v1819_v4  ;;  %v1924_v8 = vmax.f32 %v1888_v46, %v11829_v21  ;;  %v1925_v9 = vmax.f32 %v1889_v5, %v11829_v21  ;;  %15081 = vst [vmem:[#allocation8_spill] sm:$0xff] %v12138_v62  ;;  %v12152_v1 = vld [vmem:[#allocation2 + $0xc8] sm:$0xff]  ;;  %v12154_v12 = vld [vmem:[#allocation2 + $0xd9] sm:$0xff] }
  0x95   : > { %v1926_v26 = vmax.f32 %v1890_v50, %v11829_v21  ;;  %v1820_v43 = vmul.f32 %v11822_v17, %v11792_v18  ;;  %1996 = vst.msk [vmem:[#allocation2 + $0x139] sm:$0xff] %vm1716_vm1, %v1922_v58  ;;  %v1821_v45 = vmul.f32 %v11822_v17, %v11798_v24  ;;  %10823 = vmatmul.mubr.msk.f32.gmra.mxu0 %vm1716_vm1, %v12075_v13  ;;  %v12109_v24 = vld [vmem:[#allocation2 + $0x99] sm:$0xff]  ;;  %15082 = vst [vmem:[#allocation9_spill] sm:$0xff] %v12152_v1  ;;  %v12166_v16 = vld [vmem:[#allocation2 + $0xe1] sm:$0xff] }
  0x96   : > { %1997 = vst.msk [vmem:[#allocation2 + $0x141] sm:$0xff] %vm1716_vm1, %v1923_v37  ;;  %v1891_v44 = vadd.f32 %v11826_v19, %v1855_v6  ;;  %10873 = vmatmul.mubr.msk.f32.gmra.mxu1 %vm1716_vm1, %v12077_v54  ;;  %1998 = vst.msk [vmem:[#allocation2 + $0x151] sm:$0xff] %vm1716_vm1, %v1924_v8  ;;  %10825 = vmatprep.mubr.msk.f32.mxu0 %vm1716_vm1, %v12083_v31  ;;  %v12111_v17 = vld [vmem:[#allocation2 + $0x98] sm:$0xff]  ;;  %v12168_v38 = vld [vmem:[#allocation2 + $0xe0] sm:$0xff] }
  0x97   : > { %1999 = vst.msk [vmem:[#allocation2 + $0x159] sm:$0xff] %vm1716_vm1, %v1925_v9  ;;  %2000 = vst.msk [vmem:[#allocation2 + $0x169] sm:$0xff] %vm1716_vm1, %v1926_v26  ;;  %v1856_v18 = vmul.f32 %v11820_v15, %v1820_v43  ;;  %10875 = vmatprep.mubr.msk.f32.mxu1 %vm1716_vm1, %v12085_v39  ;;  %v1857_v56 = vmul.f32 %v11820_v15, %v1821_v45  ;;  %v12131_v15 = vld [vmem:[#allocation2 + $0xb1] sm:$0xff]  ;;  %v12182_v4 = vld [vmem:[#allocation2 + $0xf9] sm:$0xff] }
  0x98   : > { %15079 = vst [vmem:[#allocation6_spill] sm:$0xff] %v12111_v17  ;;  %v1927_v47 = vmax.f32 %v1891_v44, %v11829_v21  ;;  %v12156_v34 = vld [vmem:[#allocation2 + $0xd8] sm:$0xff]  ;;  %15084 = vst [vmem:[#allocation11_spill] sm:$0xff] %v12168_v38  ;;  %v12172_v35 = vld [vmem:[#allocation2 + $0xf0] sm:$0xff] }
  0x99   : > { %v1892_v41 = vadd.f32 %v11826_v19, %v1856_v18  ;;  %v1893_v48 = vadd.f32 %v11826_v19, %v1857_v56  ;;  %10826 = vmatmul.mubr.msk.f32.gmra.mxu0 %vm1716_vm1, %v12109_v24  ;;  %15083 = vst [vmem:[#allocation10_spill] sm:$0xff] %v12156_v34  ;;  %v12170_v25 = vld [vmem:[#allocation2 + $0xf1] sm:$0xff]  ;;  %15085 = vst [vmem:[#allocation12_spill] sm:$0xff] %v12172_v35  ;;  %v12186_v5 = vld [vmem:[#allocation2 + $0x109] sm:$0xff] }
  0x9a   : > { %2001 = vst.msk [vmem:[#allocation2 + $0x171] sm:$0xff] %vm1716_vm1, %v1927_v47  ;;  %10876 = vmatmul.mubr.msk.f32.gmra.mxu1 %vm1716_vm1, %v12111_v17  ;;  %10828 = vmatprep.mubr.msk.f32.mxu0 %vm1716_vm1, %v12115_v57  ;;  %v12184_v46 = vld [vmem:[#allocation2 + $0xf8] sm:$0xff]  ;;  %v12188_v50 = vld [vmem:[#allocation2 + $0x108] sm:$0xff]  ;;  %v12200_v37 = vld [vmem:[#allocation2 + $0x110] sm:$0xff] }
  0x9b   : > { %v1928_v55 = vmax.f32 %v1892_v41, %v11829_v21  ;;  %10878 = vmatprep.mubr.msk.f32.mxu1 %vm1716_vm1, %v12117_v59  ;;  %v1929_v19 = vmax.f32 %v1893_v48, %v11829_v21  ;;  %v12150_v21 = vld [vmem:[#allocation2 + $0xc9] sm:$0xff]  ;;  %15086 = vst [vmem:[#allocation13_spill] sm:$0xff] %v12184_v46  ;;  %15087 = vst [vmem:[#allocation14_spill] sm:$0xff] %v12188_v50  ;;  %v12198_v58 = vld [vmem:[#allocation2 + $0x111] sm:$0xff] }
  0x9c   : > { %15088 = vst [vmem:[#allocation15_spill] sm:$0xff] %v12200_v37  ;;  %v12202_v6 = vld [vmem:[#allocation2 + $0x121] sm:$0xff]  ;;  %v12214_v9 = vld [vmem:[#allocation2 + $0x129] sm:$0xff]  ;;  %v12218_v43 = vld [vmem:[#allocation2 + $0x139] sm:$0xff] }
  0x9d   : > { %2002 = vst.msk [vmem:[#allocation2 + $0x181] sm:$0xff] %vm1716_vm1, %v1928_v55  ;;  %2003 = vst.msk [vmem:[#allocation2 + $0x189] sm:$0xff] %vm1716_vm1, %v1929_v19  ;;  %10829 = vmatmul.mubr.msk.f32.gmra.mxu0 %vm1716_vm1, %v12131_v15  ;;  %v12204_v8 = vld [vmem:[#allocation2 + $0x120] sm:$0xff]  ;;  %v12216_v26 = vld [vmem:[#allocation2 + $0x128] sm:$0xff] }
  0x9e   : > { %10879 = vmatmul.mubr.msk.f32.gmra.mxu1 %vm1716_vm1, %v12133_v28  ;;  %10831 = vmatprep.mubr.msk.f32.mxu0 %vm1716_vm1, %v12136_v29  ;;  %15089 = vst [vmem:[#allocation16_spill] sm:$0xff] %v12204_v8  ;;  %15090 = vst [vmem:[#allocation17_spill] sm:$0xff] %v12216_v26  ;;  %v12220_v44 = vld [vmem:[#allocation2 + $0x138] sm:$0xff]  ;;  %v12230_v45 = vld [vmem:[#allocation2 + $0x141] sm:$0xff] }
  0x9f   : > { %10881 = vmatprep.mubr.msk.f32.mxu1 %vm1716_vm1, %v12138_v62  ;;  %15091 = vst [vmem:[#allocation18_spill] sm:$0xff] %v12220_v44  ;;  %v12232_v18 = vld [vmem:[#allocation2 + $0x140] sm:$0xff]  ;;  %v12234_v47 = vld [vmem:[#allocation2 + $0x151] sm:$0xff]  ;;  %v12250_v55 = vld [vmem:[#allocation2 + $0x169] sm:$0xff] }
  0xa0   : > { %15092 = vst [vmem:[#allocation19_spill] sm:$0xff] %v12232_v18  ;;  %v12236_v56 = vld [vmem:[#allocation2 + $0x150] sm:$0xff]  ;;  %v12246_v41 = vld [vmem:[#allocation2 + $0x159] sm:$0xff]  ;;  %15096 = vst [vmem:[#allocation23_spill] sm:$0xff] %v12250_v55 }
  0xa1   : > { %10832 = vmatmul.mubr.msk.f32.gmra.mxu0 %vm1716_vm1, %v12150_v21  ;;  %15093 = vst [vmem:[#allocation20_spill] sm:$0xff] %v12236_v56  ;;  %15094 = vst [vmem:[#allocation21_spill] sm:$0xff] %v12246_v41  ;;  %v12248_v48 = vld [vmem:[#allocation2 + $0x158] sm:$0xff]  ;;  %v12252_v19 = vld [vmem:[#allocation2 + $0x168] sm:$0xff] }
  0xa2   : > { %10882 = vmatmul.mubr.msk.f32.gmra.mxu1 %vm1716_vm1, %v12152_v1  ;;  %10834 = vmatprep.mubr.msk.f32.mxu0 %vm1716_vm1, %v12154_v12  ;;  %15095 = vst [vmem:[#allocation22_spill] sm:$0xff] %v12248_v48  ;;  %v12262_v11 = vld [vmem:[#allocation2 + $0x171] sm:$0xff] }
  0xa3   : > { %10884 = vmatprep.mubr.msk.f32.mxu1 %vm1716_vm1, %v12156_v34  ;;  %15097 = vst [vmem:[#allocation24_spill] sm:$0xff] %v12262_v11  ;;  %v12264_v3 = vld [vmem:[#allocation2 + $0x170] sm:$0xff] }
  0xa5   : > { %10835 = vmatmul.mubr.msk.f32.gmra.mxu0 %vm1716_vm1, %v12166_v16 }
  0xa6   : > { %10885 = vmatmul.mubr.msk.f32.gmra.mxu1 %vm1716_vm1, %v12168_v38  ;;  %10837 = vmatprep.mubr.msk.f32.mxu0 %vm1716_vm1, %v12170_v25 }
  0xa7   : > { %10887 = vmatprep.mubr.msk.f32.mxu1 %vm1716_vm1, %v12172_v35 }
  0xa9   : > { %10838 = vmatmul.mubr.msk.f32.gmra.mxu0 %vm1716_vm1, %v12182_v4 }
  0xaa   : > { %10888 = vmatmul.mubr.msk.f32.gmra.mxu1 %vm1716_vm1, %v12184_v46  ;;  %10840 = vmatprep.mubr.msk.f32.mxu0 %vm1716_vm1, %v12186_v5 }
  0xab   : > { %10890 = vmatprep.mubr.msk.f32.mxu1 %vm1716_vm1, %v12188_v50 }
  0xad   : > { %10841 = vmatmul.mubr.msk.f32.gmra.mxu0 %vm1716_vm1, %v12198_v58 }
  0xae   : > { %10891 = vmatmul.mubr.msk.f32.gmra.mxu1 %vm1716_vm1, %v12200_v37  ;;  %10843 = vmatprep.mubr.msk.f32.mxu0 %vm1716_vm1, %v12202_v6 }
  0xaf   : > { %10893 = vmatprep.mubr.msk.f32.mxu1 %vm1716_vm1, %v12204_v8 }
  0xb1   : > { %10844 = vmatmul.mubr.msk.f32.gmra.mxu0 %vm1716_vm1, %v12214_v9 }
  0xb2   : > { %10894 = vmatmul.mubr.msk.f32.gmra.mxu1 %vm1716_vm1, %v12216_v26  ;;  %10846 = vmatprep.mubr.msk.f32.mxu0 %vm1716_vm1, %v12218_v43 }
  0xb3   : > { %10896 = vmatprep.mubr.msk.f32.mxu1 %vm1716_vm1, %v12220_v44 }
  0xb5   : > { %10847 = vmatmul.mubr.msk.f32.gmra.mxu0 %vm1716_vm1, %v12230_v45 }
  0xb6   : > { %10897 = vmatmul.mubr.msk.f32.gmra.mxu1 %vm1716_vm1, %v12232_v18  ;;  %10849 = vmatprep.mubr.msk.f32.mxu0 %vm1716_vm1, %v12234_v47 }
  0xb7   : > { %10899 = vmatprep.mubr.msk.f32.mxu1 %vm1716_vm1, %v12236_v56 }
  0xb9   : > { %10850 = vmatmul.mubr.msk.f32.gmra.mxu0 %vm1716_vm1, %v12246_v41 }
  0xba   : > { %10900 = vmatmul.mubr.msk.f32.gmra.mxu1 %vm1716_vm1, %v12248_v48  ;;  %10852 = vmatprep.mubr.msk.f32.mxu0 %vm1716_vm1, %v12250_v55  ;;  %v12273_v55 = vld [vmem:[#allocation2 + $0x1a] sm:$0xff] }
  0xbb   : > { %10902 = vmatprep.mubr.msk.f32.mxu1 %vm1716_vm1, %v12252_v19 }
  0xbd   : > { %10853 = vmatmul.mubr.msk.f32.gmra.mxu0 %vm1716_vm1, %v12262_v11  ;;  %v12281_v11 = vld [vmem:[%s14990_s2 + $0x18] sm:$0xf] }
  0xbe   : > { %10903 = vmatmul.mubr.msk.f32.gmra.mxu1 %vm1716_vm1, %v12264_v3  ;;  %10907 = vmatprep.mubr.msk.f32.mxu0 %vm1716_vm1, %v2719_v14  ;;  %v12286_v14 = vld [vmem:[%s14990_s2 + $0x1c] sm:$0xf] }
  0xbf   : > { %10957 = vmatprep.mubr.msk.f32.mxu1 %vm1716_vm1, %v11924_v52  ;;  %v12296_v52 = vld [vmem:[#allocation2 + $0x32] sm:$0xff] }
  0xc1   : > { %10908 = vmatmul.mubr.msk.f32.vlgmr.msra.gmra.mxu0 %vm1716_vm1, %v2720_v0  ;;  %v12292_v0 = vld [vmem:[#allocation2 + $0x22] sm:$0xff] }
  0xc2   : > { %10958 = vmatmul.mubr.msk.f32.vlgmr.msra.gmra.mxu1 %vm1716_vm1, %v11936_v63  ;;  %11006 = vmatpush3.msk.msra.mxu0 %vm2166_vm0, %v11759_v51  ;;  %v12310_v51 = vld [vmem:[#allocation2 + $0x3a] sm:$0xff]  ;;  %v12322_v63 = vld [vmem:[#allocation2 + $0x52] sm:$0xff] }
  0xc3   : > { %10910 = vmatprep.mubr.msk.f32.mxu0 %vm1716_vm1, %v12273_v55  ;;  %10960 = vmatprep.mubr.msk.f32.mxu1 %vm1716_vm1, %v11940_v23  ;;  %v12326_v23 = vld [vmem:[#allocation2 + $0x62] sm:$0xff] }
  0xc4   : > { %11056 = vmatpush3.msk.msra.mxu1 %vm2166_vm0, %v11898_v33  ;;  %11105 = vmatprep.subr.msk.mxu0 %vm2166_vm0, %v12281_v11  ;;  %v12314_v33 = vld [vmem:[#allocation2 + $0x4a] sm:$0xff] }
  0xc5   : > { %11155 = vmatprep.subr.msk.mxu1 %vm2166_vm0, %v12286_v14  ;;  %10911 = vmatmul.mubr.msk.f32.gmra.mxu0 %vm1716_vm1, %v12292_v0 }
  0xc6   : > { %10961 = vmatmul.mubr.msk.f32.gmra.mxu1 %vm1716_vm1, %v11972_v30  ;;  %10913 = vmatprep.mubr.msk.f32.mxu0 %vm1716_vm1, %v12296_v52  ;;  %v12334_v30 = vld [vmem:[#allocation2 + $0x6a] sm:$0xff] }
  0xc7   : > { %10963 = vmatprep.mubr.msk.f32.mxu1 %vm1716_vm1, %v11979_v42  ;;  %v12338_v42 = vld [vmem:[#allocation2 + $0x7a] sm:$0xff] }
  0xc9   : > { %10914 = vmatmul.mubr.msk.f32.gmra.mxu0 %vm1716_vm1, %v12310_v51 }
  0xca   : > { %10964 = vmatmul.mubr.msk.f32.gmra.mxu1 %vm1716_vm1, %v12004_v36  ;;  %10916 = vmatprep.mubr.msk.f32.mxu0 %vm1716_vm1, %v12314_v33  ;;  %v12346_v36 = vld [vmem:[#allocation2 + $0x82] sm:$0xff] }
  0xcb   : > { %10966 = vmatprep.mubr.msk.f32.mxu1 %vm1716_vm1, %v12011_v22  ;;  %v12350_v22 = vld [vmem:[#allocation2 + $0x92] sm:$0xff] }
  0xcd   : > { %10917 = vmatmul.mubr.msk.f32.gmra.mxu0 %vm1716_vm1, %v12322_v63 }
  0xce   : > { %10967 = vmatmul.mubr.msk.f32.gmra.mxu1 %vm1716_vm1, %v12045_v27  ;;  %10919 = vmatprep.mubr.msk.f32.mxu0 %vm1716_vm1, %v12326_v23  ;;  %v12358_v27 = vld [vmem:[#allocation2 + $0x9a] sm:$0xff] }
  0xcf   : > { %10969 = vmatprep.mubr.msk.f32.mxu1 %vm1716_vm1, %v12052_v2  ;;  %v12362_v2 = vld [vmem:[#allocation2 + $0xaa] sm:$0xff] }
  0xd1   : > { %10920 = vmatmul.mubr.msk.f32.gmra.mxu0 %vm1716_vm1, %v12334_v30 }
  0xd2   : > { %10970 = vmatmul.mubr.msk.f32.gmra.mxu1 %vm1716_vm1, %v12077_v54  ;;  %10922 = vmatprep.mubr.msk.f32.mxu0 %vm1716_vm1, %v12338_v42 }
  0xd3   : > { %10972 = vmatprep.mubr.msk.f32.mxu1 %vm1716_vm1, %v12085_v39 }
  0xd5   : > { %10923 = vmatmul.mubr.msk.f32.gmra.mxu0 %vm1716_vm1, %v12346_v36 }
  0xd6   : > { %10973 = vmatmul.mubr.msk.f32.gmra.mxu1 %vm1716_vm1, %v12111_v17  ;;  %10925 = vmatprep.mubr.msk.f32.mxu0 %vm1716_vm1, %v12350_v22  ;;  %v12372_v17 = vld [vmem:[#allocation2 + $0xb2] sm:$0xff] }
  0xd7   : > { %10975 = vmatprep.mubr.msk.f32.mxu1 %vm1716_vm1, %v12117_v59  ;;  %v10859_v39 = vpop.f32.mrf.mxu1  ;;  %v12376_v59 = vld [vmem:[#allocation2 + $0xc2] sm:$0xff] }
  0xd8   : > { %v10809_v54 = vpop.f32.mrf.mxu0 }
  0xd9   : > { %10926 = vmatmul.mubr.msk.f32.gmra.mxu0 %vm1716_vm1, %v12358_v27  ;;  %v12368_v41 = vadd.f32 %v10859_v39, %v10809_v54  ;;  %v12384_v54 = vld [vmem:[#allocation2 + $0xca] sm:$0xff]  ;;  %v12388_v39 = vld [vmem:[#allocation2 + $0xda] sm:$0xff] }
  0xda   : > { %10976 = vmatmul.mubr.msk.f32.gmra.mxu1 %vm1716_vm1, %v12133_v28  ;;  %10928 = vmatprep.mubr.msk.f32.mxu0 %vm1716_vm1, %v12362_v2 }
  0xdb   : > { %15098 = vst [vmem:[#allocation25_spill] sm:$0xff] %v12368_v41  ;;  %10978 = vmatprep.mubr.msk.f32.mxu1 %vm1716_vm1, %v12138_v62  ;;  %v12396_v41 = vld [vmem:[#allocation2 + $0xe2] sm:$0xff] }
  0xdc   : > { %v12462_v62 = vld [vmem:[#allocation2 + $0x180] sm:$0xff] }
  0xdd   : > { %10929 = vmatmul.mubr.msk.f32.gmra.mxu0 %vm1716_vm1, %v12372_v17  ;;  %15099 = vst [vmem:[#allocation26_spill] sm:$0xff] %v12462_v62 }
  0xde   : > { %10979 = vmatmul.mubr.msk.f32.gmra.mxu1 %vm1716_vm1, %v12152_v1  ;;  %10931 = vmatprep.mubr.msk.f32.mxu0 %vm1716_vm1, %v12376_v59  ;;  %v12400_v1 = vld [vmem:[#allocation2 + $0xf2] sm:$0xff] }
  0xdf   : > { %10981 = vmatprep.mubr.msk.f32.mxu1 %vm1716_vm1, %v12156_v34  ;;  %v12412_v34 = vld [vmem:[#allocation2 + $0x10a] sm:$0xff] }
  0xe1   : > { %10932 = vmatmul.mubr.msk.f32.gmra.mxu0 %vm1716_vm1, %v12384_v54 }
  0xe2   : > { %10982 = vmatmul.mubr.msk.f32.gmra.mxu1 %vm1716_vm1, %v12168_v38  ;;  %10934 = vmatprep.mubr.msk.f32.mxu0 %vm1716_vm1, %v12388_v39  ;;  %v12408_v38 = vld [vmem:[#allocation2 + $0xfa] sm:$0xff] }
  0xe3   : > { %10984 = vmatprep.mubr.msk.f32.mxu1 %vm1716_vm1, %v12172_v35  ;;  %v12424_v35 = vld [vmem:[#allocation2 + $0x122] sm:$0xff] }
  0xe5   : > { %10935 = vmatmul.mubr.msk.f32.gmra.mxu0 %vm1716_vm1, %v12396_v41 }
  0xe6   : > { %10985 = vmatmul.mubr.msk.f32.gmra.mxu1 %vm1716_vm1, %v12184_v46  ;;  %10937 = vmatprep.mubr.msk.f32.mxu0 %vm1716_vm1, %v12400_v1  ;;  %v12420_v46 = vld [vmem:[#allocation2 + $0x112] sm:$0xff] }
  0xe7   : > { %10987 = vmatprep.mubr.msk.f32.mxu1 %vm1716_vm1, %v12188_v50  ;;  %v12436_v50 = vld [vmem:[#allocation2 + $0x13a] sm:$0xff] }
  0xe9   : > { %10938 = vmatmul.mubr.msk.f32.gmra.mxu0 %vm1716_vm1, %v12408_v38 }
  0xea   : > { %10988 = vmatmul.mubr.msk.f32.gmra.mxu1 %vm1716_vm1, %v12200_v37  ;;  %10940 = vmatprep.mubr.msk.f32.mxu0 %vm1716_vm1, %v12412_v34  ;;  %v12432_v37 = vld [vmem:[#allocation2 + $0x12a] sm:$0xff] }
  0xeb   : > { %10990 = vmatprep.mubr.msk.f32.mxu1 %vm1716_vm1, %v12204_v8  ;;  %v12448_v8 = vld [vmem:[#allocation2 + $0x152] sm:$0xff] }
  0xed   : > { %10941 = vmatmul.mubr.msk.f32.gmra.mxu0 %vm1716_vm1, %v12420_v46 }
  0xee   : > { %10991 = vmatmul.mubr.msk.f32.gmra.mxu1 %vm1716_vm1, %v12216_v26  ;;  %10943 = vmatprep.mubr.msk.f32.mxu0 %vm1716_vm1, %v12424_v35  ;;  %v12444_v26 = vld [vmem:[#allocation2 + $0x142] sm:$0xff] }
  0xef   : > { %10993 = vmatprep.mubr.msk.f32.mxu1 %vm1716_vm1, %v12220_v44  ;;  %v12460_v44 = vld [vmem:[#allocation2 + $0x16a] sm:$0xff] }
  0xf1   : > { %10944 = vmatmul.mubr.msk.f32.gmra.mxu0 %vm1716_vm1, %v12432_v37 }
  0xf2   : > { %10994 = vmatmul.mubr.msk.f32.gmra.mxu1 %vm1716_vm1, %v12232_v18  ;;  %10946 = vmatprep.mubr.msk.f32.mxu0 %vm1716_vm1, %v12436_v50  ;;  %v12456_v18 = vld [vmem:[#allocation2 + $0x15a] sm:$0xff] }
  0xf3   : > { %10996 = vmatprep.mubr.msk.f32.mxu1 %vm1716_vm1, %v12236_v56  ;;  %v12474_v56 = vld [vmem:[#allocation2 + $0x188] sm:$0xff] }
  0xf5   : > { %10947 = vmatmul.mubr.msk.f32.gmra.mxu0 %vm1716_vm1, %v12444_v26 }
  0xf6   : > { %10997 = vmatmul.mubr.msk.f32.gmra.mxu1 %vm1716_vm1, %v12248_v48  ;;  %10949 = vmatprep.mubr.msk.f32.mxu0 %vm1716_vm1, %v12448_v8  ;;  %v12470_v48 = vld [vmem:[#allocation2 + $0x172] sm:$0xff] }
  0xf7   : > { %10999 = vmatprep.mubr.msk.f32.mxu1 %vm1716_vm1, %v12252_v19 }
  0xf9   : > { %10950 = vmatmul.mubr.msk.f32.gmra.mxu0 %vm1716_vm1, %v12456_v18 }
  0xfa   : > { %11000 = vmatmul.mubr.msk.f32.gmra.mxu1 %vm1716_vm1, %v12264_v3  ;;  %10952 = vmatprep.mubr.msk.f32.mxu0 %vm1716_vm1, %v12460_v44 }
  0xfb   : > { %11002 = vmatprep.mubr.msk.f32.mxu1 %vm1716_vm1, %v12462_v62  ;;  %v12491_v62 = vld [vmem:[%s14990_s2 + $0x20] sm:$0xf] }
  0xfd   : > { %10953 = vmatmul.mubr.msk.f32.gmra.mxu0 %vm1716_vm1, %v12470_v48 }
  0xfe   : > { %11003 = vmatmul.mubr.msk.f32.gmra.mxu1 %vm1716_vm1, %v12474_v56  ;;  %11007 = vmatprep.mubr.msk.f32.mxu0 %vm1716_vm1, %v11922_v49  ;;  %v15101_v49 = vld [vmem:[#allocation23_spill] sm:$0xff] }
  0xff   : > { %11057 = vmatprep.mubr.msk.f32.mxu1 %vm1716_vm1, %v12273_v55 }
 0x101   : > { %11008 = vmatmul.mubr.msk.f32.vlgmr.msra.gmra.mxu0 %vm1716_vm1, %v11926_v53  ;;  %v12607_v53 = vld [vmem:[#allocation2 + $0x181] sm:$0xff] }
 0x102   : > { %11058 = vmatmul.mubr.msk.f32.vlgmr.msra.gmra.mxu1 %vm1716_vm1, %v12292_v0  ;;  %11106 = vmatpush3.msk.msra.mxu0 %vm2166_vm0, %v12281_v11  ;;  %v15100_v11 = vld [vmem:[#allocation21_spill] sm:$0xff]  ;;  %v4283_v0 = vld [vmem:[#allocation2 + $0x80] sm:$0xff] }
 0x103   : > { %11010 = vmatprep.mubr.msk.f32.mxu0 %vm1716_vm1, %v11938_v10  ;;  %11060 = vmatprep.mubr.msk.f32.mxu1 %vm1716_vm1, %v12296_v52  ;;  %v12609_v10 = vld [vmem:[#allocation2 + $0x182] sm:$0xff] }
 0x104   : > { %11156 = vmatpush3.msk.msra.mxu1 %vm2166_vm0, %v12286_v14  ;;  %11205 = vmatprep.subr.msk.mxu0 %vm2166_vm0, %v12491_v62 }
 0x105   : > { %11011 = vmatmul.mubr.msk.f32.gmra.mxu0 %vm1716_vm1, %v11970_v32  ;;  %v15102_v32 = vld [vmem:[#allocation24_spill] sm:$0xff] }
 0x106   : > { %11061 = vmatmul.mubr.msk.f32.gmra.mxu1 %vm1716_vm1, %v12310_v51  ;;  %11013 = vmatprep.mubr.msk.f32.mxu0 %vm1716_vm1, %v11977_v20  ;;  %v12617_v20 = vld [vmem:[#allocation2 + $0x189] sm:$0xff] }
 0x107   : > { %11063 = vmatprep.mubr.msk.f32.mxu1 %vm1716_vm1, %v12314_v33 }
 0x109   : > { %11014 = vmatmul.mubr.msk.f32.gmra.mxu0 %vm1716_vm1, %v12002_v7  ;;  %v12621_v7 = vld [vmem:[#allocation2 + $0x18a] sm:$0xff] }
 0x10a   : > { %11064 = vmatmul.mubr.msk.f32.gmra.mxu1 %vm1716_vm1, %v12322_v63  ;;  %11016 = vmatprep.mubr.msk.f32.mxu0 %vm1716_vm1, %v12009_v40  ;;  %v4276_v40 = vld [vmem:[#allocation2 + $0x30] sm:$0xff] }
 0x10b   : > { %11066 = vmatprep.mubr.msk.f32.mxu1 %vm1716_vm1, %v12326_v23 }
 0x10d   : > { %11017 = vmatmul.mubr.msk.f32.gmra.mxu0 %vm1716_vm1, %v12043_v61  ;;  %v4665_v61 = vld [vmem:[#allocation2 + $0x31] sm:$0xff] }
 0x10e   : > { %11067 = vmatmul.mubr.msk.f32.gmra.mxu1 %vm1716_vm1, %v12334_v30  ;;  %11019 = vmatprep.mubr.msk.f32.mxu0 %vm1716_vm1, %v12050_v60  ;;  %v4277_v60 = vld [vmem:[#allocation2 + $0x38] sm:$0xff] }
 0x10f   : > { %11069 = vmatprep.mubr.msk.f32.mxu1 %vm1716_vm1, %v12338_v42 }
 0x111   : > { %11020 = vmatmul.mubr.msk.f32.gmra.mxu0 %vm1716_vm1, %v12075_v13  ;;  %v4666_v13 = vld [vmem:[#allocation2 + $0x39] sm:$0xff] }
 0x112   : > { %11070 = vmatmul.mubr.msk.f32.gmra.mxu1 %vm1716_vm1, %v12346_v36  ;;  %11022 = vmatprep.mubr.msk.f32.mxu0 %vm1716_vm1, %v12083_v31  ;;  %v4278_v31 = vld [vmem:[#allocation2 + $0x48] sm:$0xff] }
 0x113   : > { %11072 = vmatprep.mubr.msk.f32.mxu1 %vm1716_vm1, %v12350_v22 }
 0x115   : > { %11023 = vmatmul.mubr.msk.f32.gmra.mxu0 %vm1716_vm1, %v12109_v24  ;;  %v4667_v24 = vld [vmem:[#allocation2 + $0x49] sm:$0xff] }
 0x116   : > { %11073 = vmatmul.mubr.msk.f32.gmra.mxu1 %vm1716_vm1, %v12358_v27  ;;  %11025 = vmatprep.mubr.msk.f32.mxu0 %vm1716_vm1, %v12115_v57  ;;  %v4279_v57 = vld [vmem:[#allocation2 + $0x50] sm:$0xff] }
 0x117   : > { %11075 = vmatprep.mubr.msk.f32.mxu1 %vm1716_vm1, %v12362_v2 }
 0x119   : > { %11026 = vmatmul.mubr.msk.f32.gmra.mxu0 %vm1716_vm1, %v12131_v15  ;;  %v4668_v15 = vld [vmem:[#allocation2 + $0x51] sm:$0xff] }
 0x11a   : > { %11076 = vmatmul.mubr.msk.f32.gmra.mxu1 %vm1716_vm1, %v12372_v17  ;;  %11028 = vmatprep.mubr.msk.f32.mxu0 %vm1716_vm1, %v12136_v29  ;;  %v12634_v29 = vpop.f32.mrf.mxu0 }
 0x11b   : > { %11078 = vmatprep.mubr.msk.f32.mxu1 %vm1716_vm1, %v12376_v59 }
 0x11d   : > { %11029 = vmatmul.mubr.msk.f32.gmra.mxu0 %vm1716_vm1, %v12150_v21 }
 0x11e   : > { %11079 = vmatmul.mubr.msk.f32.gmra.mxu1 %vm1716_vm1, %v12384_v54  ;;  %11031 = vmatprep.mubr.msk.f32.mxu0 %vm1716_vm1, %v12154_v12 }
 0x11f   : > { %11081 = vmatprep.mubr.msk.f32.mxu1 %vm1716_vm1, %v12388_v39 }
 0x121   : > { %11032 = vmatmul.mubr.msk.f32.gmra.mxu0 %vm1716_vm1, %v12166_v16 }
 0x122   : > { %11082 = vmatmul.mubr.msk.f32.gmra.mxu1 %vm1716_vm1, %v12396_v41  ;;  %11034 = vmatprep.mubr.msk.f32.mxu0 %vm1716_vm1, %v12170_v25 }
 0x123   : > { %11084 = vmatprep.mubr.msk.f32.mxu1 %vm1716_vm1, %v12400_v1  ;;  %v12636_v1 = vpop.f32.mrf.mxu1 }
 0x124   : > { %15103 = vst [vmem:[#allocation21_spill] sm:$0xff] %v12636_v1 }
 0x125   : > { %11035 = vmatmul.mubr.msk.f32.gmra.mxu0 %vm1716_vm1, %v12182_v4 }
 0x126   : > { %11085 = vmatmul.mubr.msk.f32.gmra.mxu1 %vm1716_vm1, %v12408_v38  ;;  %11037 = vmatprep.mubr.msk.f32.mxu0 %vm1716_vm1, %v12186_v5  ;;  %v4669_v38 = vld [vmem:[#allocation2 + $0x61] sm:$0xff] }
 0x127   : > { %11087 = vmatprep.mubr.msk.f32.mxu1 %vm1716_vm1, %v12412_v34  ;;  %v4280_v34 = vld [vmem:[#allocation2 + $0x60] sm:$0xff] }
 0x129   : > { %11038 = vmatmul.mubr.msk.f32.gmra.mxu0 %vm1716_vm1, %v12198_v58 }
 0x12a   : > { %11088 = vmatmul.mubr.msk.f32.gmra.mxu1 %vm1716_vm1, %v12420_v46  ;;  %11040 = vmatprep.mubr.msk.f32.mxu0 %vm1716_vm1, %v12202_v6 }
 0x12b   : > { %11090 = vmatprep.mubr.msk.f32.mxu1 %vm1716_vm1, %v12424_v35 }
 0x12d   : > { %11041 = vmatmul.mubr.msk.f32.gmra.mxu0 %vm1716_vm1, %v12214_v9 }
 0x12e   : > { %11091 = vmatmul.mubr.msk.f32.gmra.mxu1 %vm1716_vm1, %v12432_v37  ;;  %11043 = vmatprep.mubr.msk.f32.mxu0 %vm1716_vm1, %v12218_v43  ;;  %v4670_v37 = vld [vmem:[#allocation2 + $0x69] sm:$0xff] }
 0x12f   : > { %11093 = vmatprep.mubr.msk.f32.mxu1 %vm1716_vm1, %v12436_v50 }
 0x131   : > { %11044 = vmatmul.mubr.msk.f32.gmra.mxu0 %vm1716_vm1, %v12230_v45 }
 0x132   : > { %11094 = vmatmul.mubr.msk.f32.gmra.mxu1 %vm1716_vm1, %v12444_v26  ;;  %11046 = vmatprep.mubr.msk.f32.mxu0 %vm1716_vm1, %v12234_v47 }
 0x133   : > { %11096 = vmatprep.mubr.msk.f32.mxu1 %vm1716_vm1, %v12448_v8 }
 0x135   : > { %11047 = vmatmul.mubr.msk.f32.gmra.mxu0 %vm1716_vm1, %v15100_v11 }
 0x136   : > { %11097 = vmatmul.mubr.msk.f32.gmra.mxu1 %vm1716_vm1, %v12456_v18  ;;  %11049 = vmatprep.mubr.msk.f32.mxu0 %vm1716_vm1, %v15101_v49  ;;  %v4671_v18 = vld [vmem:[#allocation2 + $0x79] sm:$0xff] }
 0x137   : > { %11099 = vmatprep.mubr.msk.f32.mxu1 %vm1716_vm1, %v12460_v44  ;;  %v4282_v44 = vld [vmem:[#allocation2 + $0x78] sm:$0xff] }
 0x139   : > { %11050 = vmatmul.mubr.msk.f32.gmra.mxu0 %vm1716_vm1, %v15102_v32 }
 0x13a   : > { %11100 = vmatmul.mubr.msk.f32.gmra.mxu1 %vm1716_vm1, %v12470_v48  ;;  %11052 = vmatprep.mubr.msk.f32.mxu0 %vm1716_vm1, %v12607_v53 }
 0x13b   : > { %11102 = vmatprep.mubr.msk.f32.mxu1 %vm1716_vm1, %v12609_v10 }
 0x13d   : > { %11053 = vmatmul.mubr.msk.f32.gmra.mxu0 %vm1716_vm1, %v12617_v20 }
 0x13e   : > { %11103 = vmatmul.mubr.msk.f32.gmra.mxu1 %vm1716_vm1, %v12621_v7  ;;  %11107 = vmatprep.mubr.msk.f32.mxu0 %vm1716_vm1, %v4276_v40  ;;  %v4672_v40 = vld [vmem:[#allocation2 + $0x81] sm:$0xff] }
 0x13f   : > { %11157 = vmatprep.mubr.msk.f32.mxu1 %vm1716_vm1, %v4665_v61 }
 0x141   : > { %11108 = vmatmul.mubr.msk.f32.vlgmr.msra.gmra.mxu0 %vm1716_vm1, %v4277_v60 }
 0x142   : > { %11158 = vmatmul.mubr.msk.f32.vlgmr.msra.gmra.mxu1 %vm1716_vm1, %v4666_v13  ;;  %11206 = vmatpush3.msk.msra.mxu0 %vm2166_vm0, %v12491_v62  ;;  %v4281_v62 = vld [vmem:[#allocation2 + $0x68] sm:$0xff]  ;;  %v4284_v13 = vld [vmem:[#allocation2 + $0x90] sm:$0xff] }
 0x143   : > { %11110 = vmatprep.mubr.msk.f32.mxu0 %vm1716_vm1, %v4278_v31  ;;  %11160 = vmatprep.mubr.msk.f32.mxu1 %vm1716_vm1, %v4667_v24  ;;  %v4673_v31 = vld [vmem:[#allocation2 + $0x91] sm:$0xff] }
 0x145   : > { %v10812_v35 = vpop.f32.mrf.mxu0  ;;  %v10862_v46 = vpop.f32.mrf.mxu1  ;;  %11111 = vmatmul.mubr.msk.f32.gmra.mxu0 %vm1716_vm1, %v4279_v57 }
 0x146   : > { %11161 = vmatmul.mubr.msk.f32.gmra.mxu1 %vm1716_vm1, %v4668_v15  ;;  %v12641_v50 = vadd.f32 %v10862_v46, %v10812_v35  ;;  %11113 = vmatprep.mubr.msk.f32.mxu0 %vm1716_vm1, %v4280_v34 }
 0x147   : > { %11163 = vmatprep.mubr.msk.f32.mxu1 %vm1716_vm1, %v4669_v38  ;;  %v2246_v8 = vpop.f32.mrf.mxu0  ;;  %v2570_v26 = vpop.f32.mrf.mxu1  ;;  %v4674_v38 = vld [vmem:[#allocation2 + $0x99] sm:$0xff] }
 0x148   : > { %v12645_v41 = vadd.f32 %v2570_v26, %v2246_v8 }
 0x149   : > { %v10815_v48 = vpop.f32.mrf.mxu0  ;;  %v10865_v55 = vpop.f32.mrf.mxu1  ;;  %11114 = vmatmul.mubr.msk.f32.gmra.mxu0 %vm1716_vm1, %v4281_v62  ;;  %v4675_v62 = vld [vmem:[#allocation2 + $0xa9] sm:$0xff] }
 0x14a   : > { %11164 = vmatmul.mubr.msk.f32.gmra.mxu1 %vm1716_vm1, %v4670_v37  ;;  %v12649_v14 = vadd.f32 %v10865_v55, %v10815_v48  ;;  %11116 = vmatprep.mubr.msk.f32.mxu0 %vm1716_vm1, %v4282_v44  ;;  %v15104_v44 = vld [vmem:[#allocation6_spill] sm:$0xff]  ;;  %v15105_v48 = vld [vmem:[#allocation7_spill] sm:$0xff]  ;;  %v4676_v55 = vld [vmem:[#allocation2 + $0xb1] sm:$0xff] }
 0x14b   : > { %11166 = vmatprep.mubr.msk.f32.mxu1 %vm1716_vm1, %v4671_v18  ;;  %v2256_v61 = vpop.f32.mrf.mxu0  ;;  %v2580_v60 = vpop.f32.mrf.mxu1 }
 0x14c   : > { %v12653_v24 = vadd.f32 %v2580_v60, %v2256_v61  ;;  %v4677_v61 = vld [vmem:[#allocation2 + $0xc1] sm:$0xff] }
 0x14d   : > { %v10818_v57 = vpop.f32.mrf.mxu0  ;;  %11117 = vmatmul.mubr.msk.f32.gmra.mxu0 %vm1716_vm1, %v4283_v0 }
 0x14e   : > { %v10868_v15 = vpop.f32.mrf.mxu1  ;;  %11167 = vmatmul.mubr.msk.f32.gmra.mxu1 %vm1716_vm1, %v4672_v40  ;;  %11119 = vmatprep.mubr.msk.f32.mxu0 %vm1716_vm1, %v4284_v13 }
 0x14f   : > { %v12657_v34 = vadd.f32 %v10868_v15, %v10818_v57  ;;  %11169 = vmatprep.mubr.msk.f32.mxu1 %vm1716_vm1, %v4673_v31  ;;  %v2266_v35 = vpop.f32.mrf.mxu0  ;;  %v15106_v15 = vld [vmem:[#allocation8_spill] sm:$0xff] }
 0x150   : > { %v2590_v46 = vpop.f32.mrf.mxu1 }
 0x151   : > { %v12661_v37 = vadd.f32 %v2590_v46, %v2266_v35  ;;  %v10821_v8 = vpop.f32.mrf.mxu0  ;;  %11120 = vmatmul.mubr.msk.f32.gmra.mxu0 %vm1716_vm1, %v15104_v44  ;;  %v15108_v44 = vld [vmem:[#allocation10_spill] sm:$0xff] }
 0x152   : > { %v10871_v26 = vpop.f32.mrf.mxu1  ;;  %11170 = vmatmul.mubr.msk.f32.gmra.mxu1 %vm1716_vm1, %v4674_v38  ;;  %11122 = vmatprep.mubr.msk.f32.mxu0 %vm1716_vm1, %v15105_v48 }
 0x153   : > { %v12666_v18 = vadd.f32 %v10871_v26, %v10821_v8  ;;  %11172 = vmatprep.mubr.msk.f32.mxu1 %vm1716_vm1, %v4675_v62  ;;  %v2276_v0 = vpop.f32.mrf.mxu0  ;;  %v15107_v26 = vld [vmem:[#allocation9_spill] sm:$0xff] }
 0x154   : > { %v2600_v40 = vpop.f32.mrf.mxu1 }
 0x155   : > { %v12671_v60 = vadd.f32 %v2600_v40, %v2276_v0  ;;  %v10824_v13 = vpop.f32.mrf.mxu0  ;;  %11123 = vmatmul.mubr.msk.f32.gmra.mxu0 %vm1716_vm1, %v12133_v28 }
 0x156   : > { %v10874_v31 = vpop.f32.mrf.mxu1  ;;  %11173 = vmatmul.mubr.msk.f32.gmra.mxu1 %vm1716_vm1, %v4676_v55  ;;  %11125 = vmatprep.mubr.msk.f32.mxu0 %vm1716_vm1, %v15106_v15 }
 0x157   : > { %v12676_v57 = vadd.f32 %v10874_v31, %v10824_v13  ;;  %11175 = vmatprep.mubr.msk.f32.mxu1 %vm1716_vm1, %v4677_v61  ;;  %v2286_v38 = vpop.f32.mrf.mxu0  ;;  %v15109_v13 = vld [vmem:[#allocation11_spill] sm:$0xff]  ;;  %v15110_v31 = vld [vmem:[#allocation12_spill] sm:$0xff] }
 0x158   : > { %v2610_v35 = vpop.f32.mrf.mxu1 }
 0x159   : > { %v12681_v46 = vadd.f32 %v2610_v35, %v2286_v38  ;;  %v10827_v62 = vpop.f32.mrf.mxu0  ;;  %11126 = vmatmul.mubr.msk.f32.gmra.mxu0 %vm1716_vm1, %v15107_v26  ;;  %v15112_v26 = vld [vmem:[#allocation14_spill] sm:$0xff] }
 0x15a   : > { %v10877_v8 = vpop.f32.mrf.mxu1  ;;  %11176 = vmatmul.mubr.msk.f32.gmra.mxu1 %vm1716_vm1, %v12150_v21  ;;  %11128 = vmatprep.mubr.msk.f32.mxu0 %vm1716_vm1, %v15108_v44 }
 0x15b   : > { %v12687_v28 = vadd.f32 %v10877_v8, %v10827_v62  ;;  %11178 = vmatprep.mubr.msk.f32.mxu1 %vm1716_vm1, %v12154_v12  ;;  %v2296_v48 = vpop.f32.mrf.mxu0  ;;  %v15111_v8 = vld [vmem:[#allocation13_spill] sm:$0xff] }
 0x15c   : > { %v2620_v55 = vpop.f32.mrf.mxu1 }
 0x15d   : > { %v12693_v0 = vadd.f32 %v2620_v55, %v2296_v48  ;;  %v10830_v40 = vpop.f32.mrf.mxu0  ;;  %11129 = vmatmul.mubr.msk.f32.gmra.mxu0 %vm1716_vm1, %v15109_v13 }
 0x15e   : > { %v10880_v61 = vpop.f32.mrf.mxu1  ;;  %11179 = vmatmul.mubr.msk.f32.gmra.mxu1 %vm1716_vm1, %v12166_v16  ;;  %11131 = vmatprep.mubr.msk.f32.mxu0 %vm1716_vm1, %v15110_v31 }
 0x15f   : > { %v12699_v21 = vadd.f32 %v10880_v61, %v10830_v40  ;;  %11181 = vmatprep.mubr.msk.f32.mxu1 %vm1716_vm1, %v12170_v25  ;;  %v2306_v12 = vpop.f32.mrf.mxu0  ;;  %v15113_v40 = vld [vmem:[#allocation15_spill] sm:$0xff]  ;;  %v15114_v61 = vld [vmem:[#allocation16_spill] sm:$0xff] }
 0x160   : > { %v2630_v15 = vpop.f32.mrf.mxu1 }
 0x161   : > { %v12705_v38 = vadd.f32 %v2630_v15, %v2306_v12  ;;  %v10833_v35 = vpop.f32.mrf.mxu0  ;;  %11132 = vmatmul.mubr.msk.f32.gmra.mxu0 %vm1716_vm1, %v15111_v8  ;;  %v15115_v15 = vld [vmem:[#allocation17_spill] sm:$0xff] }
 0x162   : > { %v10883_v62 = vpop.f32.mrf.mxu1  ;;  %11182 = vmatmul.mubr.msk.f32.gmra.mxu1 %vm1716_vm1, %v12182_v4  ;;  %11134 = vmatprep.mubr.msk.f32.mxu0 %vm1716_vm1, %v15112_v26 }
 0x163   : > { %v12711_v16 = vadd.f32 %v10883_v62, %v10833_v35  ;;  %11184 = vmatprep.mubr.msk.f32.mxu1 %vm1716_vm1, %v12186_v5  ;;  %v12717_v25 = vpop.f32.mrf.mxu0  ;;  %v15116_v35 = vld [vmem:[#allocation18_spill] sm:$0xff] }
 0x164   : > { %v12719_v44 = vpop.f32.mrf.mxu1 }
 0x165   : > { %v10836_v48 = vpop.f32.mrf.mxu0  ;;  %11135 = vmatmul.mubr.msk.f32.gmra.mxu0 %vm1716_vm1, %v15113_v40 }
 0x166   : > { %v10886_v55 = vpop.f32.mrf.mxu1  ;;  %11185 = vmatmul.mubr.msk.f32.gmra.mxu1 %vm1716_vm1, %v12198_v58  ;;  %11137 = vmatprep.mubr.msk.f32.mxu0 %vm1716_vm1, %v15114_v61 }
 0x167   : > { %v12725_v4 = vadd.f32 %v10886_v55, %v10836_v48  ;;  %11187 = vmatprep.mubr.msk.f32.mxu1 %vm1716_vm1, %v12202_v6  ;;  %v12731_v5 = vpop.f32.mrf.mxu0  ;;  %v15117_v48 = vld [vmem:[#allocation19_spill] sm:$0xff]  ;;  %v15118_v55 = vld [vmem:[#allocation20_spill] sm:$0xff] }
 0x168   : > { %v12733_v13 = vpop.f32.mrf.mxu1 }
 0x169   : > { %v10839_v31 = vpop.f32.mrf.mxu0  ;;  %11138 = vmatmul.mubr.msk.f32.gmra.mxu0 %vm1716_vm1, %v15115_v15 }
 0x16a   : > { %v10889_v12 = vpop.f32.mrf.mxu1  ;;  %11188 = vmatmul.mubr.msk.f32.gmra.mxu1 %vm1716_vm1, %v12214_v9  ;;  %11140 = vmatprep.mubr.msk.f32.mxu0 %vm1716_vm1, %v15116_v35 }
 0x16b   : > { %v12739_v58 = vadd.f32 %v10889_v12, %v10839_v31  ;;  %11190 = vmatprep.mubr.msk.f32.mxu1 %vm1716_vm1, %v12218_v43  ;;  %v12745_v6 = vpop.f32.mrf.mxu0  ;;  %v15119_v12 = vld [vmem:[#allocation22_spill] sm:$0xff] }
 0x16c   : > { %v12747_v62 = vpop.f32.mrf.mxu1 }
 0x16d   : > { %v10842_v8 = vpop.f32.mrf.mxu0  ;;  %11141 = vmatmul.mubr.msk.f32.gmra.mxu0 %vm1716_vm1, %v15117_v48  ;;  %v4306_v48 = vld [vmem:[#allocation2 + $0x198] sm:$0xff] }
 0x16e   : > { %v10892_v26 = vpop.f32.mrf.mxu1  ;;  %11191 = vmatmul.mubr.msk.f32.gmra.mxu1 %vm1716_vm1, %v12230_v45  ;;  %11143 = vmatprep.mubr.msk.f32.mxu0 %vm1716_vm1, %v15118_v55  ;;  %v4695_v55 = vld [vmem:[#allocation2 + $0x199] sm:$0xff] }
 0x16f   : > { %v12753_v9 = vadd.f32 %v10892_v26, %v10842_v8  ;;  %11193 = vmatprep.mubr.msk.f32.mxu1 %vm1716_vm1, %v12234_v47  ;;  %v12759_v43 = vpop.f32.mrf.mxu0  ;;  %v15120_v26 = vld [vmem:[#allocation26_spill] sm:$0xff] }
 0x170   : > { %v12761_v40 = vpop.f32.mrf.mxu1 }
 0x171   : > { %v10845_v61 = vpop.f32.mrf.mxu0  ;;  %11144 = vmatmul.mubr.msk.f32.gmra.mxu0 %vm1716_vm1, %v15119_v12 }
 0x172   : > { %v10895_v31 = vpop.f32.mrf.mxu1  ;;  %11194 = vmatmul.mubr.msk.f32.gmra.mxu1 %vm1716_vm1, %v15100_v11  ;;  %11146 = vmatprep.mubr.msk.f32.mxu0 %vm1716_vm1, %v12252_v19 }
 0x173   : > { %v12767_v45 = vadd.f32 %v10895_v31, %v10845_v61  ;;  %11196 = vmatprep.mubr.msk.f32.mxu1 %vm1716_vm1, %v15101_v49  ;;  %v12773_v47 = vpop.f32.mrf.mxu0 }
 0x174   : > { %v12775_v15 = vpop.f32.mrf.mxu1 }
 0x175   : > { %v10848_v35 = vpop.f32.mrf.mxu0  ;;  %11147 = vmatmul.mubr.msk.f32.gmra.mxu0 %vm1716_vm1, %v12264_v3 }
 0x176   : > { %v10898_v8 = vpop.f32.mrf.mxu1  ;;  %11197 = vmatmul.mubr.msk.f32.gmra.mxu1 %vm1716_vm1, %v15102_v32  ;;  %11149 = vmatprep.mubr.msk.f32.mxu0 %vm1716_vm1, %v15120_v26  ;;  %v4307_v32 = vld [vmem:[#allocation2 + $0x1a0] sm:$0xff] }
 0x177   : > { %v12781_v11 = vadd.f32 %v10898_v8, %v10848_v35  ;;  %11199 = vmatprep.mubr.msk.f32.mxu1 %vm1716_vm1, %v12607_v53  ;;  %v12787_v19 = vpop.f32.mrf.mxu0  ;;  %v4696_v53 = vld [vmem:[#allocation2 + $0x1a1] sm:$0xff] }
 0x178   : > { %v12789_v49 = vpop.f32.mrf.mxu1 }
 0x179   : > { %v10851_v61 = vpop.f32.mrf.mxu0  ;;  %11150 = vmatmul.mubr.msk.f32.gmra.mxu0 %vm1716_vm1, %v12474_v56 }
 0x17a   : > { %v10901_v31 = vpop.f32.mrf.mxu1  ;;  %11200 = vmatmul.mubr.msk.f32.gmra.mxu1 %vm1716_vm1, %v12617_v20  ;;  %11152 = vmatprep.mubr.msk.f32.mxu0 %vm1716_vm1, %v4306_v48 }
 0x17b   : > { %v12795_v3 = vadd.f32 %v10901_v31, %v10851_v61  ;;  %11202 = vmatprep.mubr.msk.f32.mxu1 %vm1716_vm1, %v4695_v55  ;;  %v12799_v12 = vpop.f32.mrf.mxu0  ;;  %v15123_v31 = vld [vmem:[#allocation25_spill] sm:$0xff] }
 0x17c   : > { %v12801_v35 = vpop.f32.mrf.mxu1 }
 0x17d   : > { %v10854_v8 = vpop.f32.mrf.mxu0  ;;  %11153 = vmatmul.mubr.msk.f32.gmra.mxu0 %vm1716_vm1, %v4307_v32 }
 0x17e   : > { %v10904_v26 = vpop.f32.mrf.mxu1  ;;  %11203 = vmatmul.mubr.msk.f32.gmra.mxu1 %vm1716_vm1, %v4696_v53  ;;  %11207 = vmatprep.mubr.msk.f32.mxu0 %vm1716_vm1, %v12296_v52 }
 0x17f   : > { %v12805_v56 = vadd.f32 %v10904_v26, %v10854_v8  ;;  %v12809_v20 = vpop.f32.mrf.mxu0 }
 0x180   : > { %15121 = vst [vmem:[#allocation23_spill] sm:$0xff] %v12809_v20  ;;  %v12811_v48 = vpop.f32.mrf.mxu1 }
 0x181   : > { %15122 = vst [vmem:[#allocation24_spill] sm:$0xff] %v12811_v48  ;;  %v10909_v55 = vpop.f32.mrf.mxu0  ;;  %11208 = vmatmul.mubr.msk.f32.vlgmr.msra.gmra.mxu0 %vm1716_vm1, %v12310_v51 }
 0x182   : > { %v10959_v61 = vpop.f32.mrf.mxu1  ;;  %v3077_v1 = vadd.f32 %v10909_v55, %v15123_v31  ;;  %11210 = vmatprep.mubr.msk.f32.mxu0 %vm1716_vm1, %v12314_v33 }
 0x183   : > { %v12818_v32 = vpop.f32.mrf.mxu0 }
 0x184   : > { %15124 = vst [vmem:[#allocation6_spill] sm:$0xff] %v12818_v32  ;;  %v12820_v53 = vpop.f32.mrf.mxu1  ;;  %v12822_v8 = vadd.f32 %v10959_v61, %v3077_v1 }
 0x185   : > { %15125 = vst [vmem:[#allocation7_spill] sm:$0xff] %v12820_v53  ;;  %v10912_v52 = vpop.f32.mrf.mxu0  ;;  %11211 = vmatmul.mubr.msk.f32.gmra.mxu0 %vm1716_vm1, %v12322_v63 }
 0x186   : > { %v10962_v26 = vpop.f32.mrf.mxu1  ;;  %v3079_v48 = vadd.f32 %v10912_v52, %v12641_v50  ;;  %11213 = vmatprep.mubr.msk.f32.mxu0 %vm1716_vm1, %v12326_v23 }
 0x187   : > { %v2927_v51 = vpop.f32.mrf.mxu0 }
 0x188   : > { %v12829_v55 = vpop.f32.mrf.mxu1  ;;  %v12832_v33 = vadd.f32 %v2927_v51, %v12645_v41  ;;  %v12834_v31 = vadd.f32 %v10962_v26, %v3079_v48 }
 0x189   : > { %15126 = vst [vmem:[#allocation8_spill] sm:$0xff] %v12829_v55  ;;  %v10915_v1 = vpop.f32.mrf.mxu0  ;;  %11214 = vmatmul.mubr.msk.f32.gmra.mxu0 %vm1716_vm1, %v12334_v30 }
 0x18a   : > { %15127 = vst [vmem:[#allocation9_spill] sm:$0xff] %v12832_v33  ;;  %v10965_v61 = vpop.f32.mrf.mxu1  ;;  %v3081_v63 = vadd.f32 %v10915_v1, %v12649_v14  ;;  %11216 = vmatprep.mubr.msk.f32.mxu0 %vm1716_vm1, %v12338_v42 }
 0x18b   : > { %v2937_v50 = vpop.f32.mrf.mxu0 }
 0x18c   : > { %v12841_v23 = vpop.f32.mrf.mxu1  ;;  %v12844_v52 = vadd.f32 %v2937_v50, %v12653_v24  ;;  %v12846_v41 = vadd.f32 %v10965_v61, %v3081_v63 }
 0x18d   : > { %15128 = vst [vmem:[#allocation10_spill] sm:$0xff] %v12841_v23  ;;  %v10918_v48 = vpop.f32.mrf.mxu0  ;;  %11217 = vmatmul.mubr.msk.f32.gmra.mxu0 %vm1716_vm1, %v12346_v36 }
 0x18e   : > { %15129 = vst [vmem:[#allocation11_spill] sm:$0xff] %v12844_v52  ;;  %v10968_v26 = vpop.f32.mrf.mxu1  ;;  %v3083_v30 = vadd.f32 %v10918_v48, %v12657_v34  ;;  %11219 = vmatprep.mubr.msk.f32.mxu0 %vm1716_vm1, %v12350_v22 }
 0x18f   : > { %v2947_v14 = vpop.f32.mrf.mxu0 }
 0x190   : > { %v12853_v42 = vpop.f32.mrf.mxu1  ;;  %v12856_v51 = vadd.f32 %v2947_v14, %v12661_v37  ;;  %v12858_v24 = vadd.f32 %v10968_v26, %v3083_v30 }
 0x191   : > { %15130 = vst [vmem:[#allocation12_spill] sm:$0xff] %v12853_v42  ;;  %v10921_v1 = vpop.f32.mrf.mxu0  ;;  %11220 = vmatmul.mubr.msk.f32.gmra.mxu0 %vm1716_vm1, %v12358_v27 }
 0x192   : > { %15131 = vst [vmem:[#allocation13_spill] sm:$0xff] %v12856_v51  ;;  %v10971_v61 = vpop.f32.mrf.mxu1  ;;  %v3085_v36 = vadd.f32 %v10921_v1, %v12666_v18  ;;  %11222 = vmatprep.mubr.msk.f32.mxu0 %vm1716_vm1, %v12362_v2 }
 0x193   : > { %v2957_v34 = vpop.f32.mrf.mxu0 }
 0x194   : > { %v12865_v22 = vpop.f32.mrf.mxu1  ;;  %v12868_v63 = vadd.f32 %v2957_v34, %v12671_v60  ;;  %v12870_v37 = vadd.f32 %v10971_v61, %v3085_v36  ;;  %v5070_v61 = vld [vmem:[#allocation2 + $0xf2] sm:$0xff] }
 0x195   : > { %v10924_v50 = vpop.f32.mrf.mxu0  ;;  %11223 = vmatmul.mubr.msk.f32.gmra.mxu0 %vm1716_vm1, %v12372_v17 }
 0x196   : > { %v10974_v48 = vpop.f32.mrf.mxu1  ;;  %v3087_v27 = vadd.f32 %v10924_v50, %v12676_v57  ;;  %11225 = vmatprep.mubr.msk.f32.mxu0 %vm1716_vm1, %v12376_v59  ;;  %v5069_v57 = vld [vmem:[#allocation2 + $0xe2] sm:$0xff] }
 0x197   : > { %v2967_v18 = vpop.f32.mrf.mxu0 }
 0x198   : > { %v12877_v2 = vpop.f32.mrf.mxu1  ;;  %v12880_v26 = vadd.f32 %v2967_v18, %v12681_v46  ;;  %v12882_v60 = vadd.f32 %v10974_v48, %v3087_v27  ;;  %v5072_v27 = vld [vmem:[#allocation2 + $0x10a] sm:$0xff] }
 0x199   : > { %v10927_v30 = vpop.f32.mrf.mxu0  ;;  %11226 = vmatmul.mubr.msk.f32.gmra.mxu0 %vm1716_vm1, %v12384_v54 }
 0x19a   : > { %v10977_v14 = vpop.f32.mrf.mxu1  ;;  %v3089_v17 = vadd.f32 %v10927_v30, %v12687_v28  ;;  %11228 = vmatprep.mubr.msk.f32.mxu0 %vm1716_vm1, %v12388_v39  ;;  %v5071_v28 = vld [vmem:[#allocation2 + $0xfa] sm:$0xff] }
 0x19b   : > { %v2977_v59 = vpop.f32.mrf.mxu0 }
 0x19c   : > { %v12889_v1 = vpop.f32.mrf.mxu1  ;;  %v12892_v46 = vadd.f32 %v2977_v59, %v12693_v0  ;;  %v12894_v36 = vadd.f32 %v10977_v14, %v3089_v17 }
 0x19d   : > { %v10930_v34 = vpop.f32.mrf.mxu0  ;;  %11229 = vmatmul.mubr.msk.f32.gmra.mxu0 %vm1716_vm1, %v5069_v57 }
 0x19e   : > { %v10980_v54 = vpop.f32.mrf.mxu1  ;;  %v3091_v50 = vadd.f32 %v10930_v34, %v12699_v21  ;;  %11231 = vmatprep.mubr.msk.f32.mxu0 %vm1716_vm1, %v5070_v61  ;;  %v5073_v21 = vld [vmem:[#allocation2 + $0x112] sm:$0xff]  ;;  %v5074_v61 = vld [vmem:[#allocation2 + $0x122] sm:$0xff] }
 0x19f   : > { %v2987_v39 = vpop.f32.mrf.mxu0 }
 0x1a0   : > { %v12899_v48 = vpop.f32.mrf.mxu1  ;;  %v12902_v18 = vadd.f32 %v2987_v39, %v12705_v38  ;;  %v12904_v0 = vadd.f32 %v10980_v54, %v3091_v50 }
 0x1a1   : > { %v10933_v30 = vpop.f32.mrf.mxu0  ;;  %11232 = vmatmul.mubr.msk.f32.gmra.mxu0 %vm1716_vm1, %v5071_v28  ;;  %v5075_v28 = vld [vmem:[#allocation2 + $0x12a] sm:$0xff] }
 0x1a2   : > { %v10983_v14 = vpop.f32.mrf.mxu1  ;;  %v3093_v17 = vadd.f32 %v10933_v30, %v12711_v16  ;;  %11234 = vmatprep.mubr.msk.f32.mxu0 %vm1716_vm1, %v5072_v27  ;;  %v5076_v27 = vld [vmem:[#allocation2 + $0x13a] sm:$0xff] }
 0x1a3   : > { %v12909_v57 = vpop.f32.mrf.mxu0 }
 0x1a4   : > { %v12911_v59 = vpop.f32.mrf.mxu1  ;;  %v12913_v34 = vadd.f32 %v10983_v14, %v3093_v17 }
 0x1a5   : > { %v10936_v38 = vpop.f32.mrf.mxu0  ;;  %11235 = vmatmul.mubr.msk.f32.gmra.mxu0 %vm1716_vm1, %v5073_v21  ;;  %v5077_v21 = vld [vmem:[#allocation2 + $0x142] sm:$0xff] }
 0x1a6   : > { %v10986_v54 = vpop.f32.mrf.mxu1  ;;  %v3095_v50 = vadd.f32 %v10936_v38, %v12725_v4  ;;  %11237 = vmatprep.mubr.msk.f32.mxu0 %vm1716_vm1, %v5074_v61  ;;  %v5078_v38 = vld [vmem:[#allocation2 + $0x152] sm:$0xff] }
 0x1a7   : > { %v12918_v16 = vpop.f32.mrf.mxu0 }
 0x1a8   : > { %v12920_v39 = vpop.f32.mrf.mxu1  ;;  %v12922_v30 = vadd.f32 %v10986_v54, %v3095_v50 }
 0x1a9   : > { %v10939_v42 = vpop.f32.mrf.mxu0  ;;  %11238 = vmatmul.mubr.msk.f32.gmra.mxu0 %vm1716_vm1, %v5075_v28  ;;  %v5079_v28 = vld [vmem:[#allocation2 + $0x15a] sm:$0xff] }
 0x1aa   : > { %v10989_v14 = vpop.f32.mrf.mxu1  ;;  %v3097_v17 = vadd.f32 %v10939_v42, %v12739_v58  ;;  %11240 = vmatprep.mubr.msk.f32.mxu0 %vm1716_vm1, %v5076_v27  ;;  %v5080_v27 = vld [vmem:[#allocation2 + $0x16a] sm:$0xff] }
 0x1ab   : > { %v12927_v4 = vpop.f32.mrf.mxu0 }
 0x1ac   : > { %v12929_v61 = vpop.f32.mrf.mxu1  ;;  %v12931_v51 = vadd.f32 %v10989_v14, %v3097_v17 }
 0x1ad   : > { %v10942_v23 = vpop.f32.mrf.mxu0  ;;  %11241 = vmatmul.mubr.msk.f32.gmra.mxu0 %vm1716_vm1, %v5077_v21  ;;  %v5081_v21 = vld [vmem:[#allocation2 + $0x172] sm:$0xff] }
 0x1ae   : > { %v10992_v54 = vpop.f32.mrf.mxu1  ;;  %v3099_v50 = vadd.f32 %v10942_v23, %v12753_v9  ;;  %11243 = vmatprep.mubr.msk.f32.mxu0 %vm1716_vm1, %v5078_v38 }
 0x1af   : > { %v12936_v58 = vpop.f32.mrf.mxu0 }
 0x1b0   : > { %v12938_v42 = vpop.f32.mrf.mxu1  ;;  %v12940_v52 = vadd.f32 %v10992_v54, %v3099_v50 }
 0x1b1   : > { %v10945_v55 = vpop.f32.mrf.mxu0  ;;  %11244 = vmatmul.mubr.msk.f32.gmra.mxu0 %vm1716_vm1, %v5079_v28 }
 0x1b2   : > { %v10995_v14 = vpop.f32.mrf.mxu1  ;;  %v3101_v17 = vadd.f32 %v10945_v55, %v12767_v45  ;;  %11246 = vmatprep.mubr.msk.f32.mxu0 %vm1716_vm1, %v5080_v27  ;;  %v5084_v55 = vld [vmem:[#allocation2 + $0x19a] sm:$0xff] }
 0x1b3   : > { %v12945_v9 = vpop.f32.mrf.mxu0 }
 0x1b4   : > { %v12947_v23 = vpop.f32.mrf.mxu1  ;;  %v12949_v38 = vadd.f32 %v10995_v14, %v3101_v17 }
 0x1b5   : > { %v10948_v33 = vpop.f32.mrf.mxu0  ;;  %11247 = vmatmul.mubr.msk.f32.gmra.mxu0 %vm1716_vm1, %v5081_v21 }
 0x1b6   : > { %v10998_v54 = vpop.f32.mrf.mxu1  ;;  %v3103_v50 = vadd.f32 %v10948_v33, %v12781_v11  ;;  %11249 = vmatprep.mubr.msk.f32.mxu0 %vm1716_vm1, %v12609_v10  ;;  %v5085_v11 = vld [vmem:[#allocation2 + $0x1a2] sm:$0xff] }
 0x1b7   : > { %v12955_v28 = vpop.f32.mrf.mxu0 }
 0x1b8   : > { %v12957_v45 = vpop.f32.mrf.mxu1  ;;  %v12959_v27 = vadd.f32 %v10998_v54, %v3103_v50 }
 0x1b9   : > { %v10951_v53 = vpop.f32.mrf.mxu0  ;;  %11250 = vmatmul.mubr.msk.f32.gmra.mxu0 %vm1716_vm1, %v12621_v7 }
 0x1ba   : > { %15132 = vst [vmem:[#allocation14_spill] sm:$0xff] %v12959_v27  ;;  %v11001_v14 = vpop.f32.mrf.mxu1  ;;  %v3105_v17 = vadd.f32 %v10951_v53, %v12795_v3  ;;  %11252 = vmatprep.mubr.msk.f32.mxu0 %vm1716_vm1, %v5084_v55 }
 0x1bb   : > { %v12965_v33 = vpop.f32.mrf.mxu0 }
 0x1bc   : > { %15133 = vst [vmem:[#allocation15_spill] sm:$0xff] %v12965_v33  ;;  %v12967_v10 = vpop.f32.mrf.mxu1  ;;  %v12969_v21 = vadd.f32 %v11001_v14, %v3105_v17 }
 0x1bd   : > { %v10954_v32 = vpop.f32.mrf.mxu0  ;;  %11253 = vmatmul.mubr.msk.f32.gmra.mxu0 %vm1716_vm1, %v5085_v11 }
 0x1be   : > { %15134 = vst [vmem:[#allocation16_spill] sm:$0xff] %v12969_v21  ;;  %v11004_v54 = vpop.f32.mrf.mxu1  ;;  %v3107_v50 = vadd.f32 %v10954_v32, %v12805_v56 }
 0x1bf   : > { %v12973_v20 = vpop.f32.mrf.mxu0 }
 0x1c0   : > { %15135 = vst [vmem:[#allocation17_spill] sm:$0xff] %v12973_v20  ;;  %v12975_v7 = vpop.f32.mrf.mxu1  ;;  %v12977_v3 = vadd.f32 %v11004_v54, %v3107_v50 }
 0x1c1   : > { %v11009_v53 = vpop.f32.mrf.mxu0 }
 0x1c2   : > { %15136 = vst [vmem:[#allocation18_spill] sm:$0xff] %v12977_v3  ;;  %v11059_v55 = vpop.f32.mrf.mxu1  ;;  %v3855_v27 = vadd.f32 %v11009_v53, %v12822_v8 }
 0x1c3   : > { %v12980_v33 = vpop.f32.mrf.mxu0 }
 0x1c4   : > { %15137 = vst [vmem:[#allocation19_spill] sm:$0xff] %v12980_v33  ;;  %v12982_v14 = vpop.f32.mrf.mxu1  ;;  %v12984_v17 = vadd.f32 %v11059_v55, %v3855_v27 }
 0x1c5   : > { %v11012_v11 = vpop.f32.mrf.mxu0 }
 0x1c6   : > { %15138 = vst [vmem:[#allocation20_spill] sm:$0xff] %v12984_v17  ;;  %v11062_v21 = vpop.f32.mrf.mxu1  ;;  %v3857_v56 = vadd.f32 %v11012_v11, %v12834_v31 }
 0x1c7   : > { %v12987_v32 = vpop.f32.mrf.mxu0 }
 0x1c8   : > { %15139 = vst [vmem:[#allocation22_spill] sm:$0xff] %v12987_v32  ;;  %v12989_v20 = vpop.f32.mrf.mxu1  ;;  %v12991_v54 = vadd.f32 %v11062_v21, %v3857_v56 }
 0x1c9   : > { %v11015_v50 = vpop.f32.mrf.mxu0 }
 0x1ca   : > { %15140 = vst [vmem:[#allocation26_spill] sm:$0xff] %v12991_v54  ;;  %v11065_v3 = vpop.f32.mrf.mxu1  ;;  %v3859_v8 = vadd.f32 %v11015_v50, %v12846_v41  ;;  %v3473_v41 = vadd.f32 %v12865_v22, %v12868_v63 }
 0x1cb   : > { %v12994_v53 = vpop.f32.mrf.mxu0 }
 0x1cc   : > { %15141 = vst [vmem:[#allocation25_spill] sm:$0xff] %v12994_v53  ;;  %v12996_v33 = vpop.f32.mrf.mxu1  ;;  %v12998_v27 = vadd.f32 %v11065_v3, %v3859_v8 }
 0x1cd   : > { %15142 = vst [vmem:[#allocation27_spill] sm:$0xff] %v12996_v33  ;;  %v11018_v55 = vpop.f32.mrf.mxu0 }
 0x1ce   : > { %15143 = vst [vmem:[#allocation28_spill] sm:$0xff] %v12998_v27  ;;  %v11068_v17 = vpop.f32.mrf.mxu1  ;;  %v3861_v31 = vadd.f32 %v11018_v55, %v12858_v24  ;;  %v3475_v55 = vadd.f32 %v12877_v2, %v12880_v26  ;;  %v2641_v26 = vadd.f32 %v12719_v44, %v12717_v25 }
 0x1cf   : > { %v13001_v11 = vpop.f32.mrf.mxu0 }
 0x1d0   : > { %15144 = vst [vmem:[#allocation29_spill] sm:$0xff] %v13001_v11  ;;  %v13003_v32 = vpop.f32.mrf.mxu1  ;;  %v13005_v21 = vadd.f32 %v11068_v17, %v3861_v31 }
 0x1d1   : > { %15145 = vst [vmem:[#allocation30_spill] sm:$0xff] %v13003_v32  ;;  %v11021_v56 = vpop.f32.mrf.mxu0 }
 0x1d2   : > { %15146 = vst [vmem:[#allocation31_spill] sm:$0xff] %v13005_v21  ;;  %v11071_v54 = vpop.f32.mrf.mxu1  ;;  %v3863_v50 = vadd.f32 %v11021_v56, %v12870_v37 }
 0x1d3   : > { %v3735_v33 = vpop.f32.mrf.mxu0 }
 0x1d4   : > { %v4124_v3 = vpop.f32.mrf.mxu1  ;;  %v3862_v8 = vadd.f32 %v3735_v33, %v3473_v41  ;;  %v13010_v27 = vadd.f32 %v11071_v54, %v3863_v50  ;;  %v3477_v33 = vadd.f32 %v12889_v1, %v12892_v46 }
 0x1d5   : > { %v11024_v53 = vpop.f32.mrf.mxu0 }
 0x1d6   : > { %v11074_v24 = vpop.f32.mrf.mxu1  ;;  %v3865_v17 = vadd.f32 %v11024_v53, %v12882_v60  ;;  %v13015_v31 = vadd.f32 %v4124_v3, %v3862_v8  ;;  %v3479_v3 = vadd.f32 %v12899_v48, %v12902_v18  ;;  %v3092_v8 = vadd.f32 %v12909_v57, %v2641_v26 }
 0x1d7   : > { %v3745_v21 = vpop.f32.mrf.mxu0 }
 0x1d8   : > { %v4134_v32 = vpop.f32.mrf.mxu1  ;;  %v3864_v11 = vadd.f32 %v3745_v21, %v3475_v55  ;;  %v13017_v22 = vadd.f32 %v11074_v24, %v3865_v17  ;;  %v3481_v17 = vadd.f32 %v12911_v59, %v3092_v8 }
 0x1d9   : > { %v11027_v63 = vpop.f32.mrf.mxu0 }
 0x1da   : > { %v11077_v37 = vpop.f32.mrf.mxu1  ;;  %v3867_v54 = vadd.f32 %v11027_v63, %v12894_v36  ;;  %v13022_v56 = vadd.f32 %v4134_v32, %v3864_v11  ;;  %v2651_v11 = vadd.f32 %v12733_v13, %v12731_v5 }
 0x1db   : > { %v3755_v41 = vpop.f32.mrf.mxu0 }
 0x1dc   : > { %v4144_v2 = vpop.f32.mrf.mxu1  ;;  %v3866_v60 = vadd.f32 %v3755_v41, %v3477_v33  ;;  %v13026_v53 = vadd.f32 %v11077_v37, %v3867_v54  ;;  %v3094_v48 = vadd.f32 %v12918_v16, %v2651_v11  ;;  %v2661_v37 = vadd.f32 %v12747_v62, %v12745_v6 }
 0x1dd   : > { %v11030_v21 = vpop.f32.mrf.mxu0 }
 0x1de   : > { %v11080_v50 = vpop.f32.mrf.mxu1  ;;  %v3869_v1 = vadd.f32 %v11030_v21, %v12904_v0  ;;  %v13032_v46 = vadd.f32 %v4144_v2, %v3866_v60  ;;  %v3483_v41 = vadd.f32 %v12920_v39, %v3094_v48  ;;  %v3096_v59 = vadd.f32 %v12927_v4, %v2661_v37 }
 0x1df   : > { %v3765_v36 = vpop.f32.mrf.mxu0  ;;  %v2671_v60 = vadd.f32 %v12761_v40, %v12759_v43 }
 0x1e0   : > { %v4154_v32 = vpop.f32.mrf.mxu1  ;;  %v3868_v25 = vadd.f32 %v3765_v36, %v3479_v3  ;;  %v13036_v44 = vadd.f32 %v11080_v50, %v3869_v1  ;;  %v3485_v3 = vadd.f32 %v12929_v61, %v3096_v59  ;;  %v2681_v36 = vadd.f32 %v12775_v15, %v12773_v47 }
 0x1e1   : > { %v11033_v24 = vpop.f32.mrf.mxu0  ;;  %v3098_v39 = vadd.f32 %v12936_v58, %v2671_v60 }
 0x1e2   : > { %v11083_v55 = vpop.f32.mrf.mxu1  ;;  %v3871_v18 = vadd.f32 %v11033_v24, %v12913_v34  ;;  %v13041_v57 = vadd.f32 %v4154_v32, %v3868_v25  ;;  %v3100_v61 = vadd.f32 %v12945_v9, %v2681_v36 }
 0x1e3   : > { %v3775_v0 = vpop.f32.mrf.mxu0  ;;  %v3487_v25 = vadd.f32 %v12938_v42, %v3098_v39 }
 0x1e4   : > { %v4164_v63 = vpop.f32.mrf.mxu1  ;;  %v3870_v33 = vadd.f32 %v3775_v0, %v3481_v17  ;;  %v13045_v5 = vadd.f32 %v11083_v55, %v3871_v18  ;;  %v2691_v17 = vadd.f32 %v12789_v49, %v12787_v19  ;;  %v3489_v0 = vadd.f32 %v12947_v23, %v3100_v61  ;;  %v15147_v49 = vld [vmem:[#allocation21_spill] sm:$0xff] }
 0x1e5   : > { %v11036_v13 = vpop.f32.mrf.mxu0 }
 0x1e6   : > { %v11086_v54 = vpop.f32.mrf.mxu1  ;;  %v3873_v16 = vadd.f32 %v11036_v13, %v12922_v30  ;;  %v13050_v2 = vadd.f32 %v4164_v63, %v3870_v33  ;;  %v3102_v42 = vadd.f32 %v12955_v28, %v2691_v17  ;;  %v2701_v33 = vadd.f32 %v12801_v35, %v12799_v12  ;;  %v15148_v28 = vld [vmem:[#allocation15_spill] sm:$0xff]  ;;  %v15151_v12 = vld [vmem:[#allocation24_spill] sm:$0xff] }
 0x1e7   : > { %v3785_v34 = vpop.f32.mrf.mxu0 }
 0x1e8   : > { %v4174_v26 = vpop.f32.mrf.mxu1  ;;  %v3872_v21 = vadd.f32 %v3785_v34, %v3483_v41  ;;  %v13054_v6 = vadd.f32 %v11086_v54, %v3873_v16  ;;  %v2561_v54 = vadd.f32 %v15147_v49, %v12634_v29  ;;  %v3491_v23 = vadd.f32 %v12957_v45, %v3102_v42  ;;  %v15159_v49 = vld [vmem:[#allocation8_spill] sm:$0xff] }
 0x1e9   : > { %v11039_v62 = vpop.f32.mrf.mxu0  ;;  %v3104_v16 = vadd.f32 %v15148_v28, %v2701_v33 }
 0x1ea   : > { %v11089_v50 = vpop.f32.mrf.mxu1  ;;  %v3875_v4 = vadd.f32 %v11039_v62, %v12931_v51  ;;  %v13059_v8 = vadd.f32 %v4174_v26, %v3872_v21  ;;  %v15150_v62 = vld [vmem:[#allocation23_spill] sm:$0xff] }
 0x1eb   : > { %v3795_v30 = vpop.f32.mrf.mxu0  ;;  %v2711_v35 = vadd.f32 %v15151_v12, %v15150_v62  ;;  %v3493_v45 = vadd.f32 %v12967_v10, %v3104_v16  ;;  %v15157_v10 = vld [vmem:[#allocation18_spill] sm:$0xff]  ;;  %v15162_v12 = vld [vmem:[#allocation11_spill] sm:$0xff] }
 0x1ec   : > { %v4184_v1 = vpop.f32.mrf.mxu1  ;;  %v3874_v32 = vadd.f32 %v3795_v30, %v3485_v3  ;;  %v13063_v43 = vadd.f32 %v11089_v50, %v3875_v4  ;;  %v15152_v50 = vld [vmem:[#allocation6_spill] sm:$0xff] }
 0x1ed   : > { %v11042_v40 = vpop.f32.mrf.mxu0  ;;  %v3076_v3 = vadd.f32 %v15152_v50, %v2561_v54  ;;  %v15160_v16 = vld [vmem:[#allocation22_spill] sm:$0xff] }
 0x1ee   : > { %v11092_v11 = vpop.f32.mrf.mxu1  ;;  %v3877_v58 = vadd.f32 %v11042_v40, %v12940_v52  ;;  %v13068_v24 = vadd.f32 %v4184_v1, %v3874_v32  ;;  %v15153_v1 = vld [vmem:[#allocation17_spill] sm:$0xff]  ;;  %v15154_v32 = vld [vmem:[#allocation16_spill] sm:$0xff] }
 0x1ef   : > { %v3805_v51 = vpop.f32.mrf.mxu0  ;;  %v3106_v36 = vadd.f32 %v15153_v1, %v2711_v35  ;;  %v15163_v35 = vld [vmem:[#allocation10_spill] sm:$0xff] }
 0x1f0   : > { %v4194_v55 = vpop.f32.mrf.mxu1  ;;  %v3876_v48 = vadd.f32 %v3805_v51, %v3487_v25  ;;  %v13072_v47 = vadd.f32 %v11092_v11, %v3877_v58  ;;  %v15155_v58 = vld [vmem:[#allocation7_spill] sm:$0xff]  ;;  %v3469_v50 = vadd.f32 %v15163_v35, %v15162_v12  ;;  %v15165_v1 = vld [vmem:[#allocation26_spill] sm:$0xff] }
 0x1f1   : > { %v11045_v15 = vpop.f32.mrf.mxu0  ;;  %v3465_v51 = vadd.f32 %v15155_v58, %v3076_v3 }
 0x1f2   : > { %v11095_v18 = vpop.f32.mrf.mxu1  ;;  %v3879_v9 = vadd.f32 %v11045_v15, %v12949_v38  ;;  %v13077_v63 = vadd.f32 %v4194_v55, %v3876_v48  ;;  %v15149_v38 = vld [vmem:[#allocation14_spill] sm:$0xff] }
 0x1f3   : > { %v3815_v52 = vpop.f32.mrf.mxu0 }
 0x1f4   : > { %v4204_v37 = vpop.f32.mrf.mxu1  ;;  %v3878_v13 = vadd.f32 %v3815_v52, %v3489_v0  ;;  %v13081_v19 = vadd.f32 %v11095_v18, %v3879_v9  ;;  %v3495_v18 = vadd.f32 %v12975_v7, %v3106_v36  ;;  %v15156_v0 = vld [vmem:[#allocation19_spill] sm:$0xff] }
 0x1f5   : > { %v11048_v41 = vpop.f32.mrf.mxu0  ;;  %v3854_v42 = vadd.f32 %v15156_v0, %v3465_v51  ;;  %v15169_v0 = vld [vmem:[#allocation29_spill] sm:$0xff] }
 0x1f6   : > { %v11098_v59 = vpop.f32.mrf.mxu1  ;;  %v3881_v34 = vadd.f32 %v11048_v41, %v15149_v38  ;;  %v13088_v26 = vadd.f32 %v4204_v37, %v3878_v13  ;;  %v15158_v13 = vld [vmem:[#allocation9_spill] sm:$0xff] }
 0x1f7   : > { %v3825_v60 = vpop.f32.mrf.mxu0  ;;  %v3467_v54 = vadd.f32 %v15159_v49, %v15158_v13  ;;  %v4243_v7 = vadd.f32 %v12982_v14, %v3854_v42  ;;  %v15170_v42 = vld [vmem:[#allocation28_spill] sm:$0xff] }
 0x1f8   : > { %v4214_v21 = vpop.f32.mrf.mxu1  ;;  %v3880_v39 = vadd.f32 %v3825_v60, %v3491_v23  ;;  %v13093_v4 = vadd.f32 %v11098_v59, %v3881_v34  ;;  %v15161_v34 = vld [vmem:[#allocation20_spill] sm:$0xff] }
 0x1f9   : > { %v11051_v29 = vpop.f32.mrf.mxu0  ;;  %v3856_v38 = vadd.f32 %v15160_v16, %v3467_v54  ;;  %v15172_v16 = vld [vmem:[#allocation31_spill] sm:$0xff] }
 0x1fa   : > { %v11101_v30 = vpop.f32.mrf.mxu1  ;;  %v3883_v40 = vadd.f32 %v11051_v29, %v15154_v32  ;;  %v13098_v11 = vadd.f32 %v4214_v21, %v3880_v39 }
 0x1fb   : > { %v3835_v25 = vpop.f32.mrf.mxu0 }
 0x1fc   : > { %v4224_v61 = vpop.f32.mrf.mxu1  ;;  %v3882_v55 = vadd.f32 %v3835_v25, %v3493_v45  ;;  %v13101_v17 = vadd.f32 %v11101_v30, %v3883_v40  ;;  %v4245_v30 = vadd.f32 %v12989_v20, %v3856_v38  ;;  %v15164_v45 = vld [vmem:[#allocation25_spill] sm:$0xff] }
 0x1fd   : > { %v11054_v48 = vpop.f32.mrf.mxu0  ;;  %v3858_v14 = vadd.f32 %v15164_v45, %v3469_v50  ;;  %v15166_v25 = vld [vmem:[#allocation13_spill] sm:$0xff] }
 0x1fe   : > { %v11104_v15 = vpop.f32.mrf.mxu1  ;;  %v3885_v9 = vadd.f32 %v11054_v48, %v15157_v10  ;;  %v13106_v52 = vadd.f32 %v4224_v61, %v3882_v55  ;;  %v15167_v61 = vld [vmem:[#allocation12_spill] sm:$0xff] }
 0x1ff   : > { %v3845_v37 = vpop.f32.mrf.mxu0  ;;  %v3471_v58 = vadd.f32 %v15167_v61, %v15166_v25 }
 0x200   : > { %v13108_v33 = vpop.f32.mrf.mxu1  ;;  %v13112_v41 = vadd.f32 %v3845_v37, %v3495_v18  ;;  %v13114_v59 = vadd.f32 %v11104_v15, %v3885_v9  ;;  %v15168_v15 = vld [vmem:[#allocation27_spill] sm:$0xff] }
 0x201   : > { %v11109_v23 = vpop.f32.mrf.mxu0  ;;  %v4247_v18 = vadd.f32 %v15168_v15, %v3858_v14  ;;  %v3860_v20 = vadd.f32 %v15169_v0, %v3471_v58 }
 0x202   : > { %v13116_v28 = vpop.f32.mrf.mxu1  ;;  %v13121_v60 = vadd.f32 %v11109_v23, %v15161_v34  ;;  %v15171_v23 = vld [vmem:[#allocation30_spill] sm:$0xff] }
 0x203   : > { %v4474_v21 = vpop.f32.mrf.mxu0 }
 0x204   : > { %v13123_v62 = vpop.f32.mrf.mxu1  ;;  %v13127_v3 = vadd.f32 %v4474_v21, %v4243_v7  ;;  %v4249_v7 = vadd.f32 %v15171_v23, %v3860_v20 }
 0x205   : > { %v11112_v39 = vpop.f32.mrf.mxu0 }
 0x206   : > { %v13129_v29 = vpop.f32.mrf.mxu1  ;;  %v13134_v36 = vadd.f32 %v11112_v39, %v15165_v1 }
 0x207   : > { %v4484_v32 = vpop.f32.mrf.mxu0 }
 0x208   : > { %v13136_v40 = vpop.f32.mrf.mxu1  ;;  %v13140_v51 = vadd.f32 %v4484_v32, %v4245_v30 }
 0x209   : > { %v11115_v55 = vpop.f32.mrf.mxu0 }
 0x20a   : > { %v13142_v48 = vpop.f32.mrf.mxu1  ;;  %v13147_v10 = vadd.f32 %v11115_v55, %v15170_v42 }
 0x20b   : > { %v4494_v9 = vpop.f32.mrf.mxu0 }
 0x20c   : > { %v13149_v37 = vpop.f32.mrf.mxu1  ;;  %v13151_v13 = vadd.f32 %v4494_v9, %v4247_v18 }
 0x20d   : > { %v11118_v49 = vpop.f32.mrf.mxu0 }
 0x20e   : > { %v13153_v54 = vpop.f32.mrf.mxu1  ;;  %v13157_v38 = vadd.f32 %v11118_v49, %v15172_v16 }
 0x20f   : > { %v4504_v34 = vpop.f32.mrf.mxu0 }
 0x210   : > { %v13159_v21 = vpop.f32.mrf.mxu1  ;;  %v13161_v12 = vadd.f32 %v4504_v34, %v4249_v7 }
 0x211   : > { %v11121_v35 = vpop.f32.mrf.mxu0 }
 0x212   : > { %v13163_v50 = vpop.f32.mrf.mxu1  ;;  %v13166_v39 = vadd.f32 %v11121_v35, %v13010_v27 }
 0x213   : > { %v4514_v30 = vpop.f32.mrf.mxu0 }
 0x214   : > { %v13168_v45 = vpop.f32.mrf.mxu1  ;;  %v13171_v14 = vadd.f32 %v4514_v30, %v13015_v31 }
 0x215   : > { %v11124_v1 = vpop.f32.mrf.mxu0 }
 0x216   : > { %v13174_v32 = vadd.f32 %v11124_v1, %v13017_v22  ;;  %v13176_v25 = vpop.f32.mrf.mxu1 }
 0x217   : > { %v4524_v61 = vpop.f32.mrf.mxu0 }
 0x218   : > { %v13179_v58 = vadd.f32 %v4524_v61, %v13022_v56  ;;  %v13184_v15 = vpop.f32.mrf.mxu1 }
 0x219   : > { %v11127_v55 = vpop.f32.mrf.mxu0 }
 0x21a   : > { %v13182_v27 = vadd.f32 %v11127_v55, %v13026_v53  ;;  %v13189_v20 = vpop.f32.mrf.mxu1 }
 0x21b   : > { %v4534_v18 = vpop.f32.mrf.mxu0 }
 0x21c   : > { %v13187_v31 = vadd.f32 %v4534_v18, %v13032_v46  ;;  %v13197_v49 = vpop.f32.mrf.mxu1 }
 0x21d   : > { %v11130_v0 = vpop.f32.mrf.mxu0 }
 0x21e   : > { %v13192_v22 = vadd.f32 %v11130_v0, %v13036_v44  ;;  %v13205_v16 = vpop.f32.mrf.mxu1 }
 0x21f   : > { %v4544_v42 = vpop.f32.mrf.mxu0 }
 0x220   : > { %v13195_v56 = vadd.f32 %v4544_v42, %v13041_v57  ;;  %v13213_v30 = vpop.f32.mrf.mxu1 }
 0x221   : > { %v11133_v9 = vpop.f32.mrf.mxu0 }
 0x222   : > { %v13200_v53 = vadd.f32 %v11133_v9, %v13045_v5  ;;  %v13221_v55 = vpop.f32.mrf.mxu1 }
 0x223   : > { %v4554_v23 = vpop.f32.mrf.mxu0 }
 0x224   : > { %v13203_v46 = vadd.f32 %v4554_v23, %v13050_v2  ;;  %v13229_v42 = vpop.f32.mrf.mxu1 }
 0x225   : > { %v11136_v7 = vpop.f32.mrf.mxu0 }
 0x226   : > { %v13208_v44 = vadd.f32 %v11136_v7, %v13054_v6  ;;  %v13237_v7 = vpop.f32.mrf.mxu1 }
 0x227   : > { %v4564_v34 = vpop.f32.mrf.mxu0 }
 0x228   : > { %v13211_v57 = vadd.f32 %v4564_v34, %v13059_v8 }
 0x229   : > { %v11139_v35 = vpop.f32.mrf.mxu0 }
 0x22a   : > { %v13216_v5 = vadd.f32 %v11139_v35, %v13063_v43 }
 0x22b   : > { %v4574_v1 = vpop.f32.mrf.mxu0 }
 0x22c   : > { %v13219_v2 = vadd.f32 %v4574_v1, %v13068_v24  ;;  %v11451_v1 = vmov 1983009808  }
 0x22d   : > { %v11142_v61 = vpop.f32.mrf.mxu0 }
 0x22e   : > { %v13224_v6 = vadd.f32 %v11142_v61, %v13072_v47  ;;  %v372_v61 = vunpack.c.l.s4 %v11451_v1 }
 0x22f   : > { %v4584_v18 = vpop.f32.mrf.mxu0 }
 0x230   : > { %v13227_v8 = vadd.f32 %v4584_v18, %v13077_v63  ;;  %v13245_v18 = vpop.f32.mrf.mxu1 }
 0x231   : > { %v11145_v0 = vpop.f32.mrf.mxu0 }
 0x232   : > { %v13232_v43 = vadd.f32 %v11145_v0, %v13081_v19 }
 0x233   : > { %v4594_v9 = vpop.f32.mrf.mxu0 }
 0x234   : > { %v13235_v24 = vadd.f32 %v4594_v9, %v13088_v26 }
 0x235   : > { %v11148_v23 = vpop.f32.mrf.mxu0 }
 0x236   : > { %15173 = vst [vmem:[#allocation21_spill] sm:$0xff] %v13235_v24  ;;  %v13240_v47 = vadd.f32 %v11148_v23, %v13093_v4  ;;  %v373_v24 = vunpack.c.0.s8 %v372_v61  ;;  %v13253_v4 = vpop.f32.mrf.mxu1  ;;  %v5022_v61 = vadd.f32 %v13123_v62, %v13127_v3  ;;  %v5027_v62 = vadd.f32 %v13142_v48, %v13147_v10 }
 0x237   : > { %v4604_v34 = vpop.f32.mrf.mxu0 }
 0x238   : > { %v13243_v63 = vadd.f32 %v4604_v34, %v13098_v11  ;;  %v5023_v34 = vadd.f32 %v13116_v28, %v13121_v60 }
 0x239   : > { %v11151_v35 = vpop.f32.mrf.mxu0 }
 0x23a   : > { %v13248_v19 = vadd.f32 %v11151_v35, %v13101_v17  ;;  %v13265_v17 = vld [vmem:[%s14991_s3] ss:$0 sm:$0xff] }
 0x23b   : > { %v4614_v26 = vpop.f32.mrf.mxu0 }
 0x23c   : > { %15174 = vst [vmem:[#allocation15_spill] sm:$0xff] %v13248_v19  ;;  %v13251_v0 = vadd.f32 %v4614_v26, %v13106_v52  ;;  %v15178_v52 = vld [vmem:[#allocation4_spill] sm:$0xff]  ;;  %v13272_v26 = vpop.f32.mrf.mxu1 }
 0x23d   : > { %v11154_v9 = vpop.f32.mrf.mxu0  ;;  %v13268_v35 = vsub.s32 %v373_v24, %v15178_v52  ;;  %v5024_v24 = vadd.f32 %v13136_v40, %v13140_v51  ;;  %v13303_v40 = vadd.f32 %v13163_v50, %v13166_v39  ;;  %v13307_v51 = vadd.f32 %v13168_v45, %v13171_v14 }
 0x23e   : > { %15175 = vst [vmem:[#allocation14_spill] sm:$0xff] %v13251_v0  ;;  %v13256_v23 = vadd.f32 %v11154_v9, %v13114_v59  ;;  %v13285_v52 = vpop.f32.mrf.mxu1  ;;  %v13318_v50 = vadd.f32 %v13184_v15, %v13179_v58  ;;  %v13333_v58 = vadd.f32 %v13205_v16, %v13192_v22 }
 0x23f   : > { %v13258_v11 = vpop.f32.mrf.mxu0  ;;  %15182 = vst [vmem:[#allocation7_spill] sm:$0xff] %v13303_v40  ;;  %15183 = vst [vmem:[#allocation19_spill] sm:$0xff] %v13307_v51 }
 0x240   : > { %15176 = vst [vmem:[#allocation23_spill] sm:$0xff] %v13256_v23  ;;  %15177 = vst [vmem:[#allocation24_spill] sm:$0xff] %v13258_v11  ;;  %v5025_v23 = vadd.f32 %v13129_v29, %v13134_v36  ;;  %v13279_v11 = vadd.f32 %v13108_v33, %v13112_v41  ;;  %v13295_v33 = vadd.f32 %v13153_v54, %v13157_v38  ;;  %v13320_v39 = vpop.f32.mrf.mxu1 }
 0x241   : > { %v11209_v1 = vpop.f32.mrf.mxu0  ;;  %v13299_v41 = vadd.f32 %v13159_v21, %v13161_v12  ;;  %v13312_v54 = vadd.f32 %v13176_v25, %v13174_v32  ;;  %15185 = vst [vmem:[#allocation9_spill] sm:$0xff] %v13318_v50  ;;  %v13325_v25 = vadd.f32 %v13189_v20, %v13182_v27  ;;  %15188 = vst [vmem:[#allocation20_spill] sm:$0xff] %v13333_v58 }
 0x242   : > { %v5412_v59 = vadd.f32 %v11209_v1, %v5023_v34  ;;  %15179 = vst [vmem:[#allocation6_spill] sm:$0xff] %v13279_v11  ;;  %15180 = vst [vmem:[#allocation17_spill] sm:$0xff] %v13295_v33 }
 0x243   : > { %v5252_v9 = vpop.f32.mrf.mxu0  ;;  %15181 = vst [vmem:[#allocation16_spill] sm:$0xff] %v13299_v41  ;;  %15184 = vst [vmem:[#allocation18_spill] sm:$0xff] %v13312_v54 }
 0x244   : > { %v5451_v28 = vadd.f32 %v13265_v17, %v5412_v59  ;;  %v5411_v60 = vadd.f32 %v5252_v9, %v5022_v61  ;;  %v13291_v61 = vadd.f32 %v13149_v37, %v13151_v13  ;;  %15186 = vst [vmem:[#allocation8_spill] sm:$0xff] %v13325_v25 }
 0x245   : > { %v11212_v3 = vpop.f32.mrf.mxu0 }
 0x246   : > { %v5531_v34 = vcombine.high %v5451_v28, %v5451_v28  ;;  %v5538_v1 = vrot.slane %v5451_v28, %v13268_v35  ;;  %v5450_v29 = vadd.f32 %v13265_v17, %v5411_v60  ;;  %v5414_v36 = vadd.f32 %v11212_v3, %v5025_v23 }
 0x247   : > { %v5262_v13 = vpop.f32.mrf.mxu0  ;;  %v13329_v60 = vadd.f32 %v13197_v49, %v13187_v31 }
 0x248   : > { %v5545_v48 = vrot.slane %v5531_v34, %v13268_v35  ;;  %v5546_v10 = vcombine.high %v5538_v1, %v5538_v1  ;;  %v5514_v37 = vcombine.high %v5450_v29, %v5450_v29  ;;  %v10199_v38 = vrot.slane %v5538_v1, 9 }
 0x249   : > { %v5521_v21 = vrot.slane %v5450_v29, %v13268_v35  ;;  %v5453_v12 = vadd.f32 %v13265_v17, %v5414_v36  ;;  %v5413_v32 = vadd.f32 %v5262_v13, %v5024_v24  ;;  %15187 = vst [vmem:[#allocation22_spill] sm:$0xff] %v13329_v60  ;;  %v11215_v25 = vpop.f32.mrf.mxu0 }
 0x24a   : > { %v5547_v45 = vcombine.high %v5545_v48, %v5545_v48  ;;  %v10200_v14 = vrot.slane %v5546_v10, 9  ;;  %v10201_v23 = vrot.slane %v5545_v48, 9  ;;  %v5528_v59 = vrot.slane %v5514_v37, %v13268_v35  ;;  %v13336_v37 = vpop.f32.mrf.mxu1 }
 0x24b   : > { %v5529_v9 = vcombine.high %v5521_v21, %v5521_v21  ;;  %v5565_v28 = vcombine.high %v5453_v12, %v5453_v12  ;;  %v5572_v15 = vrot.slane %v5453_v12, %v13268_v35  ;;  %v6574_v34 = vadd.f32 %v10199_v38, %v5538_v1 }
 0x24c   : > { %v10202_v3 = vrot.slane %v5547_v45, 9  ;;  %v6575_v29 = vadd.f32 %v10200_v14, %v5546_v10  ;;  %v10195_v36 = vrot.slane %v5521_v21, 9  ;;  %v6576_v24 = vadd.f32 %v10201_v23, %v5545_v48  ;;  %v4983_v48 = vpop.f32.mrf.mxu1 }
 0x24d   : > { %v5579_v27 = vrot.slane %v5565_v28, %v13268_v35  ;;  %v5580_v20 = vcombine.high %v5572_v15, %v5572_v15  ;;  %v10207_v13 = vrot.slane %v5572_v15, 9  ;;  %v5530_v31 = vcombine.high %v5528_v59, %v5528_v59 }
 0x24e   : > { %v10196_v49 = vrot.slane %v5529_v9, 9  ;;  %v10197_v60 = vrot.slane %v5528_v59, 9  ;;  %v5452_v22 = vadd.f32 %v13265_v17, %v5413_v32  ;;  %v6570_v1 = vadd.f32 %v10195_v36, %v5521_v21 }
 0x24f   : > { %v5581_v16 = vcombine.high %v5579_v27, %v5579_v27  ;;  %v10208_v58 = vrot.slane %v5580_v20, 9  ;;  %v10209_v12 = vrot.slane %v5579_v27, 9  ;;  %v6582_v50 = vadd.f32 %v10207_v13, %v5572_v15 }
 0x250   : > { %v5548_v10 = vcombine.high %v5452_v22, %v5452_v22  ;;  %v5555_v38 = vrot.slane %v5452_v22, %v13268_v35  ;;  %v5416_v14 = vadd.f32 %v11215_v25, %v5027_v62  ;;  %v6577_v0 = vadd.f32 %v10202_v3, %v5547_v45  ;;  %v11198_v25 = vpop.f32.mrf.mxu1 }
 0x251   : > { %v10210_v23 = vrot.slane %v5581_v16, 9  ;;  %v6583_v28 = vadd.f32 %v10208_v58, %v5580_v20  ;;  %v6584_v54 = vadd.f32 %v10209_v12, %v5579_v27  ;;  %v6702_v11 = vadd.f32 %v6582_v50, %v6574_v34  ;;  %v15193_v12 = vld [vmem:[#allocation21_spill] sm:$0xff] }
 0x252   : > { %v5562_v51 = vrot.slane %v5548_v10, %v13268_v35  ;;  %v5563_v40 = vcombine.high %v5555_v38, %v5555_v38  ;;  %v10203_v41 = vrot.slane %v5555_v38, 9  ;;  %v10198_v32 = vrot.slane %v5530_v31, 9  ;;  %v15194_v10 = vld [vmem:[#allocation5_spill] sm:$0xff] }
 0x253   : > { %v6585_v33 = vadd.f32 %v10210_v23, %v5581_v16  ;;  %v13342_v19 = vadd.f32 %v6583_v28, %v6575_v29  ;;  %v13344_v15 = vadd.f32 %v6584_v54, %v6576_v24  ;;  %v6571_v22 = vadd.f32 %v10196_v49, %v5529_v9 }
 0x254   : > { %v5564_v21 = vcombine.high %v5562_v51, %v5562_v51  ;;  %v10204_v36 = vrot.slane %v5563_v40, 9  ;;  %v10205_v13 = vrot.slane %v5562_v51, 9  ;;  %v6578_v62 = vadd.f32 %v10203_v41, %v5555_v38 }
 0x255   : > { %v6572_v58 = vadd.f32 %v10197_v60, %v5528_v59  ;;  %v6705_v27 = vadd.f32 %v6585_v33, %v6577_v0  ;;  %v5455_v50 = vadd.f32 %v13265_v17, %v5416_v14  ;;  %v13349_v29 = vadd.f32 %v13213_v30, %v13195_v56  ;;  %v5272_v33 = vpop.f32.mrf.mxu0 }
 0x256   : > { %v10206_v45 = vrot.slane %v5564_v21, 9  ;;  %v6579_v3 = vadd.f32 %v10204_v36, %v5563_v40  ;;  %v6580_v34 = vadd.f32 %v10205_v13, %v5562_v51  ;;  %v6698_v20 = vadd.f32 %v6578_v62, %v6570_v1 }
 0x257   : > { %v13353_v54 = vadd.f32 %v13221_v55, %v13200_v53  ;;  %v13357_v41 = vadd.f32 %v13229_v42, %v13203_v46  ;;  %v6573_v0 = vadd.f32 %v10198_v32, %v5530_v31  ;;  %v13363_v60 = vadd.f32 %v13237_v7, %v13208_v44  ;;  %v4993_v46 = vpop.f32.mrf.mxu1 }
 0x258   : > { %v6581_v59 = vadd.f32 %v10206_v45, %v5564_v21  ;;  %v6699_v9 = vadd.f32 %v6579_v3, %v6571_v22  ;;  %v6700_v40 = vadd.f32 %v6580_v34, %v6572_v58  ;;  %v13359_v51 = vmul.f32 0.25, %v6698_v20 }
 0x259   : > { %v13367_v56 = vadd.f32 %v13245_v18, %v13211_v57  ;;  %v13371_v53 = vadd.f32 %v13253_v4, %v13216_v5  ;;  %v5599_v30 = vcombine.high %v5455_v50, %v5455_v50  ;;  %v13375_v55 = vadd.f32 %v13272_v26, %v13219_v2  ;;  %v11218_v4 = vpop.f32.mrf.mxu0  ;;  %v11201_v1 = vpop.f32.mrf.mxu1 }
 0x25a   : > { %15189 = vst [vmem:[#allocation11_spill] sm:$0xff] %v13359_v51  ;;  %v6701_v42 = vadd.f32 %v6581_v59, %v6573_v0  ;;  %v13377_v24 = vmul.f32 0.25, %v6699_v9  ;;  %v13379_v44 = vmul.f32 0.25, %v6700_v40  ;;  %v6827_v57 = vmul.f32 %v13359_v51, %v13359_v51  ;;  %v15202_v40 = vld [vmem:[#allocation16_spill] sm:$0xff] }
 0x25b   : > { %v5606_v7 = vrot.slane %v5455_v50, %v13268_v35  ;;  %v5613_v5 = vrot.slane %v5599_v30, %v13268_v35  ;;  %v5415_v18 = vadd.f32 %v5272_v33, %v13291_v61  ;;  %v13388_v31 = vadd.f32 %v13285_v52, %v13224_v6 }
 0x25c   : > { %15190 = vst [vmem:[#allocation10_spill] sm:$0xff] %v13377_v24  ;;  %15191 = vst [vmem:[#allocation25_spill] sm:$0xff] %v13379_v44  ;;  %v13390_v2 = vmul.f32 0.25, %v6701_v42  ;;  %v6828_v26 = vmul.f32 %v13377_v24, %v13377_v24  ;;  %v6829_v49 = vmul.f32 %v13379_v44, %v13379_v44  ;;  %v13398_v16 = vadd.f32 %v13320_v39, %v13227_v8 }
 0x25d   : > { %v13402_v61 = vadd.f32 %v13336_v37, %v13232_v43  ;;  %v13405_v6 = vadd.f32 %v4983_v48, %v15193_v12  ;;  %v13408_v52 = vadd.f32 %v11198_v25, %v13240_v47  ;;  %v5614_v14 = vcombine.high %v5606_v7, %v5606_v7  ;;  %v5282_v48 = vpop.f32.mrf.mxu0  ;;  %v15196_v47 = vld [vmem:[#allocation15_spill] sm:$0xff]  ;;  %v15199_v25 = vld [vmem:[#allocation17_spill] sm:$0xff] }
 0x25e   : > { %15192 = vst [vmem:[#allocation26_spill] sm:$0xff] %v13390_v2  ;;  %v6962_v38 = vrot.slane %v6828_v26, %v15194_v10  ;;  %v5615_v23 = vcombine.high %v5613_v5, %v5613_v5  ;;  %v5454_v28 = vadd.f32 %v13265_v17, %v5415_v18  ;;  %v13413_v8 = vadd.f32 %v4993_v46, %v13243_v63 }
 0x25f   : > { %v13415_v39 = vmul.f32 0.25, %v6702_v11  ;;  %v6830_v43 = vmul.f32 %v13390_v2, %v13390_v2  ;;  %v6958_v37 = vrot.slane %v6827_v57, %v15194_v10  ;;  %v13421_v32 = vadd.f32 %v11201_v1, %v15196_v47  ;;  %v11221_v33 = vpop.f32.mrf.mxu0 }
 0x260   : > { %v6966_v21 = vrot.slane %v6829_v49, %v15194_v10  ;;  %v5582_v36 = vcombine.high %v5454_v28, %v5454_v28  ;;  %v5589_v13 = vrot.slane %v5454_v28, %v13268_v35  ;;  %v13426_v62 = vmul.f32 0.25, %v13342_v19  ;;  %v15203_v49 = vld [vmem:[#allocation7_spill] sm:$0xff] }
 0x261   : > { %15195 = vst [vmem:[#allocation13_spill] sm:$0xff] %v13415_v39  ;;  %15197 = vst [vmem:[#allocation12_spill] sm:$0xff] %v13421_v32  ;;  %v7212_v63 = vsel %vm7211_vm4, %v6962_v38, %v6958_v37  ;;  %v10215_v11 = vrot.slane %v5606_v7, 9  ;;  %v5418_v22 = vadd.f32 %v11218_v4, %v15199_v25  ;;  %v13431_v58 = vmul.f32 0.25, %v13344_v15 }
 0x262   : > { %15198 = vst [vmem:[#allocation27_spill] sm:$0xff] %v13426_v62  ;;  %v10216_v50 = vrot.slane %v5614_v14, 9  ;;  %v10217_v45 = vrot.slane %v5613_v5, 9  ;;  %v10218_v3 = vrot.slane %v5615_v23, 9  ;;  %v13433_v34 = vmul.f32 0.25, %v6705_v27 }
 0x263   : > { %15200 = vst [vmem:[#allocation29_spill] sm:$0xff] %v13431_v58  ;;  %v13437_v20 = vmul.f32 %v13415_v39, %v13415_v39  ;;  %v6970_v19 = vrot.slane %v6830_v43, %v15194_v10  ;;  %v5457_v0 = vadd.f32 %v13265_v17, %v5418_v22  ;;  %v7214_v59 = vsel %vm7213_vm5, %v6966_v21, %v7212_v63 }
 0x264   : > { %15201 = vst [vmem:[#allocation28_spill] sm:$0xff] %v13433_v34  ;;  %v5596_v9 = vrot.slane %v5582_v36, %v13268_v35  ;;  %v5597_v15 = vcombine.high %v5589_v13, %v5589_v13  ;;  %v5417_v46 = vadd.f32 %v5282_v48, %v15202_v40  ;;  %v13446_v27 = vmul.f32 %v13426_v62, %v13426_v62 }
 0x265   : > { %v6590_v30 = vadd.f32 %v10215_v11, %v5606_v7  ;;  %v5633_v42 = vcombine.high %v5457_v0, %v5457_v0  ;;  %v5640_v57 = vrot.slane %v5457_v0, %v13268_v35  ;;  %v6591_v18 = vadd.f32 %v10216_v50, %v5614_v14 }
 0x266   : > { %v6592_v4 = vadd.f32 %v10217_v45, %v5613_v5  ;;  %v6593_v26 = vadd.f32 %v10218_v3, %v5615_v23  ;;  %v5420_v12 = vadd.f32 %v11221_v33, %v15203_v49  ;;  %v7216_v1 = vsel %vm7215_vm6, %v6970_v19, %v7214_v59  ;;  %v5003_v49 = vpop.f32.mrf.mxu1 }
 0x267   : > { %v5647_v38 = vrot.slane %v5633_v42, %v13268_v35  ;;  %v5648_v28 = vcombine.high %v5640_v57, %v5640_v57  ;;  %v10223_v43 = vrot.slane %v5640_v57, 9  ;;  %v5598_v37 = vcombine.high %v5596_v9, %v5596_v9 }
 0x268   : > { %v10211_v48 = vrot.slane %v5589_v13, 9  ;;  %v10212_v47 = vrot.slane %v5597_v15, 9  ;;  %v5456_v7 = vadd.f32 %v13265_v17, %v5417_v46  ;;  %v10213_v5 = vrot.slane %v5596_v9, 9 }
 0x269   : > { %v5649_v21 = vcombine.high %v5647_v38, %v5647_v38  ;;  %v10224_v36 = vrot.slane %v5648_v28, 9  ;;  %v10225_v63 = vrot.slane %v5647_v38, 9  ;;  %v6598_v14 = vadd.f32 %v10223_v43, %v5640_v57 }
 0x26a   : > { %v5616_v23 = vcombine.high %v5456_v7, %v5456_v7  ;;  %v5623_v11 = vrot.slane %v5456_v7, %v13268_v35  ;;  %v5459_v25 = vadd.f32 %v13265_v17, %v5420_v12  ;;  %v6586_v19 = vadd.f32 %v10211_v48, %v5589_v13  ;;  %v5292_v12 = vpop.f32.mrf.mxu0 }
 0x26b   : > { %v10226_v22 = vrot.slane %v5649_v21, 9  ;;  %v6599_v50 = vadd.f32 %v10224_v36, %v5648_v28  ;;  %v6600_v45 = vadd.f32 %v10225_v63, %v5647_v38  ;;  %v6710_v3 = vadd.f32 %v6598_v14, %v6590_v30  ;;  %v11204_v14 = vpop.f32.mrf.mxu1 }
 0x26c   : > { %v5630_v0 = vrot.slane %v5616_v23, %v13268_v35  ;;  %v5631_v33 = vcombine.high %v5623_v11, %v5623_v11  ;;  %v10219_v59 = vrot.slane %v5623_v11, 9  ;;  %v10214_v40 = vrot.slane %v5598_v37, 9 }
 0x26d   : > { %v6601_v46 = vadd.f32 %v10226_v22, %v5649_v21  ;;  %v6711_v42 = vadd.f32 %v6599_v50, %v6591_v18  ;;  %v6712_v57 = vadd.f32 %v6600_v45, %v6592_v4  ;;  %v6587_v2 = vadd.f32 %v10212_v47, %v5597_v15  ;;  %v15212_v45 = vld [vmem:[#allocation24_spill] sm:$0xff] }
 0x26e   : > { %v5632_v43 = vcombine.high %v5630_v0, %v5630_v0  ;;  %v10220_v62 = vrot.slane %v5631_v33, 9  ;;  %v10221_v7 = vrot.slane %v5630_v0, 9  ;;  %v6594_v39 = vadd.f32 %v10219_v59, %v5623_v11  ;;  %v15205_v11 = vld [vmem:[#allocation19_spill] sm:$0xff] }
 0x26f   : > { %v6588_v44 = vadd.f32 %v10213_v5, %v5596_v9  ;;  %v6713_v28 = vadd.f32 %v6601_v46, %v6593_v26  ;;  %v5667_v38 = vcombine.high %v5459_v25, %v5459_v25  ;;  %v13458_v63 = vmul.f32 %v13431_v58, %v13431_v58 }
 0x270   : > { %v10222_v30 = vrot.slane %v5632_v43, 9  ;;  %v6595_v13 = vadd.f32 %v10220_v62, %v5631_v33  ;;  %v6596_v48 = vadd.f32 %v10221_v7, %v5630_v0  ;;  %v6706_v36 = vadd.f32 %v6594_v39, %v6586_v19  ;;  %v11224_v62 = vpop.f32.mrf.mxu0 }
 0x271   : > { %v6974_v18 = vrot.slane %v13437_v20, %v15194_v10  ;;  %v6978_v4 = vrot.slane %v13446_v27, %v15194_v10  ;;  %v6589_v21 = vadd.f32 %v10214_v40, %v5598_v37  ;;  %v5674_v47 = vrot.slane %v5459_v25, %v13268_v35  ;;  %v15211_v25 = vld [vmem:[#allocation6_spill] sm:$0xff] }
 0x272   : > { %v6597_v15 = vadd.f32 %v10222_v30, %v5632_v43  ;;  %v6707_v9 = vadd.f32 %v6595_v13, %v6587_v2  ;;  %v6708_v26 = vadd.f32 %v6596_v48, %v6588_v44  ;;  %v13466_v5 = vmul.f32 0.25, %v6706_v36  ;;  %v15209_v2 = vld [vmem:[#allocation14_spill] sm:$0xff] }
 0x273   : > { %v7218_v39 = vsel %vm7217_vm7, %v6974_v18, %v7216_v1  ;;  %v5681_v23 = vrot.slane %v5667_v38, %v13268_v35  ;;  %v5419_v22 = vadd.f32 %v5292_v12, %v15205_v11  ;;  %v13470_v20 = vmul.f32 0.25, %v6710_v3  ;;  %v15213_v1 = vld [vmem:[#allocation23_spill] sm:$0xff] }
 0x274   : > { %15204 = vst [vmem:[#allocation30_spill] sm:$0xff] %v13466_v5  ;;  %v6709_v50 = vadd.f32 %v6597_v15, %v6589_v21  ;;  %v13472_v27 = vmul.f32 0.25, %v6707_v9  ;;  %v13474_v37 = vmul.f32 0.25, %v6708_v26  ;;  %v13477_v44 = vadd.f32 %v5003_v49, %v15209_v2  ;;  %v5302_v49 = vpop.f32.mrf.mxu0  ;;  %v15217_v21 = vld [vmem:[#allocation9_spill] sm:$0xff] }
 0x275   : > { %15206 = vst [vmem:[#allocation31_spill] sm:$0xff] %v13470_v20  ;;  %v13481_v19 = vadd.f32 %v15212_v45, %v15211_v25  ;;  %v13484_v0 = vadd.f32 %v11204_v14, %v15213_v1  ;;  %v13488_v33 = vmul.f32 %v13433_v34, %v13433_v34  ;;  %v13493_v59 = vsel %vm7219_vm8, %v6978_v4, %v7218_v39 }
 0x276   : > { %15207 = vst [vmem:[#allocation21_spill] sm:$0xff] %v13472_v27  ;;  %15208 = vst [vmem:[#allocation5_spill] sm:$0xff] %v13474_v37  ;;  %v6836_v40 = vmul.f32 %v13472_v27, %v13472_v27  ;;  %v5682_v46 = vcombine.high %v5674_v47, %v5674_v47  ;;  %v13497_v43 = vmul.f32 0.25, %v6711_v42  ;;  %v13499_v7 = vmul.f32 0.25, %v6712_v57  ;;  %v15216_v57 = vld [vmem:[#allocation18_spill] sm:$0xff] }
 0x277   : > { %15210 = vst [vmem:[#allocation15_spill] sm:$0xff] %v13477_v44  ;;  %15214 = vst [vmem:[#allocation17_spill] sm:$0xff] %v13484_v0  ;;  %v6835_v12 = vmul.f32 %v13466_v5, %v13466_v5  ;;  %v5683_v38 = vcombine.high %v5681_v23, %v5681_v23  ;;  %v13505_v30 = vmul.f32 %v13470_v20, %v13470_v20  ;;  %v13507_v13 = vmul.f32 0.25, %v6709_v50 }
 0x278   : > { %v6837_v48 = vmul.f32 %v13474_v37, %v13474_v37  ;;  %v5458_v36 = vadd.f32 %v13265_v17, %v5419_v22  ;;  %v6994_v42 = vrot.slane %v6836_v40, %v15194_v10  ;;  %v10231_v18 = vrot.slane %v5674_v47, 9 }
 0x279   : > { %15215 = vst [vmem:[#allocation16_spill] sm:$0xff] %v13507_v13  ;;  %v5422_v4 = vadd.f32 %v11224_v62, %v15216_v57  ;;  %v5421_v14 = vadd.f32 %v5302_v49, %v15217_v21  ;;  %v10232_v15 = vrot.slane %v5682_v46, 9  ;;  %v10233_v9 = vrot.slane %v5681_v23, 9  ;;  %v11227_v57 = vpop.f32.mrf.mxu0 }
 0x27a   : > { %v5650_v26 = vcombine.high %v5458_v36, %v5458_v36  ;;  %v5657_v39 = vrot.slane %v5458_v36, %v13268_v35  ;;  %v6990_v11 = vrot.slane %v6835_v12, %v15194_v10  ;;  %v10234_v50 = vrot.slane %v5683_v38, 9 }
 0x27b   : > { %v5461_v2 = vadd.f32 %v13265_v17, %v5422_v4  ;;  %v5460_v25 = vadd.f32 %v13265_v17, %v5421_v14  ;;  %v13519_v22 = vmul.f32 0.25, %v6713_v28  ;;  %v6838_v45 = vmul.f32 %v13507_v13, %v13507_v13 }
 0x27c   : > { %v6998_v62 = vrot.slane %v6837_v48, %v15194_v10  ;;  %v5664_v1 = vrot.slane %v5650_v26, %v13268_v35  ;;  %v7225_v40 = vsel %vm7211_vm4, %v6994_v42, %v6990_v11  ;;  %v5665_v49 = vcombine.high %v5657_v39, %v5657_v39  ;;  %v15219_v11 = vld [vmem:[#allocation8_spill] sm:$0xff] }
 0x27d   : > { %15218 = vst [vmem:[#allocation7_spill] sm:$0xff] %v13519_v22  ;;  %v5701_v36 = vcombine.high %v5461_v2, %v5461_v2  ;;  %v5708_v12 = vrot.slane %v5461_v2, %v13268_v35  ;;  %v6606_v21 = vadd.f32 %v10231_v18, %v5674_v47  ;;  %v6607_v4 = vadd.f32 %v10232_v15, %v5682_v46 }
 0x27e   : > { %v6608_v3 = vadd.f32 %v10233_v9, %v5681_v23  ;;  %v10227_v14 = vrot.slane %v5657_v39, 9  ;;  %v6609_v28 = vadd.f32 %v10234_v50, %v5683_v38  ;;  %v5684_v13 = vcombine.high %v5460_v25, %v5460_v25 }
 0x27f   : > { %v5715_v20 = vrot.slane %v5701_v36, %v13268_v35  ;;  %v5716_v37 = vcombine.high %v5708_v12, %v5708_v12  ;;  %v7002_v48 = vrot.slane %v6838_v45, %v15194_v10  ;;  %v7226_v26 = vsel %vm7213_vm5, %v6998_v62, %v7225_v40 }
 0x280   : > { %v5666_v42 = vcombine.high %v5664_v1, %v5664_v1  ;;  %v5424_v27 = vadd.f32 %v11227_v57, %v15219_v11  ;;  %v10228_v34 = vrot.slane %v5665_v49, 9  ;;  %v10239_v58 = vrot.slane %v5708_v12, 9 }
 0x281   : > { %v5717_v2 = vcombine.high %v5715_v20, %v5715_v20  ;;  %v10240_v47 = vrot.slane %v5716_v37, 9  ;;  %v10229_v46 = vrot.slane %v5664_v1, 9  ;;  %v6602_v23 = vadd.f32 %v10227_v14, %v5657_v39 }
 0x282   : > { %v10241_v18 = vrot.slane %v5715_v20, 9  ;;  %v5691_v38 = vrot.slane %v5460_v25, %v13268_v35  ;;  %v6614_v9 = vadd.f32 %v10239_v58, %v5708_v12  ;;  %v5698_v45 = vrot.slane %v5684_v13, %v13268_v35 }
 0x283   : > { %v10242_v15 = vrot.slane %v5717_v2, 9  ;;  %v6615_v50 = vadd.f32 %v10240_v47, %v5716_v37  ;;  %v10230_v36 = vrot.slane %v5666_v42, 9  ;;  %v6840_v25 = vmul.f32 %v13497_v43, %v13497_v43 }
 0x284   : > { %v6616_v62 = vadd.f32 %v10241_v18, %v5715_v20  ;;  %v5699_v40 = vcombine.high %v5691_v38, %v5691_v38  ;;  %v10235_v24 = vrot.slane %v5691_v38, 9  ;;  %v6718_v11 = vadd.f32 %v6614_v9, %v6606_v21 }
 0x285   : > { %v6617_v57 = vadd.f32 %v10242_v15, %v5717_v2  ;;  %v6719_v5 = vadd.f32 %v6615_v50, %v6607_v4  ;;  %v5700_v51 = vcombine.high %v5698_v45, %v5698_v45  ;;  %v10237_v39 = vrot.slane %v5698_v45, 9  ;;  %v15223_v50 = vld [vmem:[#allocation22_spill] sm:$0xff] }
 0x286   : > { %v6720_v0 = vadd.f32 %v6616_v62, %v6608_v3  ;;  %v10236_v44 = vrot.slane %v5699_v40, 9  ;;  %v6610_v14 = vadd.f32 %v10235_v24, %v5691_v38  ;;  %v6603_v32 = vadd.f32 %v10228_v34, %v5665_v49  ;;  %v5013_v3 = vpop.f32.mrf.mxu1 }
 0x287   : > { %v6721_v58 = vadd.f32 %v6617_v57, %v6609_v28  ;;  %v10238_v37 = vrot.slane %v5700_v51, 9  ;;  %v6604_v12 = vadd.f32 %v10229_v46, %v5664_v1  ;;  %v6612_v47 = vadd.f32 %v10237_v39, %v5698_v45  ;;  %v5312_v28 = vpop.f32.mrf.mxu0 }
 0x288   : > { %v6611_v13 = vadd.f32 %v10236_v44, %v5699_v40  ;;  %v6714_v20 = vadd.f32 %v6610_v14, %v6602_v23  ;;  %v7227_v18 = vsel %vm7215_vm6, %v7002_v48, %v7226_v26  ;;  %v6605_v2 = vadd.f32 %v10230_v36, %v5666_v42 }
 0x289   : > { %v6613_v21 = vadd.f32 %v10238_v37, %v5700_v51  ;;  %v5463_v4 = vadd.f32 %v13265_v17, %v5424_v27  ;;  %v6841_v24 = vmul.f32 %v13499_v7, %v13499_v7  ;;  %v7006_v38 = vrot.slane %v13505_v30, %v15194_v10  ;;  %v11230_v36 = vpop.f32.mrf.mxu0 }
 0x28a   : > { %v6715_v34 = vadd.f32 %v6611_v13, %v6603_v32  ;;  %v6716_v49 = vadd.f32 %v6612_v47, %v6604_v12  ;;  %v6986_v44 = vrot.slane %v13488_v33, %v15194_v10  ;;  %v15220_v1 = vrot.slane %v13458_v63, %v15194_v10 }
 0x28b   : > { %v6717_v27 = vadd.f32 %v6613_v21, %v6605_v2  ;;  %v13548_v48 = vmul.f32 0.25, %v6714_v20  ;;  %v13552_v26 = vmul.f32 %v13519_v22, %v13519_v22  ;;  %v7228_v32 = vsel %vm7217_vm7, %v7006_v38, %v7227_v18  ;;  %v15226_v20 = vld [vmem:[#allocation20_spill] sm:$0xff] }
 0x28c   : > { %v7222_v51 = vsel %vm7221_vm9, %v15220_v1, %v13493_v59  ;;  %v13555_v30 = vmul.f32 0.25, %v6715_v34  ;;  %v13557_v42 = vmul.f32 0.25, %v6716_v49  ;;  %v13560_v33 = vadd.f32 %v5013_v3, %v13481_v19  ;;  %v5322_v49 = vpop.f32.mrf.mxu0 }
 0x28d   : > { %v7010_v63 = vrot.slane %v6840_v25, %v15194_v10  ;;  %v5735_v46 = vcombine.high %v5463_v4, %v5463_v4  ;;  %v5742_v59 = vrot.slane %v5463_v4, %v13268_v35  ;;  %v13565_v23 = vsel %vm7223_vm10, %v6986_v44, %v7222_v51 }
 0x28e   : > { %15221 = vst [vmem:[#allocation19_spill] sm:$0xff] %v13555_v30  ;;  %15222 = vst [vmem:[#allocation14_spill] sm:$0xff] %v13557_v42  ;;  %v7014_v15 = vrot.slane %v6841_v24, %v15194_v10  ;;  %v6844_v9 = vmul.f32 %v13555_v30, %v13555_v30  ;;  %v5423_v45 = vadd.f32 %v5312_v28, %v15223_v50  ;;  %v13572_v19 = vmul.f32 0.25, %v6717_v27 }
 0x28f   : > { %v7229_v62 = vsel %vm7219_vm8, %v7010_v63, %v7228_v32  ;;  %v6843_v40 = vmul.f32 %v13548_v48, %v13548_v48  ;;  %v5749_v57 = vrot.slane %v5735_v46, %v13268_v35  ;;  %v6845_v14 = vmul.f32 %v13557_v42, %v13557_v42 }
 0x290   : > { %15224 = vst [vmem:[#allocation6_spill] sm:$0xff] %v13572_v19  ;;  %v5750_v25 = vcombine.high %v5742_v59, %v5742_v59  ;;  %v5462_v37 = vadd.f32 %v13265_v17, %v5423_v45  ;;  %v13582_v12 = vmul.f32 0.25, %v6718_v11  ;;  %v7026_v13 = vrot.slane %v6844_v9, %v15194_v10 }
 0x291   : > { %v5751_v47 = vcombine.high %v5749_v57, %v5749_v57  ;;  %v5426_v18 = vadd.f32 %v11230_v36, %v15226_v20  ;;  %v13587_v2 = vsel %vm7221_vm9, %v7014_v15, %v7229_v62  ;;  %v13589_v21 = vmul.f32 0.25, %v6719_v5  ;;  %v11233_v62 = vpop.f32.mrf.mxu0 }
 0x292   : > { %15225 = vst [vmem:[#allocation24_spill] sm:$0xff] %v13582_v12  ;;  %v5718_v4 = vcombine.high %v5462_v37, %v5462_v37  ;;  %v5725_v3 = vrot.slane %v5462_v37, %v13268_v35  ;;  %v13592_v24 = vmul.f32 0.25, %v6720_v0  ;;  %v6846_v38 = vmul.f32 %v13572_v19, %v13572_v19 }
 0x293   : > { %15227 = vst [vmem:[#allocation23_spill] sm:$0xff] %v13589_v21  ;;  %v7022_v11 = vrot.slane %v6843_v40, %v15194_v10  ;;  %v10247_v34 = vrot.slane %v5742_v59, 9  ;;  %v13597_v28 = vmul.f32 0.25, %v6721_v58  ;;  %v7030_v44 = vrot.slane %v6845_v14, %v15194_v10 }
 0x294   : > { %v10248_v1 = vrot.slane %v5750_v25, 9  ;;  %v10249_v51 = vrot.slane %v5749_v57, 9  ;;  %v13602_v5 = vmul.f32 %v13582_v12, %v13582_v12  ;;  %v10250_v27 = vrot.slane %v5751_v47, 9 }
 0x295   : > { %15228 = vst [vmem:[#allocation18_spill] sm:$0xff] %v13597_v28  ;;  %v7232_v0 = vsel %vm7211_vm4, %v7026_v13, %v7022_v11  ;;  %v5465_v32 = vadd.f32 %v13265_v17, %v5426_v18  ;;  %v13608_v63 = vmul.f32 %v13589_v21, %v13589_v21  ;;  %v5732_v58 = vrot.slane %v5718_v4, %v13268_v35 }
 0x296   : > { %v5733_v46 = vcombine.high %v5725_v3, %v5725_v3  ;;  %v5425_v15 = vadd.f32 %v5322_v49, %v13349_v29  ;;  %v7034_v9 = vrot.slane %v6846_v38, %v15194_v10  ;;  %v6622_v50 = vadd.f32 %v10247_v34, %v5742_v59 }
 0x297   : > { %v5769_v45 = vcombine.high %v5465_v32, %v5465_v32  ;;  %v5776_v36 = vrot.slane %v5465_v32, %v13268_v35  ;;  %v7233_v40 = vsel %vm7213_vm5, %v7030_v44, %v7232_v0  ;;  %v6623_v14 = vadd.f32 %v10248_v1, %v5750_v25 }
 0x298   : > { %v6624_v37 = vadd.f32 %v10249_v51, %v5749_v57  ;;  %v10243_v13 = vrot.slane %v5725_v3, 9  ;;  %v6625_v20 = vadd.f32 %v10250_v27, %v5751_v47  ;;  %v5734_v39 = vcombine.high %v5732_v58, %v5732_v58 }
 0x299   : > { %v5783_v18 = vrot.slane %v5769_v45, %v13268_v35  ;;  %v5784_v11 = vcombine.high %v5776_v36, %v5776_v36  ;;  %v10255_v4 = vrot.slane %v5776_v36, 9  ;;  %v10244_v21 = vrot.slane %v5733_v46, 9 }
 0x29a   : > { %v5464_v29 = vadd.f32 %v13265_v17, %v5425_v15  ;;  %v5428_v59 = vadd.f32 %v11233_v62, %v13353_v54  ;;  %v10245_v12 = vrot.slane %v5732_v58, 9  ;;  %v6618_v44 = vadd.f32 %v10243_v13, %v5725_v3 }
 0x29b   : > { %v5785_v38 = vcombine.high %v5783_v18, %v5783_v18  ;;  %v10256_v34 = vrot.slane %v5784_v11, 9  ;;  %v10257_v49 = vrot.slane %v5783_v18, 9  ;;  %v6630_v32 = vadd.f32 %v10255_v4, %v5776_v36 }
 0x29c   : > { %v5752_v25 = vcombine.high %v5464_v29, %v5464_v29  ;;  %v5759_v57 = vrot.slane %v5464_v29, %v13268_v35  ;;  %v10246_v27 = vrot.slane %v5734_v39, 9  ;;  %v5467_v30 = vadd.f32 %v13265_v17, %v5428_v59 }
 0x29d   : > { %v10258_v47 = vrot.slane %v5785_v38, 9  ;;  %v6631_v1 = vadd.f32 %v10256_v34, %v5784_v11  ;;  %v6632_v51 = vadd.f32 %v10257_v49, %v5783_v18  ;;  %v6726_v0 = vadd.f32 %v6630_v32, %v6622_v50 }
 0x29e   : > { %v5766_v45 = vrot.slane %v5752_v25, %v13268_v35  ;;  %v5767_v19 = vcombine.high %v5759_v57, %v5759_v57  ;;  %v10251_v15 = vrot.slane %v5759_v57, 9  ;;  %v7234_v29 = vsel %vm7215_vm6, %v7034_v9, %v7233_v40  ;;  %v5332_v25 = vpop.f32.mrf.mxu0 }
 0x29f   : > { %v6633_v42 = vadd.f32 %v10258_v47, %v5785_v38  ;;  %v6727_v54 = vadd.f32 %v6631_v1, %v6623_v14  ;;  %v6728_v62 = vadd.f32 %v6632_v51, %v6624_v37  ;;  %v6619_v22 = vadd.f32 %v10244_v21, %v5733_v46 }
 0x2a0   : > { %v5768_v36 = vcombine.high %v5766_v45, %v5766_v45  ;;  %v10252_v4 = vrot.slane %v5767_v19, 9  ;;  %v10253_v3 = vrot.slane %v5766_v45, 9  ;;  %v6626_v13 = vadd.f32 %v10251_v15, %v5759_v57 }
 0x2a1   : > { %v6620_v11 = vadd.f32 %v10245_v12, %v5732_v58  ;;  %v6729_v18 = vadd.f32 %v6633_v42, %v6625_v20  ;;  %v13624_v14 = vmul.f32 %v13592_v24, %v13592_v24  ;;  %v13628_v37 = vmul.f32 %v13597_v28, %v13597_v28 }
 0x2a2   : > { %v10254_v50 = vrot.slane %v5768_v36, 9  ;;  %v6627_v34 = vadd.f32 %v10252_v4, %v5767_v19  ;;  %v6628_v49 = vadd.f32 %v10253_v3, %v5766_v45  ;;  %v6722_v32 = vadd.f32 %v6626_v13, %v6618_v44 }
 0x2a3   : > { %v7038_v59 = vrot.slane %v13602_v5, %v15194_v10  ;;  %v5803_v9 = vcombine.high %v5467_v30, %v5467_v30  ;;  %v6621_v21 = vadd.f32 %v10246_v27, %v5734_v39  ;;  %v5810_v40 = vrot.slane %v5467_v30, %v13268_v35  ;;  %v11236_v5 = vpop.f32.mrf.mxu0 }
 0x2a4   : > { %v6629_v12 = vadd.f32 %v10254_v50, %v5768_v36  ;;  %v6723_v42 = vadd.f32 %v6627_v34, %v6619_v22  ;;  %v6724_v58 = vadd.f32 %v6628_v49, %v6620_v11  ;;  %v13633_v46 = vmul.f32 0.25, %v6722_v32 }
 0x2a5   : > { %v7235_v19 = vsel %vm7217_vm7, %v7038_v59, %v7234_v29  ;;  %v5427_v20 = vadd.f32 %v5332_v25, %v13357_v41  ;;  %v13637_v38 = vmul.f32 0.25, %v6726_v0  ;;  %v13645_v22 = vsel %vm1716_vm1, %v13565_v23, 0.0  ;;  %v5342_v3 = vpop.f32.mrf.mxu0 }
 0x2a6   : > { %v6725_v44 = vadd.f32 %v6629_v12, %v6621_v21  ;;  %v13639_v57 = vmul.f32 0.25, %v6723_v42  ;;  %v13641_v47 = vmul.f32 0.25, %v6724_v58  ;;  %v15232_v39 = vrot.slane %v13552_v26, %v15194_v10 }
 0x2a7   : > { %15229 = vst [vmem:[#allocation9_spill] sm:$0xff] %v13637_v38  ;;  %v7042_v41 = vrot.slane %v13608_v63, %v15194_v10  ;;  %v5817_v1 = vrot.slane %v5803_v9, %v13268_v35  ;;  %v13661_v23 = vmul.f32 0.25, %v6727_v54  ;;  %v6851_v63 = vmul.f32 %v13633_v46, %v13633_v46 }
 0x2a8   : > { %15230 = vst [vmem:[#allocation8_spill] sm:$0xff] %v13639_v57  ;;  %15231 = vst [vmem:[#allocation22_spill] sm:$0xff] %v13641_v47  ;;  %v13652_v30 = vsel %vm7223_vm10, %v15232_v39, %v13587_v2  ;;  %v6852_v27 = vmul.f32 %v13639_v57, %v13639_v57  ;;  %v13668_v2 = vmul.f32 0.25, %v6728_v62  ;;  %v5818_v45 = vcombine.high %v5810_v40, %v5810_v40 }
 0x2a9   : > { %15233 = vst [vmem:[#allocation20_spill] sm:$0xff] %v13661_v23  ;;  %v13666_v26 = vsel %vm7219_vm8, %v7042_v41, %v7235_v19  ;;  %v13674_v15 = vmul.f32 %v13637_v38, %v13637_v38  ;;  %v13676_v36 = vmul.f32 0.25, %v6725_v44  ;;  %v6853_v54 = vmul.f32 %v13641_v47, %v13641_v47 }
 0x2aa   : > { %15234 = vst [vmem:[#allocation32_spill] sm:$0xff] %v13668_v2  ;;  %v5466_v4 = vadd.f32 %v13265_v17, %v5427_v20  ;;  %v13681_v13 = vmul.f32 0.25, %v6729_v18  ;;  %v7058_v62 = vrot.slane %v6852_v27, %v15194_v10  ;;  %v5819_v29 = vcombine.high %v5817_v1, %v5817_v1 }
 0x2ab   : > { %15235 = vst [vmem:[#allocation33_spill] sm:$0xff] %v13676_v36  ;;  %v5430_v11 = vadd.f32 %v11236_v5, %v13363_v60  ;;  %v13687_v50 = vmul.f32 %v13661_v23, %v13661_v23  ;;  %v10263_v34 = vrot.slane %v5810_v40, 9  ;;  %v7054_v25 = vrot.slane %v6851_v63, %v15194_v10 }
 0x2ac   : > { %v5786_v49 = vcombine.high %v5466_v4, %v5466_v4  ;;  %v5793_v32 = vrot.slane %v5466_v4, %v13268_v35  ;;  %v10264_v59 = vrot.slane %v5818_v45, 9  ;;  %v5429_v18 = vadd.f32 %v5342_v3, %v13367_v56 }
 0x2ad   : > { %v5469_v9 = vadd.f32 %v13265_v17, %v5430_v11  ;;  %v6854_v21 = vmul.f32 %v13676_v36, %v13676_v36  ;;  %v7062_v60 = vrot.slane %v6853_v54, %v15194_v10  ;;  %v10265_v12 = vrot.slane %v5817_v1, 9 }
 0x2ae   : > { %v5800_v42 = vrot.slane %v5786_v49, %v13268_v35  ;;  %v7239_v58 = vsel %vm7211_vm4, %v7058_v62, %v7054_v25  ;;  %v10266_v19 = vrot.slane %v5819_v29, 9  ;;  %v13701_v5 = vmul.f32 %v13668_v2, %v13668_v2 }
 0x2af   : > { %v5837_v20 = vcombine.high %v5469_v9, %v5469_v9  ;;  %v5844_v44 = vrot.slane %v5469_v9, %v13268_v35  ;;  %v7070_v56 = vrot.slane %v13674_v15, %v15194_v10  ;;  %v5801_v39 = vcombine.high %v5793_v32, %v5793_v32 }
 0x2b0   : > { %v5468_v41 = vadd.f32 %v13265_v17, %v5429_v18  ;;  %v6638_v27 = vadd.f32 %v10263_v34, %v5810_v40  ;;  %v6639_v63 = vadd.f32 %v10264_v59, %v5818_v45  ;;  %v7066_v3 = vrot.slane %v6854_v21, %v15194_v10  ;;  %v11239_v17 = vpop.f32.mrf.mxu0 }
 0x2b1   : > { %v5851_v54 = vrot.slane %v5837_v20, %v13268_v35  ;;  %v5852_v4 = vcombine.high %v5844_v44, %v5844_v44  ;;  %v7240_v62 = vsel %vm7213_vm5, %v7062_v60, %v7239_v58  ;;  %v6640_v11 = vadd.f32 %v10265_v12, %v5817_v1 }
 0x2b2   : > { %v5802_v49 = vcombine.high %v5800_v42, %v5800_v42  ;;  %v6641_v25 = vadd.f32 %v10266_v19, %v5819_v29  ;;  %v10271_v0 = vrot.slane %v5844_v44, 9  ;;  %v10259_v2 = vrot.slane %v5793_v32, 9  ;;  %v5352_v28 = vpop.f32.mrf.mxu0 }
 0x2b3   : > { %v5853_v9 = vcombine.high %v5851_v54, %v5851_v54  ;;  %v10272_v51 = vrot.slane %v5852_v4, 9  ;;  %v10260_v15 = vrot.slane %v5801_v39, 9  ;;  %v10273_v23 = vrot.slane %v5851_v54, 9 }
 0x2b4   : > { %v5820_v38 = vcombine.high %v5468_v41, %v5468_v41  ;;  %v6646_v45 = vadd.f32 %v10271_v0, %v5844_v44  ;;  %v5827_v59 = vrot.slane %v5468_v41, %v13268_v35  ;;  %v10261_v18 = vrot.slane %v5800_v42, 9 }
 0x2b5   : > { %v10274_v40 = vrot.slane %v5853_v9, 9  ;;  %v6647_v34 = vadd.f32 %v10272_v51, %v5852_v4  ;;  %v10262_v21 = vrot.slane %v5802_v49, 9  ;;  %v6648_v20 = vadd.f32 %v10273_v23, %v5851_v54 }
 0x2b6   : > { %v5834_v1 = vrot.slane %v5820_v38, %v13268_v35  ;;  %v6734_v29 = vadd.f32 %v6646_v45, %v6638_v27  ;;  %v5835_v58 = vcombine.high %v5827_v59, %v5827_v59  ;;  %v10267_v47 = vrot.slane %v5827_v59, 9 }
 0x2b7   : > { %v6649_v60 = vadd.f32 %v10274_v40, %v5853_v9  ;;  %v13711_v12 = vadd.f32 %v6647_v34, %v6639_v63  ;;  %v13713_v19 = vadd.f32 %v6648_v20, %v6640_v11  ;;  %v7241_v51 = vsel %vm7215_vm6, %v7066_v3, %v7240_v62 }
 0x2b8   : > { %v5836_v36 = vcombine.high %v5834_v1, %v5834_v1  ;;  %v10269_v57 = vrot.slane %v5834_v1, 9  ;;  %v6634_v0 = vadd.f32 %v10259_v2, %v5793_v32  ;;  %v10268_v41 = vrot.slane %v5835_v58, 9 }
 0x2b9   : > { %v13716_v44 = vadd.f32 %v6649_v60, %v6641_v25  ;;  %v6636_v23 = vadd.f32 %v10261_v18, %v5800_v42  ;;  %v6642_v38 = vadd.f32 %v10267_v47, %v5827_v59  ;;  %v6635_v27 = vadd.f32 %v10260_v15, %v5801_v39 }
 0x2ba   : > { %v10270_v54 = vrot.slane %v5836_v36, 9  ;;  %v6644_v4 = vadd.f32 %v10269_v57, %v5834_v1  ;;  %v6643_v63 = vadd.f32 %v10268_v41, %v5835_v58  ;;  %v5432_v9 = vadd.f32 %v11239_v17, %v13371_v53 }
 0x2bb   : > { %v5431_v11 = vadd.f32 %v5352_v28, %v13375_v55  ;;  %v6637_v40 = vadd.f32 %v10262_v21, %v5802_v49  ;;  %v6730_v34 = vadd.f32 %v6642_v38, %v6634_v0  ;;  %v15236_v2 = vrot.slane %v13624_v14, %v15194_v10 }
 0x2bc   : > { %v6645_v45 = vadd.f32 %v10270_v54, %v5836_v36  ;;  %v6732_v20 = vadd.f32 %v6644_v4, %v6636_v23  ;;  %v6858_v47 = vmul.f32 %v13681_v13, %v13681_v13  ;;  %v7242_v57 = vsel %vm7217_vm7, %v7070_v56, %v7241_v51 }
 0x2bd   : > { %v7237_v32 = vsel %vm7221_vm9, %v15236_v2, %v13666_v26  ;;  %v6731_v42 = vadd.f32 %v6643_v63, %v6635_v27  ;;  %v7074_v53 = vrot.slane %v13687_v50, %v15194_v10  ;;  %v13730_v28 = vmul.f32 0.25, %v6730_v34  ;;  %v13741_v26 = vld [vmem:[%s14991_s3] ss:$0 sm:$0xff]  ;;  %v11242_v50 = vpop.f32.mrf.mxu0 }
 0x2be   : > { %v6733_v55 = vadd.f32 %v6645_v45, %v6637_v40  ;;  %v13732_v36 = vmul.f32 0.25, %v6732_v20  ;;  %v7078_v39 = vrot.slane %v13701_v5, %v15194_v10  ;;  %v5471_v56 = vadd.f32 %v13741_v26, %v5432_v9 }
 0x2bf   : > { %v13736_v14 = vmul.f32 0.25, %v6731_v42  ;;  %v5470_v3 = vadd.f32 %v13741_v26, %v5431_v11  ;;  %v7243_v62 = vsel %vm7219_vm8, %v7074_v53, %v7242_v57  ;;  %v6859_v25 = vmul.f32 %v13730_v28, %v13730_v28  ;;  %v5362_v38 = vpop.f32.mrf.mxu0 }
 0x2c0   : > { %v13746_v49 = vmul.f32 0.25, %v6733_v55  ;;  %v6861_v5 = vmul.f32 %v13732_v36, %v13732_v36  ;;  %v5871_v17 = vcombine.high %v5471_v56, %v5471_v56  ;;  %v5878_v59 = vrot.slane %v5471_v56, %v13268_v35 }
 0x2c1   : > { %v6860_v15 = vmul.f32 %v13736_v14, %v13736_v14  ;;  %v5854_v18 = vcombine.high %v5470_v3, %v5470_v3  ;;  %v7283_v21 = vsel %vm1716_vm1, %v13652_v30, 0.0  ;;  %v15237_v1 = vrot.slane %v13628_v37, %v15194_v10  ;;  %v11245_v57 = vpop.f32.mrf.mxu0 }
 0x2c2   : > { %v7082_v58 = vrot.slane %v6858_v47, %v15194_v10  ;;  %v5861_v51 = vrot.slane %v5470_v3, %v13268_v35  ;;  %v7244_v0 = vsel %vm7221_vm9, %v7078_v39, %v7243_v62  ;;  %v5885_v23 = vrot.slane %v5871_v17, %v13268_v35 }
 0x2c3   : > { %v7238_v60 = vsel %vm7223_vm10, %v15237_v1, %v7237_v32  ;;  %v7090_v41 = vrot.slane %v6860_v15, %v15194_v10  ;;  %v5886_v54 = vcombine.high %v5878_v59, %v5878_v59  ;;  %v13766_v4 = vmul.f32 0.25, %v6734_v29  ;;  %v5372_v1 = vpop.f32.mrf.mxu0 }
 0x2c4   : > { %v7086_v30 = vrot.slane %v6859_v25, %v15194_v10  ;;  %v5868_v37 = vrot.slane %v5854_v18, %v13268_v35  ;;  %v5434_v27 = vadd.f32 %v11242_v50, %v13388_v31  ;;  %v13773_v63 = vmul.f32 %v13746_v49, %v13746_v49 }
 0x2c5   : > { %15238 = vst [vmem:[#allocation34_spill] sm:$0xff] %v13766_v4  ;;  %v7094_v9 = vrot.slane %v6861_v5, %v15194_v10  ;;  %v5887_v11 = vcombine.high %v5885_v23, %v5885_v23  ;;  %v5869_v40 = vcombine.high %v5861_v51, %v5861_v51  ;;  %v13777_v45 = vadd.f32 %v7283_v21, %v13645_v22 }
 0x2c6   : > { %v7246_v29 = vsel %vm7211_vm4, %v7090_v41, %v7086_v30  ;;  %v10279_v34 = vrot.slane %v5878_v59, 9  ;;  %v10280_v20 = vrot.slane %v5886_v54, 9  ;;  %v13781_v2 = vsel %vm1716_vm1, %v7238_v60, 0.0 }
 0x2c7   : > { %v13784_v31 = vsel %vm7223_vm10, %v7082_v58, %v7244_v0  ;;  %v10281_v32 = vrot.slane %v5885_v23, 9  ;;  %v13786_v47 = vcombine.high %v5868_v37, %v5868_v37  ;;  %v13789_v42 = vmul.f32 0.25, %v13711_v12 }
 0x2c8   : > { %v13793_v22 = vmul.f32 %v13766_v4, %v13766_v4  ;;  %v10282_v53 = vrot.slane %v5887_v11, 9  ;;  %v10275_v55 = vrot.slane %v5861_v51, 9  ;;  %v7098_v39 = vrot.slane %v13773_v63, %v15194_v10 }
 0x2c9   : > { %15239 = vst [vmem:[#allocation35_spill] sm:$0xff] %v13789_v42  ;;  %v7247_v56 = vsel %vm7213_vm5, %v7094_v9, %v7246_v29  ;;  %v10276_v3 = vrot.slane %v5869_v40, 9  ;;  %v5473_v50 = vadd.f32 %v13741_v26, %v5434_v27  ;;  %v6654_v62 = vadd.f32 %v10279_v34, %v5878_v59 }
 0x2ca   : > { %v6655_v25 = vadd.f32 %v10280_v20, %v5886_v54  ;;  %v10277_v5 = vrot.slane %v5868_v37, 9  ;;  %v5433_v12 = vadd.f32 %v5362_v38, %v13398_v16  ;;  %v6656_v15 = vadd.f32 %v10281_v32, %v5885_v23 }
 0x2cb   : > { %v10278_v17 = vrot.slane %v13786_v47, 9  ;;  %v5905_v18 = vcombine.high %v5473_v50, %v5473_v50  ;;  %v5912_v21 = vrot.slane %v5473_v50, %v13268_v35  ;;  %v6657_v60 = vadd.f32 %v10282_v53, %v5887_v11  ;;  %v13820_v50 = vld [vmem:[%s14993_s5] sm:$0xf] }
 0x2cc   : > { %v6650_v58 = vadd.f32 %v10275_v55, %v5861_v51  ;;  %v5472_v0 = vadd.f32 %v13741_v26, %v5433_v12  ;;  %v5436_v41 = vadd.f32 %v11245_v57, %v13402_v61  ;;  %v6651_v30 = vadd.f32 %v10276_v3, %v5869_v40  ;;  %v7872_v40 = vld [vmem:[%s14993_s5 + $0x4] sm:$0xf]  ;;  %v7864_v57 = vld [vmem:[#allocation3 + $0x1] sm:$0xff]  ;;  %15240 = vst [vmem:[#allocation36_spill] sm:$0xff] %v13820_v50 }
 0x2cd   : > { %v5919_v59 = vrot.slane %v5905_v18, %v13268_v35  ;;  %v5920_v54 = vcombine.high %v5912_v21, %v5912_v21  ;;  %v10287_v27 = vrot.slane %v5912_v21, 9  ;;  %v6652_v63 = vadd.f32 %v10277_v5, %v5868_v37  ;;  %v8443_v37 = vld [vmem:[%s14993_s5 + $0x10] sm:$0xf]  ;;  %11255 = vmatprep.subr.msk.mxu1 %vm2166_vm0, %v7872_v40  ;;  %11257 = vmatprep.mubr.msk.f32.mxu1 %vm1716_vm1, %v7864_v57 }
 0x2ce   : > { %v5888_v16 = vcombine.high %v5472_v0, %v5472_v0  ;;  %v5895_v23 = vrot.slane %v5472_v0, %v13268_v35  ;;  %v5435_v38 = vadd.f32 %v5372_v1, %v13405_v6  ;;  %v5475_v61 = vadd.f32 %v13741_v26, %v5436_v41  ;;  %11311 = vmatprep.subr.msk.mxu0 %vm2166_vm0, %v8443_v37 }
 0x2cf   : > { %v5921_v9 = vcombine.high %v5919_v59, %v5919_v59  ;;  %v10288_v29 = vrot.slane %v5920_v54, 9  ;;  %v10289_v34 = vrot.slane %v5919_v59, 9  ;;  %v6662_v11 = vadd.f32 %v10287_v27, %v5912_v21  ;;  %11256 = vmatpush3.msk.msra.mxu1 %vm2166_vm0, %v7872_v40  ;;  %11312 = vmatpush3.msk.msra.mxu0 %vm2166_vm0, %v8443_v37 }
 0x2d0   : > { %v5902_v51 = vrot.slane %v5888_v16, %v13268_v35  ;;  %v5903_v20 = vcombine.high %v5895_v23, %v5895_v23  ;;  %v10283_v32 = vrot.slane %v5895_v23, 9  ;;  %v13825_v1 = vmul.f32 0.25, %v13713_v19  ;;  %11269 = vmatprep.subr.msk.mxu1 %vm2166_vm0, %v13820_v50 }
 0x2d1   : > { %v10290_v6 = vrot.slane %v5921_v9, 9  ;;  %v6663_v53 = vadd.f32 %v10288_v29, %v5920_v54  ;;  %v6664_v55 = vadd.f32 %v10289_v34, %v5919_v59  ;;  %v6742_v3 = vadd.f32 %v6662_v11, %v6654_v62 }
 0x2d2   : > { %v5904_v5 = vcombine.high %v5902_v51, %v5902_v51  ;;  %v10284_v12 = vrot.slane %v5903_v20, 9  ;;  %v10285_v18 = vrot.slane %v5902_v51, 9  ;;  %v6658_v21 = vadd.f32 %v10283_v32, %v5895_v23  ;;  %15241 = vst [vmem:[#allocation37_spill] sm:$0xff] %v13825_v1 }
 0x2d3   : > { %v6665_v62 = vadd.f32 %v10290_v6, %v5921_v9  ;;  %v6743_v0 = vadd.f32 %v6663_v53, %v6655_v25  ;;  %v6744_v41 = vadd.f32 %v6664_v55, %v6656_v15  ;;  %v6864_v23 = vmul.f32 %v13789_v42, %v13789_v42 }
 0x2d4   : > { %v10286_v59 = vrot.slane %v5904_v5, 9  ;;  %v6659_v54 = vadd.f32 %v10284_v12, %v5903_v20  ;;  %v6660_v27 = vadd.f32 %v10285_v18, %v5902_v51  ;;  %v6738_v16 = vadd.f32 %v6658_v21, %v6650_v58 }
 0x2d5   : > { %v7248_v29 = vsel %vm7215_vm6, %v7098_v39, %v7247_v56  ;;  %v6653_v19 = vadd.f32 %v10278_v17, %v13786_v47  ;;  %v6745_v34 = vadd.f32 %v6665_v62, %v6657_v60  ;;  %v13837_v32 = vmul.f32 0.25, %v13716_v44 }
 0x2d6   : > { %v6661_v9 = vadd.f32 %v10286_v59, %v5904_v5  ;;  %v6739_v25 = vadd.f32 %v6659_v54, %v6651_v30  ;;  %v6740_v15 = vadd.f32 %v6660_v27, %v6652_v63  ;;  %v13834_v11 = vmul.f32 0.25, %v6738_v16 }
 0x2d7   : > { %15243 = vst [vmem:[#allocation39_spill] sm:$0xff] %v13837_v32  ;;  %v6865_v51 = vmul.f32 %v13825_v1, %v13825_v1  ;;  %v7102_v58 = vrot.slane %v13793_v22, %v15194_v10  ;;  %v5939_v20 = vcombine.high %v5475_v61, %v5475_v61  ;;  %v5474_v56 = vadd.f32 %v13741_v26, %v5435_v38 }
 0x2d8   : > { %15242 = vst [vmem:[#allocation38_spill] sm:$0xff] %v13834_v11  ;;  %v6741_v40 = vadd.f32 %v6661_v9, %v6653_v19  ;;  %v13843_v39 = vmul.f32 0.25, %v6739_v25  ;;  %v13845_v47 = vmul.f32 0.25, %v6740_v15  ;;  %v13850_v17 = vadd.f32 %v13781_v2, %v13777_v45  ;;  %v11248_v45 = vpop.f32.mrf.mxu0 }
 0x2d9   : > { %v13854_v44 = vsel %vm1716_vm1, %v13784_v31, 0.0  ;;  %v7249_v60 = vsel %vm7217_vm7, %v7102_v58, %v7248_v29  ;;  %v5946_v22 = vrot.slane %v5475_v61, %v13268_v35  ;;  %v7106_v30 = vrot.slane %v6864_v23, %v15194_v10 }
 0x2da   : > { %15244 = vst [vmem:[#allocation40_spill] sm:$0xff] %v13843_v39  ;;  %15245 = vst [vmem:[#allocation41_spill] sm:$0xff] %v13845_v47  ;;  %v13859_v63 = vmul.f32 0.25, %v6741_v40  ;;  %v6867_v37 = vmul.f32 %v13834_v11, %v13834_v11  ;;  %v6868_v38 = vmul.f32 %v13843_v39, %v13843_v39  ;;  %v13867_v2 = vmul.f32 %v13837_v32, %v13837_v32  ;;  %v5382_v29 = vpop.f32.mrf.mxu0 }
 0x2db   : > { %v6869_v31 = vmul.f32 %v13845_v47, %v13845_v47  ;;  %v5953_v61 = vrot.slane %v5939_v20, %v13268_v35  ;;  %v5954_v57 = vcombine.high %v5946_v22, %v5946_v22  ;;  %v7110_v6 = vrot.slane %v6865_v51, %v15194_v10 }
 0x2dc   : > { %15246 = vst [vmem:[#allocation42_spill] sm:$0xff] %v13859_v63  ;;  %v7250_v53 = vsel %vm7219_vm8, %v7106_v30, %v7249_v60  ;;  %v7122_v55 = vrot.slane %v6868_v38, %v15194_v10  ;;  %v5922_v5 = vcombine.high %v5474_v56, %v5474_v56  ;;  %v13875_v12 = vmul.f32 0.25, %v6742_v3 }
 0x2dd   : > { %v13877_v18 = vmul.f32 0.25, %v6743_v0  ;;  %v13879_v21 = vmul.f32 0.25, %v6744_v41  ;;  %v5438_v62 = vadd.f32 %v11248_v45, %v13408_v52  ;;  %v13884_v59 = vmul.f32 %v13859_v63, %v13859_v63 }
 0x2de   : > { %15247 = vst [vmem:[#allocation43_spill] sm:$0xff] %v13875_v12  ;;  %v7118_v54 = vrot.slane %v6867_v37, %v15194_v10  ;;  %v5955_v27 = vcombine.high %v5953_v61, %v5953_v61  ;;  %v10295_v16 = vrot.slane %v5946_v22, 9  ;;  %v13890_v3 = vsel %vm7221_vm9, %v7110_v6, %v7250_v53 }
 0x2df   : > { %15248 = vst [vmem:[#allocation44_spill] sm:$0xff] %v13877_v18  ;;  %15249 = vst [vmem:[#allocation45_spill] sm:$0xff] %v13879_v21  ;;  %v7126_v0 = vrot.slane %v6869_v31, %v15194_v10  ;;  %v10296_v41 = vrot.slane %v5954_v57, 9  ;;  %v10297_v19 = vrot.slane %v5953_v61, 9  ;;  %v5929_v9 = vrot.slane %v5474_v56, %v13268_v35  ;;  %v11251_v31 = vpop.f32.mrf.mxu0 }
 0x2e0   : > { %v7253_v52 = vsel %vm7211_vm4, %v7122_v55, %v7118_v54  ;;  %v5936_v25 = vrot.slane %v5922_v5, %v13268_v35  ;;  %v13896_v15 = vmul.f32 0.25, %v6745_v34  ;;  %v13900_v51 = vmul.f32 %v13875_v12, %v13875_v12 }
 0x2e1   : > { %v13904_v58 = vmul.f32 %v13877_v18, %v13877_v18  ;;  %v5477_v20 = vadd.f32 %v13741_v26, %v5438_v62  ;;  %v13909_v40 = vmul.f32 %v13879_v21, %v13879_v21  ;;  %v7130_v56 = vrot.slane %v13884_v59, %v15194_v10  ;;  %v5392_v11 = vpop.f32.mrf.mxu0 }
 0x2e2   : > { %v10298_v60 = vrot.slane %v5955_v27, 9  ;;  %v6670_v34 = vadd.f32 %v10295_v16, %v5946_v22  ;;  %v7254_v30 = vsel %vm7213_vm5, %v7126_v0, %v7253_v52  ;;  %v6671_v37 = vadd.f32 %v10296_v41, %v5954_v57  ;;  %v15250_v16 = vld [vmem:[#allocation12_spill] sm:$0xff] }
 0x2e3   : > { %v5973_v38 = vcombine.high %v5477_v20, %v5477_v20  ;;  %v5980_v45 = vrot.slane %v5477_v20, %v13268_v35  ;;  %v6672_v6 = vadd.f32 %v10297_v19, %v5953_v61  ;;  %v5937_v53 = vcombine.high %v5929_v9, %v5929_v9 }
 0x2e4   : > { %v5938_v55 = vcombine.high %v5936_v25, %v5936_v25  ;;  %v5437_v5 = vadd.f32 %v5382_v29, %v13413_v8  ;;  %v10291_v62 = vrot.slane %v5929_v9, 9  ;;  %v6673_v59 = vadd.f32 %v10298_v60, %v5955_v27 }
 0x2e5   : > { %v5987_v54 = vrot.slane %v5973_v38, %v13268_v35  ;;  %v5988_v23 = vcombine.high %v5980_v45, %v5980_v45  ;;  %v10303_v21 = vrot.slane %v5980_v45, 9  ;;  %v10293_v18 = vrot.slane %v5936_v25, 9 }
 0x2e6   : > { %v5476_v22 = vadd.f32 %v13741_v26, %v5437_v5  ;;  %v5440_v57 = vadd.f32 %v11251_v31, %v15250_v16  ;;  %v10292_v61 = vrot.slane %v5937_v53, 9  ;;  %v10294_v19 = vrot.slane %v5938_v55, 9 }
 0x2e7   : > { %v5989_v0 = vcombine.high %v5987_v54, %v5987_v54  ;;  %v10304_v41 = vrot.slane %v5988_v23, 9  ;;  %v10305_v52 = vrot.slane %v5987_v54, 9  ;;  %v6678_v20 = vadd.f32 %v10303_v21, %v5980_v45 }
 0x2e8   : > { %v5956_v12 = vcombine.high %v5476_v22, %v5476_v22  ;;  %v5963_v8 = vrot.slane %v5476_v22, %v13268_v35  ;;  %v6666_v39 = vadd.f32 %v10291_v62, %v5929_v9  ;;  %v5479_v21 = vadd.f32 %v13741_v26, %v5440_v57 }
 0x2e9   : > { %v10306_v29 = vrot.slane %v5989_v0, 9  ;;  %v6679_v63 = vadd.f32 %v10304_v41, %v5988_v23  ;;  %v6680_v38 = vadd.f32 %v10305_v52, %v5987_v54  ;;  %v6750_v47 = vadd.f32 %v6678_v20, %v6670_v34  ;;  %v15251_v54 = vld [vmem:[#allocation15_spill] sm:$0xff] }
 0x2ea   : > { %v5970_v27 = vrot.slane %v5956_v12, %v13268_v35  ;;  %v5971_v60 = vcombine.high %v5963_v8, %v5963_v8  ;;  %v10299_v5 = vrot.slane %v5963_v8, 9  ;;  %v6667_v22 = vadd.f32 %v10292_v61, %v5937_v53 }
 0x2eb   : > { %v6681_v31 = vadd.f32 %v10306_v29, %v5989_v0  ;;  %v6751_v16 = vadd.f32 %v6679_v63, %v6671_v37  ;;  %v6752_v32 = vadd.f32 %v6680_v38, %v6672_v6  ;;  %v6668_v50 = vadd.f32 %v10293_v18, %v5936_v25 }
 0x2ec   : > { %v5972_v45 = vcombine.high %v5970_v27, %v5970_v27  ;;  %v10300_v1 = vrot.slane %v5971_v60, 9  ;;  %v10301_v42 = vrot.slane %v5970_v27, 9  ;;  %v6674_v4 = vadd.f32 %v10299_v5, %v5963_v8 }
 0x2ed   : > { %v6753_v23 = vadd.f32 %v6681_v31, %v6673_v59  ;;  %v5439_v34 = vadd.f32 %v5392_v11, %v15251_v54  ;;  %v7134_v0 = vrot.slane %v13900_v51, %v15194_v10  ;;  %v7255_v63 = vsel %vm7215_vm6, %v7130_v56, %v7254_v30 }
 0x2ee   : > { %v10302_v9 = vrot.slane %v5972_v45, 9  ;;  %v6675_v62 = vadd.f32 %v10300_v1, %v5971_v60  ;;  %v6676_v12 = vadd.f32 %v10301_v42, %v5970_v27  ;;  %v6746_v41 = vadd.f32 %v6674_v4, %v6666_v39 }
 0x2ef   : > { %v6669_v37 = vadd.f32 %v10294_v19, %v5938_v55  ;;  %v6007_v6 = vcombine.high %v5479_v21, %v5479_v21  ;;  %v13930_v18 = vmul.f32 %v13896_v15, %v13896_v15  ;;  %v7138_v42 = vrot.slane %v13904_v58, %v15194_v10  ;;  %v11254_v19 = vpop.f32.mrf.mxu0 }
 0x2f0   : > { %v6677_v57 = vadd.f32 %v10302_v9, %v5972_v45  ;;  %v6747_v52 = vadd.f32 %v6675_v62, %v6667_v22  ;;  %v6748_v20 = vadd.f32 %v6676_v12, %v6668_v50  ;;  %v13926_v8 = vmul.f32 0.25, %v6746_v41  ;;  %v15259_v62 = vld [vmem:[#allocation17_spill] sm:$0xff] }
 0x2f1   : > { %v6014_v4 = vrot.slane %v5479_v21, %v13268_v35  ;;  %v5478_v1 = vadd.f32 %v13741_v26, %v5439_v34  ;;  %v7256_v56 = vsel %vm7217_vm7, %v7134_v0, %v7255_v63  ;;  %v13945_v30 = vmul.f32 0.25, %v6750_v47  ;;  %v5402_v41 = vpop.f32.mrf.mxu0 }
 0x2f2   : > { %15252 = vst [vmem:[#allocation12_spill] sm:$0xff] %v13926_v8  ;;  %v6749_v11 = vadd.f32 %v6677_v57, %v6669_v37  ;;  %v13936_v39 = vmul.f32 0.25, %v6747_v52  ;;  %v13938_v25 = vmul.f32 0.25, %v6748_v20  ;;  %v6875_v50 = vmul.f32 %v13926_v8, %v13926_v8 }
 0x2f3   : > { %15255 = vst [vmem:[#allocation47_spill] sm:$0xff] %v13945_v30  ;;  %v6021_v58 = vrot.slane %v6007_v6, %v13268_v35  ;;  %v6022_v61 = vcombine.high %v6014_v4, %v6014_v4  ;;  %v13956_v38 = vmul.f32 0.25, %v6751_v16  ;;  %v13958_v27 = vmul.f32 0.25, %v6752_v32 }
 0x2f4   : > { %15253 = vst [vmem:[#allocation15_spill] sm:$0xff] %v13936_v39  ;;  %15254 = vst [vmem:[#allocation46_spill] sm:$0xff] %v13938_v25  ;;  %v13948_v53 = vmul.f32 0.25, %v6749_v11  ;;  %v6876_v55 = vmul.f32 %v13936_v39, %v13936_v39  ;;  %v6877_v59 = vmul.f32 %v13938_v25, %v13938_v25  ;;  %v7150_v47 = vrot.slane %v6875_v50, %v15194_v10 }
 0x2f5   : > { %15257 = vst [vmem:[#allocation49_spill] sm:$0xff] %v13956_v38  ;;  %15258 = vst [vmem:[#allocation50_spill] sm:$0xff] %v13958_v27  ;;  %v6023_v31 = vcombine.high %v6021_v58, %v6021_v58  ;;  %v5990_v21 = vcombine.high %v5478_v1, %v5478_v1  ;;  %v13965_v45 = vsel %vm7219_vm8, %v7138_v42, %v7256_v56  ;;  %v10311_v34 = vrot.slane %v6014_v4, 9 }
 0x2f6   : > { %15256 = vst [vmem:[#allocation48_spill] sm:$0xff] %v13948_v53  ;;  %v6878_v60 = vmul.f32 %v13948_v53, %v13948_v53  ;;  %v7154_v5 = vrot.slane %v6876_v55, %v15194_v10  ;;  %v13969_v22 = vmul.f32 %v13945_v30, %v13945_v30  ;;  %v7158_v16 = vrot.slane %v6877_v59, %v15194_v10 }
 0x2f7   : > { %v5997_v32 = vrot.slane %v5478_v1, %v13268_v35  ;;  %v10312_v9 = vrot.slane %v6022_v61, 9  ;;  %v5442_v12 = vadd.f32 %v11254_v19, %v15259_v62  ;;  %v13975_v0 = vmul.f32 0.25, %v6753_v23 }
 0x2f8   : > { %v7260_v54 = vsel %vm7211_vm4, %v7154_v5, %v7150_v47  ;;  %v13979_v63 = vmul.f32 %v13956_v38, %v13956_v38  ;;  %v10313_v37 = vrot.slane %v6021_v58, 9  ;;  %v6004_v6 = vrot.slane %v5990_v21, %v13268_v35 }
 0x2f9   : > { %v13984_v57 = vmul.f32 %v13958_v27, %v13958_v27  ;;  %v7162_v52 = vrot.slane %v6878_v60, %v15194_v10  ;;  %v10314_v20 = vrot.slane %v6023_v31, 9  ;;  %v5481_v42 = vadd.f32 %v13741_v26, %v5442_v12 }
 0x2fa   : > { %v7166_v23 = vrot.slane %v13969_v22, %v15194_v10  ;;  %v7261_v1 = vsel %vm7213_vm5, %v7158_v16, %v7260_v54  ;;  %v6005_v11 = vcombine.high %v5997_v32, %v5997_v32  ;;  %v5441_v50 = vadd.f32 %v5402_v41, %v13560_v33 }
 0x2fb   : > { %v6686_v56 = vadd.f32 %v10311_v34, %v6014_v4  ;;  %v6687_v55 = vadd.f32 %v10312_v9, %v6022_v61  ;;  %v10307_v59 = vrot.slane %v5997_v32, 9  ;;  %v6041_v19 = vcombine.high %v5481_v42, %v5481_v42 }
 0x2fc   : > { %v6688_v47 = vadd.f32 %v10313_v37, %v6021_v58  ;;  %v6006_v5 = vcombine.high %v6004_v6, %v6004_v6  ;;  %v6048_v21 = vrot.slane %v5481_v42, %v13268_v35  ;;  %v5480_v60 = vadd.f32 %v13741_v26, %v5441_v50 }
 0x2fd   : > { %v7262_v62 = vsel %vm7215_vm6, %v7162_v52, %v7261_v1  ;;  %v6689_v12 = vadd.f32 %v10314_v20, %v6023_v31  ;;  %v10309_v29 = vrot.slane %v6004_v6, 9  ;;  %v6055_v22 = vrot.slane %v6041_v19, %v13268_v35 }
 0x2fe   : > { %v10308_v16 = vrot.slane %v6005_v11, 9  ;;  %v6056_v54 = vcombine.high %v6048_v21, %v6048_v21  ;;  %v10319_v51 = vrot.slane %v6048_v21, 9  ;;  %v6024_v33 = vcombine.high %v5480_v60, %v5480_v60 }
 0x2ff   : > { %v6682_v4 = vadd.f32 %v10307_v59, %v5997_v32  ;;  %v6057_v61 = vcombine.high %v6055_v22, %v6055_v22  ;;  %v10321_v34 = vrot.slane %v6055_v22, 9  ;;  %v6031_v58 = vrot.slane %v5480_v60, %v13268_v35 }
 0x300   : > { %v10310_v9 = vrot.slane %v6006_v5, 9  ;;  %v10320_v41 = vrot.slane %v6056_v54, 9  ;;  %v6694_v37 = vadd.f32 %v10319_v51, %v6048_v21  ;;  %v6038_v26 = vrot.slane %v6024_v33, %v13268_v35 }
 0x301   : > { %v10322_v42 = vrot.slane %v6057_v61, 9  ;;  %v6696_v52 = vadd.f32 %v10321_v34, %v6055_v22  ;;  %v6039_v31 = vcombine.high %v6031_v58, %v6031_v58  ;;  %v10315_v20 = vrot.slane %v6031_v58, 9  ;;  %v14001_v22 = vld [vmem:[%s14993_s5 + $0x18] sm:$0xf] }
 0x302   : > { %v6695_v1 = vadd.f32 %v10320_v41, %v6056_v54  ;;  %v6758_v50 = vadd.f32 %v6694_v37, %v6686_v56  ;;  %v6040_v19 = vcombine.high %v6038_v26, %v6038_v26  ;;  %v10317_v27 = vrot.slane %v6038_v26, 9  ;;  %11339 = vmatprep.subr.msk.mxu0 %vm2166_vm0, %v14001_v22 }
 0x303   : > { %v6697_v38 = vadd.f32 %v10322_v42, %v6057_v61  ;;  %v6760_v30 = vadd.f32 %v6696_v52, %v6688_v47  ;;  %v10316_v32 = vrot.slane %v6039_v31, 9  ;;  %v6690_v59 = vadd.f32 %v10315_v20, %v6031_v58 }
 0x304   : > { %v6684_v53 = vadd.f32 %v10309_v29, %v6004_v6  ;;  %v6759_v25 = vadd.f32 %v6695_v1, %v6687_v55  ;;  %v10318_v60 = vrot.slane %v6040_v19, 9  ;;  %v6692_v39 = vadd.f32 %v10317_v27, %v6038_v26 }
 0x305   : > { %v6683_v8 = vadd.f32 %v10308_v16, %v6005_v11  ;;  %v6761_v51 = vadd.f32 %v6697_v38, %v6689_v12  ;;  %v6691_v21 = vadd.f32 %v10316_v32, %v6039_v31  ;;  %v6754_v33 = vadd.f32 %v6690_v59, %v6682_v4 }
 0x306   : > { %v7263_v56 = vsel %vm7217_vm7, %v7166_v23, %v7262_v62  ;;  %v6685_v54 = vadd.f32 %v10310_v9, %v6006_v5  ;;  %v6693_v61 = vadd.f32 %v10318_v60, %v6040_v19  ;;  %v6756_v47 = vadd.f32 %v6692_v39, %v6684_v53 }
 0x307   : > { %v15260_v29 = vrot.slane %v13909_v40, %v15194_v10  ;;  %v7170_v27 = vrot.slane %v13979_v63, %v15194_v10  ;;  %v6755_v6 = vadd.f32 %v6691_v21, %v6683_v8  ;;  %v14013_v11 = vmul.f32 0.25, %v6754_v33 }
 0x308   : > { %v6882_v23 = vmul.f32 %v13975_v0, %v13975_v0  ;;  %v14017_v55 = vmul.f32 0.25, %v6758_v50  ;;  %v6757_v39 = vadd.f32 %v6693_v61, %v6685_v54  ;;  %v14019_v53 = vmul.f32 0.25, %v6756_v47 }
 0x309   : > { %v7258_v38 = vsel %vm7221_vm9, %v15260_v29, %v13965_v45  ;;  %v7264_v5 = vsel %vm7219_vm8, %v7170_v27, %v7263_v56  ;;  %v14022_v62 = vmul.f32 0.25, %v6759_v25  ;;  %v14024_v40 = vmul.f32 0.25, %v6755_v6 }
 0x30a   : > { %v6883_v45 = vmul.f32 %v14013_v11, %v14013_v11  ;;  %v7174_v8 = vrot.slane %v13984_v57, %v15194_v10  ;;  %v14030_v63 = vmul.f32 0.25, %v6760_v30  ;;  %v14032_v12 = vmul.f32 0.25, %v6757_v39 }
 0x30b   : > { %v6885_v16 = vmul.f32 %v14019_v53, %v14019_v53  ;;  %v15261_v25 = vrot.slane %v13867_v2, %v15194_v10  ;;  %v15262_v34 = vrot.slane %v13930_v18, %v15194_v10  ;;  %v14045_v9 = vmul.f32 0.25, %v6761_v51 }
 0x30c   : > { %v6884_v30 = vmul.f32 %v14024_v40, %v14024_v40  ;;  %v7265_v57 = vsel %vm7221_vm9, %v7174_v8, %v7264_v5  ;;  %v6887_v41 = vmul.f32 %v14017_v55, %v14017_v55  ;;  %v6886_v2 = vmul.f32 %v14032_v12, %v14032_v12 }
 0x30d   : > { %v7252_v4 = vsel %vm7223_vm10, %v15261_v25, %v13890_v3  ;;  %v7259_v58 = vsel %vm7223_vm10, %v15262_v34, %v7258_v38  ;;  %v7190_v3 = vrot.slane %v6885_v16, %v15194_v10  ;;  %v7178_v37 = vrot.slane %v6882_v23, %v15194_v10 }
 0x30e   : > { %v6888_v18 = vmul.f32 %v14022_v62, %v14022_v62  ;;  %v7182_v26 = vrot.slane %v6883_v45, %v15194_v10  ;;  %v7186_v42 = vrot.slane %v6884_v30, %v15194_v10  ;;  %v7289_v52 = vsel %vm1716_vm1, %v7252_v4, 0.0 }
 0x30f   : > { %v6889_v31 = vmul.f32 %v14030_v63, %v14030_v63  ;;  %v7194_v20 = vrot.slane %v6886_v2, %v15194_v10  ;;  %v7288_v1 = vadd.f32 %v13854_v44, %v13850_v17  ;;  %v7266_v50 = vsel %vm7223_vm10, %v7178_v37, %v7265_v57  ;;  %v6826_v57 = vld [vmem:[%s14992_s4] sm:$0x7]  ;;  %v15263_v37 = vld [vmem:[#allocation4_spill] sm:$0xff] }
 0x310   : > { %v6890_v19 = vmul.f32 %v14045_v9, %v14045_v9  ;;  %v7267_v32 = vsel %vm7211_vm4, %v7186_v42, %v7182_v26  ;;  %v7291_v59 = vsel %vm1716_vm1, %v7259_v58, 0.0  ;;  %v7198_v60 = vrot.slane %v6887_v41, %v15194_v10 }
 0x311   : > { %v7268_v51 = vsel %vm7213_vm5, %v7190_v3, %v7267_v32  ;;  %v7290_v21 = vadd.f32 %v7289_v52, %v7288_v1  ;;  %v7202_v33 = vrot.slane %v6888_v18, %v15194_v10  ;;  %v7293_v17 = vsel %vm1716_vm1, %v7266_v50, 0.0  ;;  %v15266_v32 = vld [vmem:[#allocation11_spill] sm:$0xff] }
 0x312   : > { %v7269_v56 = vsel %vm7215_vm6, %v7194_v20, %v7268_v51  ;;  %v7206_v44 = vrot.slane %v6889_v31, %v15194_v10  ;;  %v7210_v47 = vrot.slane %v6890_v19, %v15194_v10  ;;  %v15264_v18 = vsub.s32 1, %v15263_v37 }
 0x313   : > { %v7270_v54 = vsel %vm7217_vm7, %v7198_v60, %v7269_v56  ;;  %v7292_v61 = vadd.f32 %v7291_v59, %v7290_v21  ;;  %v15265_v42 = vsub.s32 2, %v15263_v37  ;;  %v14099_v31 = vrot.slane %v6826_v57, %v15194_v10  ;;  %v15267_v60 = vld [vmem:[#allocation30_spill] sm:$0xff] }
 0x314   : > { %v7271_v29 = vsel %vm7219_vm8, %v7202_v33, %v7270_v54  ;;  %v14092_v26 = vrot.slane %v6826_v57, %v15264_v18 }
 0x315   : > { %v7272_v38 = vsel %vm7221_vm9, %v7206_v44, %v7271_v29  ;;  %v7294_v27 = vadd.f32 %v7293_v17, %v7292_v61  ;;  %v14096_v52 = vrot.slane %v6826_v57, %v15265_v42  ;;  %v15268_v61 = vld [vmem:[#allocation10_spill] sm:$0xff]  ;;  %v15273_v57 = vld [vmem:[#allocation29_spill] sm:$0xff] }
 0x316   : > { %v7273_v6 = vsel %vm7223_vm10, %v7210_v47, %v7272_v38 }
 0x317   : > { %v7295_v23 = vsel %vm1716_vm1, %v7273_v6, 0.0 }
 0x318   : > { %v7296_v39 = vadd.f32 %v7295_v23, %v7294_v27  ;;  %v15269_v23 = vld [vmem:[#allocation25_spill] sm:$0xff] }
 0x31a   : > { %v7297_v5 = vrot.slane %v7296_v39, 4 }
 0x31c   : > { %v7298_v45 = vadd.f32 %v7297_v5, %v7296_v39 }
 0x31e   : > { %v7299_v8 = vrot.slane %v7298_v45, 2 }
 0x320   : > { %v7300_v16 = vadd.f32 %v7299_v8, %v7298_v45  ;;  %v15270_v8 = vld [vmem:[#allocation26_spill] sm:$0xff] }
 0x322   : > { %v7301_v25 = vrot.slane %v7300_v16, 1 }
 0x324   : > { %v7302_v4 = vadd.f32 %v7301_v25, %v7300_v16  ;;  %v15271_v25 = vld [vmem:[#allocation13_spill] sm:$0xff] }
 0x326   : > { %v7304_v34 = vmul.f32 0.015625, %v7302_v4 }
 0x328   : > { %v7305_v58 = vadd.f32 1e-06, %v7304_v34  ;;  %v15272_v34 = vld [vmem:[#allocation27_spill] sm:$0xff] }
 0x32a   : > { %11407 = vrsqrt.f32 %v7305_v58 }
 0x337   : > { %v11408_v30 = vpop.eup %11407 }
 0x338   : > { %v7310_v41 = vrot.slane %v11408_v30, %v15194_v10 }
 0x33a   : > { %v7312_v2 = vcombine.high %v7310_v41, %v7310_v41  ;;  %v14088_v3 = vrot.slane %v7310_v41, %v13268_v35 }
 0x33c   : > { %v14102_v20 = vrot.slane %v7312_v2, %v13268_v35  ;;  %v14106_v1 = vcombine.high %v14088_v3, %v14088_v3  ;;  %v14109_v50 = vrot.slane %v14088_v3, 1  ;;  %v7397_v19 = vmul.f32 %v14088_v3, %v14013_v11  ;;  %v15274_v2 = vld [vmem:[#allocation28_spill] sm:$0xff] }
 0x33d   : > { %v7341_v59 = vmul.f32 %v14088_v3, %v15266_v32  ;;  %v14117_v51 = vmul.f32 %v14088_v3, %v15267_v60  ;;  %v14121_v21 = vmul.f32 %v14088_v3, %v13548_v48  ;;  %v14125_v33 = vmul.f32 %v14088_v3, %v13633_v46 }
 0x33e   : > { %v14129_v56 = vcombine.high %v14102_v20, %v14102_v20  ;;  %v14132_v11 = vrot.slane %v14106_v1, 1  ;;  %v14135_v17 = vrot.slane %v14102_v20, 1  ;;  %v7398_v44 = vmul.f32 %v14109_v50, %v14024_v40 }
 0x33f   : > { %v7399_v48 = vmul.f32 %v14106_v1, %v14019_v53  ;;  %v7401_v46 = vmul.f32 %v14102_v20, %v14017_v55  ;;  %v7700_v54 = vrot.slane %v7397_v19, %v15194_v10  ;;  %v7342_v47 = vmul.f32 %v14109_v50, %v15268_v61 }
 0x340   : > { %v14147_v29 = vrot.slane %v14129_v56, 1  ;;  %v7400_v38 = vmul.f32 %v14132_v11, %v14032_v12  ;;  %v7402_v40 = vmul.f32 %v14135_v17, %v14022_v62  ;;  %v7403_v53 = vmul.f32 %v14129_v56, %v14030_v63 }
 0x341   : > { %v7704_v27 = vrot.slane %v7398_v44, %v15194_v10  ;;  %v7708_v55 = vrot.slane %v7399_v48, %v15194_v10  ;;  %v7716_v6 = vrot.slane %v7401_v46, %v15194_v10  ;;  %v7343_v39 = vmul.f32 %v14106_v1, %v15269_v23 }
 0x342   : > { %v7404_v5 = vmul.f32 %v14147_v29, %v14045_v9  ;;  %v7712_v12 = vrot.slane %v7400_v38, %v15194_v10  ;;  %v7720_v45 = vrot.slane %v7402_v40, %v15194_v10  ;;  %v7724_v62 = vrot.slane %v7403_v53, %v15194_v10  ;;  %v15275_v53 = vld [vmem:[#allocation21_spill] sm:$0xff] }
 0x343   : > { %v7778_v63 = vsel %vm7211_vm4, %v7704_v27, %v7700_v54  ;;  %v7344_v16 = vmul.f32 %v14132_v11, %v15270_v8  ;;  %v7345_v4 = vmul.f32 %v14102_v20, %v15271_v25  ;;  %v7346_v58 = vmul.f32 %v14135_v17, %v15272_v34  ;;  %v15279_v34 = vld [vmem:[#allocation7_spill] sm:$0xff] }
 0x344   : > { %v7728_v30 = vrot.slane %v7404_v5, %v15194_v10  ;;  %v7779_v9 = vsel %vm7213_vm5, %v7708_v55, %v7778_v63  ;;  %v7347_v41 = vmul.f32 %v14129_v56, %v15273_v57  ;;  %v7348_v37 = vmul.f32 %v14147_v29, %v15274_v2  ;;  %v15276_v55 = vld [vmem:[#allocation5_spill] sm:$0xff]  ;;  %v15277_v5 = vld [vmem:[#allocation16_spill] sm:$0xff] }
 0x345   : > { %v7780_v18 = vsel %vm7215_vm6, %v7712_v12, %v7779_v9  ;;  %v7476_v42 = vrot.slane %v7341_v59, %v15194_v10  ;;  %v7480_v19 = vrot.slane %v7342_v47, %v15194_v10  ;;  %v7484_v32 = vrot.slane %v7343_v39, %v15194_v10 }
 0x346   : > { %v7781_v60 = vsel %vm7217_vm7, %v7716_v6, %v7780_v18  ;;  %v7488_v44 = vrot.slane %v7344_v16, %v15194_v10  ;;  %v7492_v48 = vrot.slane %v7345_v4, %v15194_v10  ;;  %v7496_v46 = vrot.slane %v7346_v58, %v15194_v10 }
 0x347   : > { %v7782_v54 = vsel %vm7219_vm8, %v7720_v45, %v7781_v60  ;;  %v7500_v61 = vrot.slane %v7347_v41, %v15194_v10  ;;  %v7504_v38 = vrot.slane %v7348_v37, %v15194_v10  ;;  %v7729_v59 = vsel %vm7211_vm4, %v7480_v19, %v7476_v42  ;;  %v15278_v45 = vld [vmem:[#allocation31_spill] sm:$0xff] }
 0x348   : > { %v7783_v47 = vsel %vm7221_vm9, %v7724_v62, %v7782_v54  ;;  %v7730_v40 = vsel %vm7213_vm5, %v7484_v32, %v7729_v59  ;;  %v7350_v27 = vmul.f32 %v14109_v50, %v15275_v53  ;;  %v7351_v6 = vmul.f32 %v14106_v1, %v15276_v55  ;;  %v15281_v54 = vld [vmem:[#allocation14_spill] sm:$0xff]  ;;  %v15283_v53 = vld [vmem:[#allocation24_spill] sm:$0xff]  ;;  %v15284_v55 = vld [vmem:[#allocation23_spill] sm:$0xff] }
 0x349   : > { %v7784_v23 = vsel %vm7223_vm10, %v7728_v30, %v7783_v47  ;;  %v7731_v39 = vsel %vm7215_vm6, %v7488_v44, %v7730_v40  ;;  %v7352_v12 = vmul.f32 %v14132_v11, %v15277_v5  ;;  %v7353_v63 = vmul.f32 %v14102_v20, %v15278_v45  ;;  %v15285_v5 = vld [vmem:[#allocation18_spill] sm:$0xff] }
 0x34a   : > { %v7800_v62 = vmul.f32 %v7784_v23, %v14092_v26  ;;  %v7732_v8 = vsel %vm7217_vm7, %v7492_v48, %v7731_v39  ;;  %v7354_v16 = vmul.f32 %v14135_v17, %v13497_v43  ;;  %v7355_v25 = vmul.f32 %v14129_v56, %v13499_v7  ;;  %v15280_v48 = vld [vmem:[#allocation19_spill] sm:$0xff] }
 0x34b   : > { %v7733_v4 = vsel %vm7219_vm8, %v7496_v46, %v7732_v8  ;;  %v7356_v58 = vmul.f32 %v14147_v29, %v15279_v34  ;;  %v7508_v30 = vrot.slane %v14117_v51, %v15194_v10  ;;  %v7512_v9 = vrot.slane %v7350_v27, %v15194_v10 }
 0x34c   : > { %v7812_v57 = vadd.f32 %v14096_v52, %v7800_v62  ;;  %v7734_v41 = vsel %vm7221_vm9, %v7500_v61, %v7733_v4  ;;  %v7516_v2 = vrot.slane %v7351_v6, %v15194_v10  ;;  %v7520_v43 = vrot.slane %v7352_v12, %v15194_v10 }
 0x34d   : > { %v7735_v7 = vsel %vm7223_vm10, %v7504_v38, %v7734_v41  ;;  %v7524_v37 = vrot.slane %v7353_v63, %v15194_v10  ;;  %v7528_v18 = vrot.slane %v7354_v16, %v15194_v10  ;;  %v7532_v42 = vrot.slane %v7355_v25, %v15194_v10  ;;  %v15282_v38 = vld [vmem:[#allocation6_spill] sm:$0xff] }
 0x34e   : > { %v7824_v51 = vmax.f32 %v7812_v57, %v14099_v31  ;;  %v7793_v19 = vmul.f32 %v7735_v7, %v14092_v26  ;;  %v7536_v32 = vrot.slane %v7356_v58, %v15194_v10  ;;  %v7736_v60 = vsel %vm7211_vm4, %v7512_v9, %v7508_v30  ;;  %v15287_v7 = vld [vmem:[#allocation22_spill] sm:$0xff] }
 0x34f   : > { %v7737_v44 = vsel %vm7213_vm5, %v7516_v2, %v7736_v60  ;;  %v7358_v46 = vmul.f32 %v14109_v50, %v15280_v48  ;;  %v7359_v61 = vmul.f32 %v14106_v1, %v15281_v54  ;;  %v7360_v59 = vmul.f32 %v14132_v11, %v15282_v38  ;;  %v15286_v2 = vld [vmem:[#allocation8_spill] sm:$0xff] }
 0x350   : > { %7854 = vst.msk [vmem:[#allocation3 + $0x81] sm:$0xff] %vm1716_vm1, %v7824_v51  ;;  %v7805_v47 = vadd.f32 %v14096_v52, %v7793_v19  ;;  %v7738_v40 = vsel %vm7215_vm6, %v7520_v43, %v7737_v44  ;;  %v7361_v27 = vmul.f32 %v14102_v20, %v15283_v53  ;;  %v7362_v6 = vmul.f32 %v14135_v17, %v15284_v55  ;;  %v15289_v19 = vld [vmem:[#allocation9_spill] sm:$0xff]  ;;  %v15290_v60 = vld [vmem:[#allocation20_spill] sm:$0xff] }
 0x351   : > { %v7739_v23 = vsel %vm7217_vm7, %v7524_v37, %v7738_v40  ;;  %v7363_v39 = vmul.f32 %v14129_v56, %v13592_v24  ;;  %v7364_v12 = vmul.f32 %v14147_v29, %v15285_v5  ;;  %v7540_v45 = vrot.slane %v14121_v21, %v15194_v10  ;;  %v15291_v54 = vld [vmem:[#allocation32_spill] sm:$0xff] }
 0x352   : > { %v7817_v63 = vmax.f32 %v7805_v47, %v14099_v31  ;;  %v7740_v62 = vsel %vm7219_vm8, %v7528_v18, %v7739_v23  ;;  %v7544_v8 = vrot.slane %v7358_v46, %v15194_v10  ;;  %v7548_v16 = vrot.slane %v7359_v61, %v15194_v10 }
 0x353   : > { %v7741_v25 = vsel %vm7221_vm9, %v7532_v42, %v7740_v62  ;;  %v7552_v4 = vrot.slane %v7360_v59, %v15194_v10  ;;  %v7556_v24 = vrot.slane %v7361_v27, %v15194_v10  ;;  %v7560_v34 = vrot.slane %v7362_v6, %v15194_v10  ;;  %v15288_v42 = vld [vmem:[#allocation33_spill] sm:$0xff] }
 0x354   : > { %7847 = vst.msk [vmem:[#allocation3 + $0x11] sm:$0xff] %vm1716_vm1, %v7817_v63  ;;  %v7742_v21 = vsel %vm7223_vm10, %v7536_v32, %v7741_v25  ;;  %v7564_v58 = vrot.slane %v7363_v39, %v15194_v10  ;;  %v7568_v30 = vrot.slane %v7364_v12, %v15194_v10  ;;  %v7743_v9 = vsel %vm7211_vm4, %v7544_v8, %v7540_v45 }
 0x355   : > { %v7794_v57 = vmul.f32 %v7742_v21, %v14092_v26  ;;  %v7744_v41 = vsel %vm7213_vm5, %v7548_v16, %v7743_v9  ;;  %v7366_v43 = vmul.f32 %v14109_v50, %v15286_v2  ;;  %v7367_v37 = vmul.f32 %v14106_v1, %v15287_v7  ;;  %v14302_v16 = vld [vmem:[%s14993_s5 + $0x8] sm:$0xf]  ;;  %v15293_v21 = vld [vmem:[#allocation34_spill] sm:$0xff] }
 0x356   : > { %v7745_v18 = vsel %vm7215_vm6, %v7552_v4, %v7744_v41  ;;  %v7368_v51 = vmul.f32 %v14132_v11, %v15288_v42  ;;  %v7369_v32 = vmul.f32 %v14102_v20, %v15289_v19  ;;  %v7370_v44 = vmul.f32 %v14135_v17, %v15290_v60  ;;  %v15295_v41 = vld [vmem:[#allocation37_spill] sm:$0xff]  ;;  %v15296_v2 = vld [vmem:[#allocation39_spill] sm:$0xff] }
 0x357   : > { %v7806_v48 = vadd.f32 %v14096_v52, %v7794_v57  ;;  %v7746_v46 = vsel %vm7217_vm7, %v7556_v24, %v7745_v18  ;;  %v7371_v61 = vmul.f32 %v14129_v56, %v15291_v54  ;;  %v7372_v38 = vmul.f32 %v14147_v29, %v13681_v13  ;;  %v15292_v24 = vld [vmem:[#allocation36_spill] sm:$0xff] }
 0x358   : > { %v7747_v59 = vsel %vm7219_vm8, %v7560_v34, %v7746_v46  ;;  %v7572_v47 = vrot.slane %v14125_v33, %v15194_v10  ;;  %v7576_v40 = vrot.slane %v7366_v43, %v15194_v10  ;;  %v7580_v53 = vrot.slane %v7367_v37, %v15194_v10 }
 0x359   : > { %v7818_v27 = vmax.f32 %v7806_v48, %v14099_v31  ;;  %v7748_v55 = vsel %vm7221_vm9, %v7564_v58, %v7747_v59  ;;  %v7584_v6 = vrot.slane %v7368_v51, %v15194_v10  ;;  %v7588_v23 = vrot.slane %v7369_v32, %v15194_v10 }
 0x35a   : > { %v7749_v39 = vsel %vm7223_vm10, %v7568_v30, %v7748_v55  ;;  %v7592_v13 = vrot.slane %v7370_v44, %v15194_v10  ;;  %v7596_v5 = vrot.slane %v7371_v61, %v15194_v10  ;;  %v7600_v33 = vrot.slane %v7372_v38, %v15194_v10  ;;  %v15294_v30 = vld [vmem:[#allocation35_spill] sm:$0xff]  ;;  %v14351_v55 = vld [vmem:[%s14993_s5 + $0x20] sm:$0xf] }
 0x35b   : > { %v7865_v12 = vld [vmem:[#allocation3 + $0x11] sm:$0xff]  ;;  %7848 = vst.msk [vmem:[#allocation3 + $0x21] sm:$0xff] %vm1716_vm1, %v7818_v27  ;;  %v7795_v45 = vmul.f32 %v7749_v39, %v14092_v26  ;;  %v7750_v63 = vsel %vm7211_vm4, %v7576_v40, %v7572_v47  ;;  %v7373_v62 = vmul.f32 %v14088_v3, %v13730_v28  ;;  %v7374_v8 = vmul.f32 %v14109_v50, %v13736_v14 }
 0x35c   : > { %11258 = vmatmul.mubr.msk.f32.vlgmr.msra.gmra.mxu1 %vm1716_vm1, %v7865_v12  ;;  %11313 = vmatprep.mubr.msk.f32.mxu0 %vm1716_vm1, %v7865_v12  ;;  %v7751_v25 = vsel %vm7213_vm5, %v7580_v53, %v7750_v63  ;;  %v7375_v4 = vmul.f32 %v14106_v1, %v13732_v36  ;;  %v7376_v28 = vmul.f32 %v14132_v11, %v13746_v49  ;;  %v15297_v47 = vld [vmem:[#allocation38_spill] sm:$0xff]  ;;  %v15298_v53 = vld [vmem:[#allocation40_spill] sm:$0xff] }
 0x35d   : > { %11270 = vmatpush3.msk.msra.mxu1 %vm2166_vm0, %v15292_v24  ;;  %v7807_v14 = vadd.f32 %v14096_v52, %v7795_v45  ;;  %v7752_v34 = vsel %vm7215_vm6, %v7584_v6, %v7751_v25  ;;  %v7377_v58 = vmul.f32 %v14102_v20, %v15293_v21  ;;  %v7378_v9 = vmul.f32 %v14135_v17, %v15294_v30  ;;  %v15301_v45 = vld [vmem:[#allocation43_spill] sm:$0xff] }
 0x35e   : > { %v7753_v57 = vsel %vm7217_vm7, %v7588_v23, %v7752_v34  ;;  %v7379_v36 = vmul.f32 %v14129_v56, %v15295_v41  ;;  %v7380_v49 = vmul.f32 %v14147_v29, %v15296_v2  ;;  %v7604_v43 = vrot.slane %v7373_v62, %v15194_v10  ;;  %11283 = vmatprep.subr.msk.mxu1 %vm2166_vm0, %v14302_v16  ;;  %v15299_v23 = vld [vmem:[#allocation41_spill] sm:$0xff]  ;;  %v15302_v62 = vld [vmem:[#allocation44_spill] sm:$0xff] }
 0x35f   : > { %v7819_v7 = vmax.f32 %v7807_v14, %v14099_v31  ;;  %v7754_v37 = vsel %vm7219_vm8, %v7592_v13, %v7753_v57  ;;  %v7608_v18 = vrot.slane %v7374_v8, %v15194_v10  ;;  %v7612_v42 = vrot.slane %v7375_v4, %v15194_v10  ;;  %v15300_v13 = vld [vmem:[#allocation42_spill] sm:$0xff]  ;;  %v15303_v4 = vld [vmem:[#allocation45_spill] sm:$0xff] }
 0x360   : > { %v7755_v51 = vsel %vm7221_vm9, %v7596_v5, %v7754_v37  ;;  %v7616_v19 = vrot.slane %v7376_v28, %v15194_v10  ;;  %v7620_v32 = vrot.slane %v7377_v58, %v15194_v10  ;;  %v7624_v60 = vrot.slane %v7378_v9, %v15194_v10  ;;  %v15304_v37 = vld [vmem:[#allocation12_spill] sm:$0xff] }
 0x361   : > { %7849 = vst.msk [vmem:[#allocation3 + $0x31] sm:$0xff] %vm1716_vm1, %v7819_v7  ;;  %v7756_v44 = vsel %vm7223_vm10, %v7600_v33, %v7755_v51  ;;  %v7628_v48 = vrot.slane %v7379_v36, %v15194_v10  ;;  %v7632_v46 = vrot.slane %v7380_v49, %v15194_v10  ;;  %v7757_v54 = vsel %vm7211_vm4, %v7608_v18, %v7604_v43 }
 0x362   : > { %v14340_v61 = vld [vmem:[#allocation3 + $0x21] sm:$0xff]  ;;  %v7796_v38 = vmul.f32 %v7756_v44, %v14092_v26  ;;  %v7758_v59 = vsel %vm7213_vm5, %v7612_v42, %v7757_v54  ;;  %v7381_v40 = vmul.f32 %v14088_v3, %v15297_v47  ;;  %v7382_v27 = vmul.f32 %v14109_v50, %v15298_v53  ;;  %v15305_v42 = vld [vmem:[#allocation15_spill] sm:$0xff] }
 0x363   : > { %11260 = vmatprep.mubr.msk.f32.mxu1 %vm1716_vm1, %v14340_v61  ;;  %11314 = vmatmul.mubr.msk.f32.vlgmr.msra.gmra.mxu0 %vm1716_vm1, %v14340_v61  ;;  %v7759_v6 = vsel %vm7215_vm6, %v7616_v19, %v7758_v59  ;;  %v7383_v39 = vmul.f32 %v14106_v1, %v15299_v23  ;;  %v7384_v5 = vmul.f32 %v14132_v11, %v15300_v13  ;;  %v15309_v47 = vld [vmem:[#allocation49_spill] sm:$0xff] }
 0x364   : > { %v7808_v33 = vadd.f32 %v14096_v52, %v7796_v38  ;;  %v7760_v12 = vsel %vm7217_vm7, %v7620_v32, %v7759_v6  ;;  %v7385_v63 = vmul.f32 %v14102_v20, %v15301_v45  ;;  %v7386_v8 = vmul.f32 %v14135_v17, %v15302_v62  ;;  %11340 = vmatpush3.msk.msra.mxu0 %vm2166_vm0, %v14001_v22  ;;  %v15308_v38 = vld [vmem:[#allocation47_spill] sm:$0xff]  ;;  %v11410_v45 = vld [vmem:[%s11596_s17] sm:$0xff] }
 0x365   : > { %v7761_v25 = vsel %vm7219_vm8, %v7624_v60, %v7760_v12  ;;  %v7387_v28 = vmul.f32 %v14129_v56, %v15303_v4  ;;  %v7388_v24 = vmul.f32 %v14147_v29, %v13896_v15  ;;  %v7636_v14 = vrot.slane %v7381_v40, %v15194_v10  ;;  %11367 = vmatprep.subr.msk.mxu0 %vm2166_vm0, %v14351_v55  ;;  %v15306_v60 = vld [vmem:[#allocation46_spill] sm:$0xff] }
 0x366   : > { %v7820_v34 = vmax.f32 %v7808_v33, %v14099_v31  ;;  %v7762_v21 = vsel %vm7221_vm9, %v7628_v48, %v7761_v25  ;;  %v7640_v58 = vrot.slane %v7382_v27, %v15194_v10  ;;  %v7644_v22 = vrot.slane %v7383_v39, %v15194_v10  ;;  %v15307_v48 = vld [vmem:[#allocation48_spill] sm:$0xff]  ;;  %v15310_v40 = vld [vmem:[#allocation50_spill] sm:$0xff]  ;;  %v11411_v25 = vld [vmem:[%s11596_s17 + $0x8] sm:$0xff] }
 0x367   : > { %v7763_v30 = vsel %vm7223_vm10, %v7632_v46, %v7762_v21  ;;  %v7648_v9 = vrot.slane %v7384_v5, %v15194_v10  ;;  %v7652_v57 = vrot.slane %v7385_v63, %v15194_v10  ;;  %v7656_v15 = vrot.slane %v7386_v8, %v15194_v10 }
 0x368   : > { %v14386_v41 = vld [vmem:[#allocation3 + $0x31] sm:$0xff]  ;;  %7850 = vst.msk [vmem:[#allocation3 + $0x41] sm:$0xff] %vm1716_vm1, %v7820_v34  ;;  %v7797_v36 = vmul.f32 %v7763_v30, %v14092_v26  ;;  %v7660_v2 = vrot.slane %v7387_v28, %v15194_v10  ;;  %v7664_v49 = vrot.slane %v7388_v24, %v15194_v10  ;;  %v7764_v43 = vsel %vm7211_vm4, %v7640_v58, %v7636_v14  ;;  %v11412_v30 = vld [vmem:[%s11596_s17 + $0x10] sm:$0xff] }
 0x369   : > { %11316 = vmatprep.mubr.msk.f32.mxu0 %vm1716_vm1, %v14386_v41  ;;  %11261 = vmatmul.mubr.msk.f32.gmra.mxu1 %vm1716_vm1, %v14386_v41  ;;  %v7765_v7 = vsel %vm7213_vm5, %v7644_v22, %v7764_v43  ;;  %v7389_v18 = vmul.f32 %v14088_v3, %v15304_v37  ;;  %v7390_v51 = vmul.f32 %v14109_v50, %v15305_v42 }
 0x36a   : > { %v7809_v19 = vadd.f32 %v14096_v52, %v7797_v36  ;;  %v7766_v32 = vsel %vm7215_vm6, %v7648_v9, %v7765_v7  ;;  %v7391_v44 = vmul.f32 %v14106_v1, %v15306_v60  ;;  %v7392_v46 = vmul.f32 %v14132_v11, %v15307_v48 }
 0x36b   : > { %v7767_v54 = vsel %vm7217_vm7, %v7652_v57, %v7766_v32  ;;  %v7393_v59 = vmul.f32 %v14102_v20, %v15308_v38  ;;  %v7394_v3 = vmul.f32 %v14135_v17, %v15309_v47  ;;  %v7395_v50 = vmul.f32 %v14129_v56, %v15310_v40 }
 0x36c   : > { %v7821_v53 = vmax.f32 %v7809_v19, %v14099_v31  ;;  %v7768_v27 = vsel %vm7219_vm8, %v7656_v15, %v7767_v54  ;;  %v7396_v1 = vmul.f32 %v14147_v29, %v13975_v0  ;;  %v7668_v11 = vrot.slane %v7389_v18, %v15194_v10 }
 0x36d   : > { %v7769_v6 = vsel %vm7221_vm9, %v7660_v2, %v7768_v27  ;;  %v7672_v20 = vrot.slane %v7390_v51, %v15194_v10  ;;  %v7676_v23 = vrot.slane %v7391_v44, %v15194_v10  ;;  %v7680_v17 = vrot.slane %v7392_v46, %v15194_v10  ;;  %v11413_v51 = vld [vmem:[%s11596_s17 + $0x18] sm:$0xff] }
 0x36e   : > { %7851 = vst.msk [vmem:[#allocation3 + $0x51] sm:$0xff] %vm1716_vm1, %v7821_v53  ;;  %v7770_v56 = vsel %vm7223_vm10, %v7664_v49, %v7769_v6  ;;  %v7684_v39 = vrot.slane %v7393_v59, %v15194_v10  ;;  %v7688_v13 = vrot.slane %v7394_v3, %v15194_v10  ;;  %v7692_v0 = vrot.slane %v7395_v50, %v15194_v10 }
 0x36f   : > { %v14429_v29 = vld [vmem:[#allocation3 + $0x41] sm:$0xff]  ;;  %v7798_v5 = vmul.f32 %v7770_v56, %v14092_v26  ;;  %v7696_v33 = vrot.slane %v7396_v1, %v15194_v10  ;;  %v7771_v12 = vsel %vm7211_vm4, %v7672_v20, %v7668_v11  ;;  %v370_v63 = vcombine.high %v11410_v45, %v11410_v45 }
 0x370   : > { %15311 = vst [vmem:[#allocation17_spill] sm:$0xff] %v14429_v29  ;;  %11263 = vmatprep.mubr.msk.f32.mxu1 %vm1716_vm1, %v14429_v29  ;;  %11317 = vmatmul.mubr.msk.f32.gmra.mxu0 %vm1716_vm1, %v14429_v29  ;;  %v7772_v62 = vsel %vm7213_vm5, %v7676_v23, %v7771_v12  ;;  %v377_v8 = vrot.slane %v11410_v45, %v13268_v35 }
 0x371   : > { %v387_v4 = vcombine.high %v11411_v25, %v11411_v25  ;;  %v7810_v28 = vadd.f32 %v14096_v52, %v7798_v5  ;;  %v7773_v24 = vsel %vm7215_vm6, %v7680_v17, %v7772_v62  ;;  %v384_v14 = vrot.slane %v370_v63, %v13268_v35 }
 0x372   : > { %v394_v34 = vrot.slane %v11411_v25, %v13268_v35  ;;  %v7774_v21 = vsel %vm7217_vm7, %v7684_v39, %v7773_v24  ;;  %v385_v58 = vcombine.high %v377_v8, %v377_v8  ;;  %v404_v9 = vcombine.high %v11412_v30, %v11412_v30 }
 0x373   : > { %v401_v22 = vrot.slane %v387_v4, %v13268_v35  ;;  %v7822_v57 = vmax.f32 %v7810_v28, %v14099_v31  ;;  %v7775_v15 = vsel %vm7219_vm8, %v7688_v13, %v7774_v21  ;;  %v386_v36 = vcombine.high %v384_v14, %v384_v14 }
 0x374   : > { %v402_v2 = vcombine.high %v394_v34, %v394_v34  ;;  %v7776_v49 = vsel %vm7221_vm9, %v7692_v0, %v7775_v15  ;;  %v411_v7 = vrot.slane %v11412_v30, %v13268_v35  ;;  %v418_v37 = vrot.slane %v404_v9, %v13268_v35 }
 0x375   : > { %v403_v43 = vcombine.high %v401_v22, %v401_v22  ;;  %v14454_v18 = vld [vmem:[#allocation3 + $0x51] sm:$0xff]  ;;  %7852 = vst.msk [vmem:[#allocation3 + $0x61] sm:$0xff] %vm1716_vm1, %v7822_v57  ;;  %v7777_v42 = vsel %vm7223_vm10, %v7696_v33, %v7776_v49  ;;  %v421_v19 = vcombine.high %v11413_v51, %v11413_v51  ;;  %v428_v32 = vrot.slane %v11413_v51, %v13268_v35 }
 0x376   : > { %15312 = vst [vmem:[#allocation4_spill] sm:$0xff] %v14454_v18  ;;  %v9769_v60 = vrot.slane %v377_v8, 9  ;;  %11319 = vmatprep.mubr.msk.f32.mxu0 %vm1716_vm1, %v14454_v18  ;;  %11264 = vmatmul.mubr.msk.f32.gmra.mxu1 %vm1716_vm1, %v14454_v18  ;;  %v7799_v44 = vmul.f32 %v7777_v42, %v14092_v26  ;;  %v419_v48 = vcombine.high %v411_v7, %v411_v7  ;;  %v9770_v54 = vrot.slane %v385_v58, 9 }
 0x377   : > { %v420_v46 = vcombine.high %v418_v37, %v418_v37  ;;  %v435_v38 = vrot.slane %v421_v19, %v13268_v35  ;;  %v436_v59 = vcombine.high %v428_v32, %v428_v32  ;;  %v9771_v47 = vrot.slane %v384_v14, 9 }
 0x378   : > { %v9772_v3 = vrot.slane %v386_v36, 9  ;;  %v7811_v40 = vadd.f32 %v14096_v52, %v7799_v44  ;;  %v9773_v50 = vrot.slane %v394_v34, 9  ;;  %v9774_v53 = vrot.slane %v402_v2, 9 }
 0x379   : > { %v9775_v27 = vrot.slane %v401_v22, 9  ;;  %v437_v1 = vcombine.high %v435_v38, %v435_v38  ;;  %v9776_v11 = vrot.slane %v403_v43, 9  ;;  %v9777_v6 = vrot.slane %v411_v7, 9 }
 0x37a   : > { %v9778_v20 = vrot.slane %v419_v48, 9  ;;  %v7823_v23 = vmax.f32 %v7811_v40, %v14099_v31  ;;  %v9779_v26 = vrot.slane %v418_v37, 9  ;;  %v9780_v17 = vrot.slane %v420_v46, 9  ;;  %v14489_v40 = vld [vmem:[#allocation3 + $0x20] sm:$0xff] }
 0x37b   : > { %v9781_v56 = vrot.slane %v428_v32, 9  ;;  %v9782_v39 = vrot.slane %v436_v59, 9  ;;  %v9783_v13 = vrot.slane %v435_v38, 9  ;;  %v9784_v0 = vrot.slane %v437_v1, 9 }
 0x37c   : > { %v1426_v5 = vadd.f32 %v9769_v60, %v377_v8  ;;  %v14468_v33 = vld [vmem:[#allocation3 + $0x61] sm:$0xff]  ;;  %7853 = vst.msk [vmem:[#allocation3 + $0x71] sm:$0xff] %vm1716_vm1, %v7823_v23  ;;  %v1427_v52 = vadd.f32 %v9770_v54, %v385_v58  ;;  %v1428_v12 = vadd.f32 %v9771_v47, %v384_v14  ;;  %v1429_v45 = vadd.f32 %v9772_v3, %v386_v36  ;;  %v14501_v23 = vld [vmem:[#allocation3 + $0x10] sm:$0xff] }
 0x37d   : > { %15313 = vst [vmem:[#allocation11_spill] sm:$0xff] %v14468_v33  ;;  %v1430_v63 = vadd.f32 %v9773_v50, %v394_v34  ;;  %11266 = vmatprep.mubr.msk.f32.mxu1 %vm1716_vm1, %v14468_v33  ;;  %11320 = vmatmul.mubr.msk.f32.gmra.mxu0 %vm1716_vm1, %v14468_v33  ;;  %v1431_v31 = vadd.f32 %v9774_v53, %v402_v2  ;;  %v7855_v2 = vld [vmem:[#allocation3] sm:$0xff] }
 0x37e   : > { %v1432_v62 = vadd.f32 %v9775_v27, %v401_v22  ;;  %v1433_v25 = vadd.f32 %v9776_v11, %v403_v43  ;;  %v1434_v4 = vadd.f32 %v9777_v6, %v411_v7  ;;  %v1435_v28 = vadd.f32 %v9778_v20, %v419_v48  ;;  %v11414_v48 = vld [vmem:[%s11596_s17 + $0x20] sm:$0xff]  ;;  %v14482_v54 = vld [vmem:[#allocation3 + $0x81] sm:$0xff] }
 0x37f   : > { %v1436_v8 = vadd.f32 %v9779_v26, %v418_v37  ;;  %v1437_v24 = vadd.f32 %v9780_v17, %v420_v46  ;;  %v1438_v21 = vadd.f32 %v9781_v56, %v428_v32  ;;  %v1439_v30 = vadd.f32 %v9782_v39, %v436_v59  ;;  %15315 = vst [vmem:[#allocation10_spill] sm:$0xff] %v14482_v54  ;;  %v14506_v26 = vld [vmem:[%s14993_s5 + $0xc] sm:$0xf] }
 0x380   : > { %v1440_v9 = vadd.f32 %v9783_v13, %v435_v38  ;;  %v1441_v58 = vadd.f32 %v9784_v0, %v437_v1  ;;  %v1554_v14 = vadd.f32 %v1434_v4, %v1426_v5  ;;  %v1555_v57 = vadd.f32 %v1435_v28, %v1427_v52  ;;  %v11415_v39 = vld [vmem:[%s11596_s17 + $0x28] sm:$0xff] }
 0x381   : > { %v1556_v34 = vadd.f32 %v1436_v8, %v1428_v12  ;;  %v1557_v15 = vadd.f32 %v1437_v24, %v1429_v45  ;;  %v1558_v36 = vadd.f32 %v1438_v21, %v1430_v63  ;;  %v1559_v49 = vadd.f32 %v1439_v30, %v1431_v31  ;;  %v11416_v12 = vld [vmem:[%s11596_s17 + $0x30] sm:$0xff]  ;;  %v14523_v31 = vld [vmem:[#allocation3 + $0x30] sm:$0xff] }
 0x382   : > { %v1560_v42 = vadd.f32 %v1440_v9, %v1432_v62  ;;  %v1561_v51 = vadd.f32 %v1441_v58, %v1433_v25  ;;  %v1618_v22 = vmul.f32 0.25, %v1554_v14  ;;  %v1619_v43 = vmul.f32 0.25, %v1555_v57  ;;  %v14529_v8 = vld [vmem:[#allocation3 + $0x40] sm:$0xff] }
 0x383   : > { %v1620_v7 = vmul.f32 0.25, %v1556_v34  ;;  %v1621_v19 = vmul.f32 0.25, %v1557_v15  ;;  %v14475_v37 = vld [vmem:[#allocation3 + $0x71] sm:$0xff]  ;;  %v1622_v32 = vmul.f32 0.25, %v1558_v36  ;;  %v1623_v60 = vmul.f32 0.25, %v1559_v49  ;;  %v11417_v36 = vld [vmem:[%s11596_s17 + $0x38] sm:$0xff] }
 0x384   : > { %15314 = vst [vmem:[#allocation30_spill] sm:$0xff] %v14475_v37  ;;  %v1624_v44 = vmul.f32 0.25, %v1560_v42  ;;  %v438_v46 = vcombine.high %v11414_v48, %v11414_v48  ;;  %11322 = vmatprep.mubr.msk.f32.mxu0 %vm1716_vm1, %v14475_v37  ;;  %11267 = vmatmul.mubr.msk.f32.gmra.mxu1 %vm1716_vm1, %v14475_v37  ;;  %v1625_v38 = vmul.f32 0.25, %v1561_v51  ;;  %v9263_v59 = vrot.slane %v1618_v22, %v15194_v10 }
 0x385   : > { %v9267_v47 = vrot.slane %v1619_v43, %v15194_v10  ;;  %v9271_v3 = vrot.slane %v1620_v7, %v15194_v10  ;;  %11323 = vmatmul.mubr.msk.f32.gmra.mxu0 %vm1716_vm1, %v14482_v54  ;;  %11271 = vmatprep.mubr.msk.f32.mxu1 %vm1716_vm1, %v7855_v2  ;;  %v9275_v50 = vrot.slane %v1621_v19, %v15194_v10  ;;  %v14555_v7 = vld [vmem:[#allocation3 + $0x60] sm:$0xff] }
 0x386   : > { %v9279_v53 = vrot.slane %v1622_v32, %v15194_v10  ;;  %v9283_v27 = vrot.slane %v1623_v60, %v15194_v10  ;;  %11341 = vmatprep.mubr.msk.f32.mxu0 %vm1716_vm1, %v14489_v40  ;;  %v9287_v1 = vrot.slane %v1624_v44, %v15194_v10  ;;  %v9291_v11 = vrot.slane %v1625_v38, %v15194_v10 }
 0x387   : > { %v9516_v6 = vsel %vm7211_vm4, %v9267_v47, %v9263_v59  ;;  %v445_v20 = vrot.slane %v11414_v48, %v13268_v35  ;;  %v452_v56 = vrot.slane %v438_v46, %v13268_v35  ;;  %v455_v13 = vcombine.high %v11415_v39, %v11415_v39 }
 0x388   : > { %v9517_v17 = vsel %vm7213_vm5, %v9271_v3, %v9516_v6  ;;  %v462_v0 = vrot.slane %v11415_v39, %v13268_v35  ;;  %11272 = vmatmul.mubr.msk.f32.vlgmr.msra.gmra.mxu1 %vm1716_vm1, %v14501_v23  ;;  %v472_v45 = vcombine.high %v11416_v12, %v11416_v12  ;;  %v14517_v63 = vrot.slane %v11416_v12, %v13268_v35  ;;  %v14569_v39 = vld [vmem:[#allocation3 + $0x80] sm:$0xff] }
 0x389   : > { %v9518_v5 = vsel %vm7215_vm6, %v9275_v50, %v9517_v17  ;;  %v453_v52 = vcombine.high %v445_v20, %v445_v20  ;;  %11284 = vmatpush3.msk.msra.mxu1 %vm2166_vm0, %v14302_v16  ;;  %11274 = vmatprep.mubr.msk.f32.mxu1 %vm1716_vm1, %v14489_v40  ;;  %v454_v25 = vcombine.high %v452_v56, %v452_v56  ;;  %v9785_v28 = vrot.slane %v445_v20, 9 }
 0x38a   : > { %v9519_v62 = vsel %vm7217_vm7, %v9279_v53, %v9518_v5  ;;  %v469_v4 = vrot.slane %v455_v13, %v13268_v35  ;;  %11342 = vmatmul.mubr.msk.f32.vlgmr.msra.gmra.mxu0 %vm1716_vm1, %v14523_v31  ;;  %11297 = vmatprep.subr.msk.mxu1 %vm2166_vm0, %v14506_v26  ;;  %v470_v24 = vcombine.high %v462_v0, %v462_v0  ;;  %v9787_v57 = vrot.slane %v452_v56, 9  ;;  %v8137_v13 = vld [vmem:[#allocation3 + $0x2] sm:$0xff] }
 0x38b   : > { %v9520_v16 = vsel %vm7219_vm8, %v9283_v27, %v9519_v62  ;;  %v486_v21 = vrot.slane %v472_v45, %v13268_v35  ;;  %v9786_v30 = vrot.slane %v453_v52, 9  ;;  %11344 = vmatprep.mubr.msk.f32.mxu0 %vm1716_vm1, %v14529_v8  ;;  %11368 = vmatpush3.msk.msra.mxu0 %vm2166_vm0, %v14351_v55  ;;  %v487_v14 = vcombine.high %v14517_v63, %v14517_v63  ;;  %v14551_v55 = vld [vmem:[#allocation3 + $0x50] sm:$0xff] }
 0x38c   : > { %v9521_v9 = vsel %vm7221_vm9, %v9287_v1, %v9520_v16  ;;  %v471_v58 = vcombine.high %v469_v4, %v469_v4  ;;  %11275 = vmatmul.mubr.msk.f32.gmra.mxu1 %vm1716_vm1, %v14523_v31  ;;  %v489_v49 = vcombine.high %v11417_v36, %v11417_v36  ;;  %v496_v42 = vrot.slane %v11417_v36, %v13268_v35  ;;  %v14565_v27 = vld [vmem:[#allocation3 + $0x70] sm:$0xff]  ;;  %v14578_v36 = vld [vmem:[#allocation3 + $0x22] sm:$0xff] }
 0x38d   : > { %v14545_v34 = vsel %vm7223_vm10, %v9291_v11, %v9521_v9  ;;  %v488_v15 = vcombine.high %v486_v21, %v486_v21  ;;  %11277 = vmatprep.mubr.msk.f32.mxu1 %vm1716_vm1, %v14529_v8  ;;  %v9788_v51 = vrot.slane %v454_v25, 9  ;;  %v9789_v2 = vrot.slane %v462_v0, 9 }
 0x38e   : > { %15316 = vst [vmem:[#allocation25_spill] sm:$0xff] %v14545_v34  ;;  %v9790_v22 = vrot.slane %v470_v24, 9  ;;  %v9791_v43 = vrot.slane %v469_v4, 9  ;;  %11345 = vmatmul.mubr.msk.f32.gmra.mxu0 %vm1716_vm1, %v14551_v55  ;;  %v503_v19 = vrot.slane %v489_v49, %v13268_v35  ;;  %v504_v32 = vcombine.high %v496_v42, %v496_v42 }
 0x38f   : > { %v9792_v60 = vrot.slane %v471_v58, 9  ;;  %v9793_v44 = vrot.slane %v14517_v63, 9  ;;  %11347 = vmatprep.mubr.msk.f32.mxu0 %vm1716_vm1, %v14555_v7  ;;  %v9794_v48 = vrot.slane %v487_v14, 9  ;;  %v9795_v46 = vrot.slane %v486_v21, 9 }
 0x390   : > { %v9796_v38 = vrot.slane %v488_v15, 9  ;;  %v9797_v59 = vrot.slane %v496_v42, 9  ;;  %11278 = vmatmul.mubr.msk.f32.gmra.mxu1 %vm1716_vm1, %v14551_v55  ;;  %v505_v47 = vcombine.high %v503_v19, %v503_v19  ;;  %v9798_v3 = vrot.slane %v504_v32, 9 }
 0x391   : > { %v9799_v50 = vrot.slane %v503_v19, 9  ;;  %v1442_v53 = vadd.f32 %v9785_v28, %v445_v20  ;;  %11280 = vmatprep.mubr.msk.f32.mxu1 %vm1716_vm1, %v14555_v7  ;;  %v1443_v1 = vadd.f32 %v9786_v30, %v453_v52  ;;  %v1444_v11 = vadd.f32 %v9787_v57, %v452_v56  ;;  %v8741_v20 = vld [vmem:[#allocation3 + $0x90] sm:$0xff] }
 0x392   : > { %v1445_v6 = vadd.f32 %v9788_v51, %v454_v25  ;;  %v1446_v17 = vadd.f32 %v9789_v2, %v462_v0  ;;  %11348 = vmatmul.mubr.msk.f32.gmra.mxu0 %vm1716_vm1, %v14565_v27  ;;  %v9800_v5 = vrot.slane %v505_v47, 9  ;;  %v1447_v12 = vadd.f32 %v9790_v22, %v470_v24 }
 0x393   : > { %v1448_v45 = vadd.f32 %v9791_v43, %v469_v4  ;;  %v1449_v62 = vadd.f32 %v9792_v60, %v471_v58  ;;  %11350 = vmatprep.mubr.msk.f32.mxu0 %vm1716_vm1, %v14569_v39  ;;  %v1450_v28 = vadd.f32 %v9793_v44, %v14517_v63  ;;  %v1451_v52 = vadd.f32 %v9794_v48, %v487_v14  ;;  %v14583_v63 = vld [vmem:[%s14993_s5 + $0x14] sm:$0xf]  ;;  %v14595_v48 = vld [vmem:[#allocation3 + $0x32] sm:$0xff] }
 0x394   : > { %v1452_v56 = vadd.f32 %v9795_v46, %v486_v21  ;;  %v1453_v25 = vadd.f32 %v9796_v38, %v488_v15  ;;  %11281 = vmatmul.mubr.msk.f32.gmra.mxu1 %vm1716_vm1, %v14565_v27  ;;  %v1454_v0 = vadd.f32 %v9797_v59, %v496_v42  ;;  %v1455_v16 = vadd.f32 %v9798_v3, %v504_v32  ;;  %v14587_v42 = vld [vmem:[#allocation3 + $0x12] sm:$0xff] }
 0x395   : > { %v1456_v30 = vadd.f32 %v9799_v50, %v503_v19  ;;  %v1457_v9 = vadd.f32 %v9800_v5, %v505_v47  ;;  %11285 = vmatprep.mubr.msk.f32.mxu1 %vm1716_vm1, %v8137_v13  ;;  %v1562_v4 = vadd.f32 %v1450_v28, %v1442_v53  ;;  %v1563_v24 = vadd.f32 %v1451_v52, %v1443_v1  ;;  %v14602_v47 = vld [vmem:[#allocation3 + $0x42] sm:$0xff] }
 0x396   : > { %v1564_v58 = vadd.f32 %v1452_v56, %v1444_v11  ;;  %v1565_v57 = vadd.f32 %v1453_v25, %v1445_v6  ;;  %11351 = vmatmul.mubr.msk.f32.gmra.mxu0 %vm1716_vm1, %v8741_v20  ;;  %v1566_v21 = vadd.f32 %v1454_v0, %v1446_v17  ;;  %v1567_v14 = vadd.f32 %v1455_v16, %v1447_v12  ;;  %v11418_v6 = vld [vmem:[%s11596_s17 + $0x40] sm:$0xff]  ;;  %v11419_v12 = vld [vmem:[%s11596_s17 + $0x48] sm:$0xff]  ;;  %v11420_v56 = vld [vmem:[%s11596_s17 + $0x50] sm:$0xff] }
 0x397   : > { %v1568_v15 = vadd.f32 %v1456_v30, %v1448_v45  ;;  %v1569_v49 = vadd.f32 %v1457_v9, %v1449_v62  ;;  %11369 = vmatprep.mubr.msk.f32.mxu0 %vm1716_vm1, %v14578_v36  ;;  %v1626_v51 = vmul.f32 0.25, %v1562_v4  ;;  %v1627_v2 = vmul.f32 0.25, %v1563_v24  ;;  %v14623_v20 = vld [vmem:[#allocation3 + $0x52] sm:$0xff]  ;;  %v14631_v16 = vld [vmem:[#allocation3 + $0x62] sm:$0xff] }
 0x398   : > { %v1628_v22 = vmul.f32 0.25, %v1564_v58  ;;  %v1629_v43 = vmul.f32 0.25, %v1565_v57  ;;  %11286 = vmatmul.mubr.msk.f32.vlgmr.msra.gmra.mxu1 %vm1716_vm1, %v14587_v42  ;;  %v1630_v19 = vmul.f32 0.25, %v1566_v21  ;;  %v1631_v32 = vmul.f32 0.25, %v1567_v14 }
 0x399   : > { %v1632_v60 = vmul.f32 0.25, %v1568_v15  ;;  %v1633_v44 = vmul.f32 0.25, %v1569_v49  ;;  %11298 = vmatpush3.msk.msra.mxu1 %vm2166_vm0, %v14506_v26  ;;  %11288 = vmatprep.mubr.msk.f32.mxu1 %vm1716_vm1, %v14578_v36  ;;  %v9295_v46 = vrot.slane %v1626_v51, %v15194_v10  ;;  %v9299_v38 = vrot.slane %v1627_v2, %v15194_v10  ;;  %v11421_v51 = vld [vmem:[%s11596_s17 + $0x58] sm:$0xff] }
 0x39a   : > { %v9303_v59 = vrot.slane %v1628_v22, %v15194_v10  ;;  %11370 = vmatmul.mubr.msk.f32.vlgmr.msra.gmra.mxu0 %vm1716_vm1, %v14595_v48  ;;  %11325 = vmatprep.subr.msk.mxu1 %vm2166_vm0, %v14583_v63  ;;  %v9307_v26 = vrot.slane %v1629_v43, %v15194_v10  ;;  %v9311_v3 = vrot.slane %v1630_v19, %v15194_v10  ;;  %v14646_v43 = vld [vmem:[#allocation3 + $0x72] sm:$0xff] }
 0x39b   : > { %v9315_v50 = vrot.slane %v1631_v32, %v15194_v10  ;;  %11372 = vmatprep.mubr.msk.f32.mxu0 %vm1716_vm1, %v14602_v47  ;;  %v9319_v53 = vrot.slane %v1632_v60, %v15194_v10  ;;  %v9323_v1 = vrot.slane %v1633_v44, %v15194_v10  ;;  %v9523_v11 = vsel %vm7211_vm4, %v9299_v38, %v9295_v46  ;;  %v14653_v46 = vld [vmem:[#allocation3 + $0x82] sm:$0xff] }
 0x39c   : > { %v506_v17 = vcombine.high %v11418_v6, %v11418_v6  ;;  %11289 = vmatmul.mubr.msk.f32.gmra.mxu1 %vm1716_vm1, %v14595_v48  ;;  %v9524_v13 = vsel %vm7213_vm5, %v9303_v59, %v9523_v11  ;;  %v513_v5 = vrot.slane %v11418_v6, %v13268_v35  ;;  %v523_v45 = vcombine.high %v11419_v12, %v11419_v12 }
 0x39d   : > { %v530_v62 = vrot.slane %v11419_v12, %v13268_v35  ;;  %11291 = vmatprep.mubr.msk.f32.mxu1 %vm1716_vm1, %v14602_v47  ;;  %v9525_v28 = vsel %vm7215_vm6, %v9307_v26, %v9524_v13  ;;  %v540_v25 = vcombine.high %v11420_v56, %v11420_v56  ;;  %v547_v0 = vrot.slane %v11420_v56, %v13268_v35 }
 0x39e   : > { %v520_v52 = vrot.slane %v506_v17, %v13268_v35  ;;  %11373 = vmatmul.mubr.msk.f32.gmra.mxu0 %vm1716_vm1, %v14623_v20  ;;  %v9526_v30 = vsel %vm7217_vm7, %v9311_v3, %v9525_v28  ;;  %v521_v9 = vcombine.high %v513_v5, %v513_v5  ;;  %v537_v4 = vrot.slane %v523_v45, %v13268_v35 }
 0x39f   : > { %v538_v24 = vcombine.high %v530_v62, %v530_v62  ;;  %11375 = vmatprep.mubr.msk.f32.mxu0 %vm1716_vm1, %v14631_v16  ;;  %v9527_v58 = vsel %vm7219_vm8, %v9315_v50, %v9526_v30  ;;  %v554_v21 = vrot.slane %v540_v25, %v13268_v35  ;;  %v555_v14 = vcombine.high %v547_v0, %v547_v0  ;;  %v9039_v50 = vld [vmem:[#allocation3 + $0x92] sm:$0xff] }
 0x3a0   : > { %v522_v57 = vcombine.high %v520_v52, %v520_v52  ;;  %11292 = vmatmul.mubr.msk.f32.gmra.mxu1 %vm1716_vm1, %v14623_v20  ;;  %v9528_v15 = vsel %vm7221_vm9, %v9319_v53, %v9527_v58  ;;  %v539_v49 = vcombine.high %v537_v4, %v537_v4  ;;  %v557_v2 = vcombine.high %v11421_v51, %v11421_v51 }
 0x3a1   : > { %v564_v22 = vrot.slane %v11421_v51, %v13268_v35  ;;  %11294 = vmatprep.mubr.msk.f32.mxu1 %vm1716_vm1, %v14631_v16  ;;  %v14649_v19 = vsel %vm7223_vm10, %v9323_v1, %v9528_v15  ;;  %v556_v32 = vcombine.high %v554_v21, %v554_v21  ;;  %v9801_v60 = vrot.slane %v513_v5, 9 }
 0x3a2   : > { %15317 = vst [vmem:[#allocation26_spill] sm:$0xff] %v14649_v19  ;;  %v9802_v44 = vrot.slane %v521_v9, 9  ;;  %11376 = vmatmul.mubr.msk.f32.gmra.mxu0 %vm1716_vm1, %v14646_v43  ;;  %v571_v38 = vrot.slane %v557_v2, %v13268_v35  ;;  %v9803_v26 = vrot.slane %v520_v52, 9  ;;  %v9804_v3 = vrot.slane %v522_v57, 9  ;;  %v14666_v19 = vld [vmem:[%s14993_s5 + $0x1c] sm:$0xf] }
 0x3a3   : > { %v572_v59 = vcombine.high %v564_v22, %v564_v22  ;;  %11378 = vmatprep.mubr.msk.f32.mxu0 %vm1716_vm1, %v14653_v46  ;;  %v9805_v53 = vrot.slane %v530_v62, 9  ;;  %v9806_v1 = vrot.slane %v538_v24, 9  ;;  %v9807_v11 = vrot.slane %v537_v4, 9 }
 0x3a4   : > { %v9808_v6 = vrot.slane %v539_v49, 9  ;;  %11295 = vmatmul.mubr.msk.f32.gmra.mxu1 %vm1716_vm1, %v14646_v43  ;;  %v573_v17 = vcombine.high %v571_v38, %v571_v38  ;;  %v9809_v13 = vrot.slane %v547_v0, 9  ;;  %v9810_v12 = vrot.slane %v555_v14, 9 }
 0x3a5   : > { %v9811_v45 = vrot.slane %v554_v21, 9  ;;  %11299 = vmatprep.mubr.msk.f32.mxu1 %vm1716_vm1, %v14501_v23  ;;  %v9812_v28 = vrot.slane %v556_v32, 9  ;;  %v9813_v56 = vrot.slane %v564_v22, 9  ;;  %v9814_v25 = vrot.slane %v572_v59, 9 }
 0x3a6   : > { %v9815_v30 = vrot.slane %v571_v38, 9  ;;  %11379 = vmatmul.mubr.msk.f32.gmra.mxu0 %vm1716_vm1, %v9039_v50  ;;  %v9816_v58 = vrot.slane %v573_v17, 9  ;;  %v1458_v15 = vadd.f32 %v9801_v60, %v513_v5  ;;  %v1459_v51 = vadd.f32 %v9802_v44, %v521_v9 }
 0x3a7   : > { %v1460_v2 = vadd.f32 %v9803_v26, %v520_v52  ;;  %v1461_v34 = vadd.f32 %v9804_v3, %v522_v57  ;;  %v1462_v54 = vadd.f32 %v9805_v53, %v530_v62  ;;  %v1463_v37 = vadd.f32 %v9806_v1, %v538_v24  ;;  %v11422_v53 = vld [vmem:[%s11596_s17 + $0x60] sm:$0xff] }
 0x3a8   : > { %v1464_v33 = vadd.f32 %v9807_v11, %v537_v4  ;;  %11300 = vmatmul.mubr.msk.f32.vlgmr.msra.gmra.mxu1 %vm1716_vm1, %v14489_v40  ;;  %v1465_v23 = vadd.f32 %v9808_v6, %v539_v49  ;;  %v1466_v18 = vadd.f32 %v9809_v13, %v547_v0  ;;  %v1467_v29 = vadd.f32 %v9810_v12, %v555_v14 }
 0x3a9   : > { %v1468_v50 = vadd.f32 %v9811_v45, %v554_v21  ;;  %11326 = vmatpush3.msk.msra.mxu1 %vm2166_vm0, %v14583_v63  ;;  %11302 = vmatprep.mubr.msk.f32.mxu1 %vm1716_vm1, %v14523_v31  ;;  %v1469_v5 = vadd.f32 %v9812_v28, %v556_v32  ;;  %v1470_v52 = vadd.f32 %v9813_v56, %v564_v22  ;;  %v11424_v28 = vld [vmem:[%s11596_s17 + $0x70] sm:$0xff] }
 0x3aa   : > { %v1471_v9 = vadd.f32 %v9814_v25, %v572_v59  ;;  %11353 = vmatprep.subr.msk.mxu1 %vm2166_vm0, %v14666_v19  ;;  %v1472_v62 = vadd.f32 %v9815_v30, %v571_v38  ;;  %v1473_v4 = vadd.f32 %v9816_v58, %v573_v17  ;;  %v1570_v24 = vadd.f32 %v1466_v18, %v1458_v15  ;;  %v11423_v17 = vld [vmem:[%s11596_s17 + $0x68] sm:$0xff] }
 0x3ab   : > { %v1571_v40 = vadd.f32 %v1467_v29, %v1459_v51  ;;  %v1572_v57 = vadd.f32 %v1468_v50, %v1460_v2  ;;  %v1573_v0 = vadd.f32 %v1469_v5, %v1461_v34  ;;  %v1574_v14 = vadd.f32 %v1470_v52, %v1462_v54 }
 0x3ac   : > { %v1575_v21 = vadd.f32 %v1471_v9, %v1463_v37  ;;  %11303 = vmatmul.mubr.msk.f32.gmra.mxu1 %vm1716_vm1, %v14529_v8  ;;  %v1576_v63 = vadd.f32 %v1472_v62, %v1464_v33  ;;  %v1577_v49 = vadd.f32 %v1473_v4, %v1465_v23  ;;  %v1634_v31 = vmul.f32 0.25, %v1570_v24  ;;  %v11425_v9 = vld [vmem:[%s11596_s17 + $0x78] sm:$0xff] }
 0x3ad   : > { %v1635_v32 = vmul.f32 0.25, %v1571_v40  ;;  %11305 = vmatprep.mubr.msk.f32.mxu1 %vm1716_vm1, %v14551_v55  ;;  %v1636_v22 = vmul.f32 0.25, %v1572_v57  ;;  %v1637_v60 = vmul.f32 0.25, %v1573_v0  ;;  %v1638_v44 = vmul.f32 0.25, %v1574_v14  ;;  %v14719_v0 = vld [vmem:[%s14995_s7] sm:$0xf] }
 0x3ae   : > { %v1639_v18 = vmul.f32 0.25, %v1575_v21  ;;  %v1640_v29 = vmul.f32 0.25, %v1576_v63  ;;  %v1641_v38 = vmul.f32 0.25, %v1577_v49  ;;  %v9327_v37 = vrot.slane %v1634_v31, %v15194_v10 }
 0x3af   : > { %v9331_v54 = vrot.slane %v1635_v32, %v15194_v10  ;;  %v9335_v33 = vrot.slane %v1636_v22, %v15194_v10  ;;  %v9339_v8 = vrot.slane %v1637_v60, %v15194_v10  ;;  %v9343_v34 = vrot.slane %v1638_v44, %v15194_v10 }
 0x3b0   : > { %v9347_v55 = vrot.slane %v1639_v18, %v15194_v10  ;;  %11306 = vmatmul.mubr.msk.f32.gmra.mxu1 %vm1716_vm1, %v14555_v7  ;;  %v9351_v59 = vrot.slane %v1640_v29, %v15194_v10  ;;  %v9355_v26 = vrot.slane %v1641_v38, %v15194_v10  ;;  %v574_v1 = vcombine.high %v11422_v53, %v11422_v53 }
 0x3b1   : > { %v9530_v3 = vsel %vm7211_vm4, %v9331_v54, %v9327_v37  ;;  %11308 = vmatprep.mubr.msk.f32.mxu1 %vm1716_vm1, %v14565_v27  ;;  %v581_v6 = vrot.slane %v11422_v53, %v13268_v35  ;;  %v591_v13 = vcombine.high %v11423_v17, %v11423_v17  ;;  %v598_v12 = vrot.slane %v11423_v17, %v13268_v35 }
 0x3b2   : > { %v9531_v11 = vsel %vm7213_vm5, %v9335_v33, %v9530_v3  ;;  %v588_v45 = vrot.slane %v574_v1, %v13268_v35  ;;  %v608_v56 = vcombine.high %v11424_v28, %v11424_v28  ;;  %v615_v25 = vrot.slane %v11424_v28, %v13268_v35 }
 0x3b3   : > { %v9532_v7 = vsel %vm7215_vm6, %v9339_v8, %v9531_v11  ;;  %v589_v27 = vcombine.high %v581_v6, %v581_v6  ;;  %v605_v58 = vrot.slane %v591_v13, %v13268_v35  ;;  %v606_v15 = vcombine.high %v598_v12, %v598_v12 }
 0x3b4   : > { %v9533_v30 = vsel %vm7217_vm7, %v9343_v34, %v9532_v7  ;;  %11309 = vmatmul.mubr.msk.f32.gmra.mxu1 %vm1716_vm1, %v14569_v39  ;;  %v590_v2 = vcombine.high %v588_v45, %v588_v45  ;;  %v622_v23 = vrot.slane %v608_v56, %v13268_v35  ;;  %v623_v50 = vcombine.high %v615_v25, %v615_v25 }
 0x3b5   : > { %v9534_v51 = vsel %vm7219_vm8, %v9347_v55, %v9533_v30  ;;  %11327 = vmatprep.mubr.msk.f32.mxu1 %vm1716_vm1, %v14587_v42  ;;  %v607_v52 = vcombine.high %v605_v58, %v605_v58  ;;  %v625_v62 = vcombine.high %v11425_v9, %v11425_v9  ;;  %v632_v4 = vrot.slane %v11425_v9, %v13268_v35 }
 0x3b6   : > { %v9535_v5 = vsel %vm7221_vm9, %v9351_v59, %v9534_v51  ;;  %v624_v39 = vcombine.high %v622_v23, %v622_v23  ;;  %v9817_v40 = vrot.slane %v581_v6, 9  ;;  %v9818_v57 = vrot.slane %v589_v27, 9 }
 0x3b7   : > { %v14714_v24 = vsel %vm7223_vm10, %v9355_v26, %v9535_v5  ;;  %v639_v42 = vrot.slane %v625_v62, %v13268_v35  ;;  %v640_v14 = vcombine.high %v632_v4, %v632_v4  ;;  %v9819_v21 = vrot.slane %v588_v45, 9 }
 0x3b8   : > { %v9820_v63 = vrot.slane %v590_v2, 9  ;;  %11328 = vmatmul.mubr.msk.f32.vlgmr.msra.gmra.mxu1 %vm1716_vm1, %v14578_v36  ;;  %v9821_v49 = vrot.slane %v598_v12, 9  ;;  %v9822_v31 = vrot.slane %v606_v15, 9  ;;  %v9823_v32 = vrot.slane %v605_v58, 9 }
 0x3b9   : > { %v9824_v22 = vrot.slane %v607_v52, 9  ;;  %11354 = vmatpush3.msk.msra.mxu1 %vm2166_vm0, %v14666_v19  ;;  %11330 = vmatprep.mubr.msk.f32.mxu1 %vm1716_vm1, %v14595_v48  ;;  %v641_v60 = vcombine.high %v639_v42, %v639_v42  ;;  %v9825_v44 = vrot.slane %v615_v25, 9  ;;  %v9826_v18 = vrot.slane %v623_v50, 9 }
 0x3ba   : > { %v9827_v29 = vrot.slane %v622_v23, 9  ;;  %11381 = vmatprep.subr.msk.mxu1 %vm2166_vm0, %v14719_v0  ;;  %v9828_v38 = vrot.slane %v624_v39, 9  ;;  %v9829_v37 = vrot.slane %v632_v4, 9  ;;  %v9830_v36 = vrot.slane %v640_v14, 9 }
 0x3bb   : > { %v9831_v54 = vrot.slane %v639_v42, 9  ;;  %v9832_v33 = vrot.slane %v641_v60, 9  ;;  %v1474_v8 = vadd.f32 %v9817_v40, %v581_v6  ;;  %v1475_v34 = vadd.f32 %v9818_v57, %v589_v27 }
 0x3bc   : > { %v1476_v55 = vadd.f32 %v9819_v21, %v588_v45  ;;  %11331 = vmatmul.mubr.msk.f32.gmra.mxu1 %vm1716_vm1, %v14602_v47  ;;  %v1477_v19 = vadd.f32 %v9820_v63, %v590_v2  ;;  %v1478_v48 = vadd.f32 %v9821_v49, %v598_v12  ;;  %v1479_v59 = vadd.f32 %v9822_v31, %v606_v15  ;;  %v11427_v49 = vld [vmem:[%s11596_s17 + $0x88] sm:$0xff] }
 0x3bd   : > { %v1480_v26 = vadd.f32 %v9823_v32, %v605_v58  ;;  %11333 = vmatprep.mubr.msk.f32.mxu1 %vm1716_vm1, %v14623_v20  ;;  %v1481_v3 = vadd.f32 %v9824_v22, %v607_v52  ;;  %v1482_v53 = vadd.f32 %v9825_v44, %v615_v25  ;;  %v1483_v1 = vadd.f32 %v9826_v18, %v623_v50  ;;  %v11428_v22 = vld [vmem:[%s11596_s17 + $0x90] sm:$0xff] }
 0x3be   : > { %v1484_v11 = vadd.f32 %v9827_v29, %v622_v23  ;;  %v1485_v17 = vadd.f32 %v9828_v38, %v624_v39  ;;  %v1486_v13 = vadd.f32 %v9829_v37, %v632_v4  ;;  %v1487_v7 = vadd.f32 %v9830_v36, %v640_v14  ;;  %v11426_v14 = vld [vmem:[%s11596_s17 + $0x80] sm:$0xff] }
 0x3bf   : > { %v1488_v6 = vadd.f32 %v9831_v54, %v639_v42  ;;  %v1489_v28 = vadd.f32 %v9832_v33, %v641_v60  ;;  %v1578_v45 = vadd.f32 %v1482_v53, %v1474_v8  ;;  %v1579_v56 = vadd.f32 %v1483_v1, %v1475_v34  ;;  %v15318_v33 = vld [vmem:[#allocation17_spill] sm:$0xff] }
 0x3c0   : > { %v1580_v30 = vadd.f32 %v1484_v11, %v1476_v55  ;;  %11334 = vmatmul.mubr.msk.f32.gmra.mxu1 %vm1716_vm1, %v14631_v16  ;;  %v1581_v47 = vadd.f32 %v1485_v17, %v1477_v19  ;;  %v1582_v12 = vadd.f32 %v1486_v13, %v1478_v48  ;;  %v1583_v27 = vadd.f32 %v1487_v7, %v1479_v59  ;;  %v15319_v17 = vld [vmem:[#allocation4_spill] sm:$0xff] }
 0x3c1   : > { %v1584_v58 = vadd.f32 %v1488_v6, %v1480_v26  ;;  %11336 = vmatprep.mubr.msk.f32.mxu1 %vm1716_vm1, %v14646_v43  ;;  %v1585_v20 = vadd.f32 %v1489_v28, %v1481_v3  ;;  %v1642_v25 = vmul.f32 0.25, %v1578_v45  ;;  %v1643_v15 = vmul.f32 0.25, %v1579_v56  ;;  %v11429_v26 = vld [vmem:[%s11596_s17 + $0x98] sm:$0xff]  ;;  %v15320_v45 = vld [vmem:[#allocation11_spill] sm:$0xff] }
 0x3c2   : > { %v1644_v51 = vmul.f32 0.25, %v1580_v30  ;;  %v1645_v2 = vmul.f32 0.25, %v1581_v47  ;;  %v1646_v23 = vmul.f32 0.25, %v1582_v12  ;;  %v1647_v50 = vmul.f32 0.25, %v1583_v27 }
 0x3c3   : > { %v1648_v5 = vmul.f32 0.25, %v1584_v58  ;;  %v1649_v52 = vmul.f32 0.25, %v1585_v20  ;;  %v9359_v16 = vrot.slane %v1642_v25, %v15194_v10  ;;  %v9363_v9 = vrot.slane %v1643_v15, %v15194_v10 }
 0x3c4   : > { %v9367_v62 = vrot.slane %v1644_v51, %v15194_v10  ;;  %11337 = vmatmul.mubr.msk.f32.gmra.mxu1 %vm1716_vm1, %v14653_v46  ;;  %v9371_v43 = vrot.slane %v1645_v2, %v15194_v10  ;;  %v9375_v4 = vrot.slane %v1646_v23, %v15194_v10  ;;  %v9379_v39 = vrot.slane %v1647_v50, %v15194_v10  ;;  %v15321_v50 = vld [vmem:[#allocation30_spill] sm:$0xff] }
 0x3c5   : > { %v9383_v40 = vrot.slane %v1648_v5, %v15194_v10  ;;  %11355 = vmatprep.mubr.msk.f32.mxu1 %vm1716_vm1, %v14340_v61  ;;  %v9387_v57 = vrot.slane %v1649_v52, %v15194_v10  ;;  %v9537_v42 = vsel %vm7211_vm4, %v9363_v9, %v9359_v16  ;;  %v642_v21 = vcombine.high %v11426_v14, %v11426_v14 }
 0x3c6   : > { %v649_v63 = vrot.slane %v11426_v14, %v13268_v35  ;;  %v9538_v46 = vsel %vm7213_vm5, %v9367_v62, %v9537_v42  ;;  %v659_v31 = vcombine.high %v11427_v49, %v11427_v49  ;;  %v666_v32 = vrot.slane %v11427_v49, %v13268_v35  ;;  %v15322_v62 = vld [vmem:[#allocation10_spill] sm:$0xff] }
 0x3c7   : > { %v676_v60 = vcombine.high %v11428_v22, %v11428_v22  ;;  %v9539_v44 = vsel %vm7215_vm6, %v9371_v43, %v9538_v46  ;;  %v656_v61 = vrot.slane %v642_v21, %v13268_v35  ;;  %v683_v29 = vrot.slane %v11428_v22, %v13268_v35  ;;  %v8890_v43 = vld [vmem:[#allocation3 + $0x91] sm:$0xff] }
 0x3c8   : > { %v657_v18 = vcombine.high %v649_v63, %v649_v63  ;;  %11356 = vmatmul.mubr.msk.f32.vlgmr.msra.gmra.mxu1 %vm1716_vm1, %v14386_v41  ;;  %v9540_v38 = vsel %vm7217_vm7, %v9375_v4, %v9539_v44  ;;  %v673_v37 = vrot.slane %v659_v31, %v13268_v35  ;;  %v674_v36 = vcombine.high %v666_v32, %v666_v32 }
 0x3c9   : > { %v690_v54 = vrot.slane %v676_v60, %v13268_v35  ;;  %11382 = vmatpush3.msk.msra.mxu1 %vm2166_vm0, %v14719_v0  ;;  %11358 = vmatprep.mubr.msk.f32.mxu1 %vm1716_vm1, %v15318_v33  ;;  %v9541_v8 = vsel %vm7219_vm8, %v9379_v39, %v9540_v38  ;;  %v658_v34 = vcombine.high %v656_v61, %v656_v61  ;;  %v9833_v19 = vrot.slane %v649_v63, 9  ;;  %v15323_v38 = vld [vmem:[#allocation25_spill] sm:$0xff] }
 0x3ca   : > { %v691_v55 = vcombine.high %v683_v29, %v683_v29  ;;  %v9542_v41 = vsel %vm7221_vm9, %v9383_v40, %v9541_v8  ;;  %v675_v48 = vcombine.high %v673_v37, %v673_v37  ;;  %v693_v3 = vcombine.high %v11429_v26, %v11429_v26 }
 0x3cb   : > { %v692_v59 = vcombine.high %v690_v54, %v690_v54  ;;  %v14773_v53 = vsel %vm7223_vm10, %v9387_v57, %v9542_v41  ;;  %v700_v1 = vrot.slane %v11429_v26, %v13268_v35  ;;  %v9834_v0 = vrot.slane %v657_v18, 9 }
 0x3cc   : > { %v9835_v11 = vrot.slane %v656_v61, 9  ;;  %11359 = vmatmul.mubr.msk.f32.gmra.mxu1 %vm1716_vm1, %v15319_v17  ;;  %v707_v13 = vrot.slane %v693_v3, %v13268_v35  ;;  %v9836_v7 = vrot.slane %v658_v34, 9  ;;  %v9837_v6 = vrot.slane %v666_v32, 9 }
 0x3cd   : > { %v9838_v28 = vrot.slane %v674_v36, 9  ;;  %11361 = vmatprep.mubr.msk.f32.mxu1 %vm1716_vm1, %v15320_v45  ;;  %v708_v56 = vcombine.high %v700_v1, %v700_v1  ;;  %v9839_v30 = vrot.slane %v673_v37, 9  ;;  %v9840_v47 = vrot.slane %v675_v48, 9 }
 0x3ce   : > { %v9841_v12 = vrot.slane %v683_v29, 9  ;;  %v709_v27 = vcombine.high %v707_v13, %v707_v13  ;;  %v9842_v58 = vrot.slane %v691_v55, 9  ;;  %v9843_v20 = vrot.slane %v690_v54, 9 }
 0x3cf   : > { %v9844_v25 = vrot.slane %v692_v59, 9  ;;  %v9845_v15 = vrot.slane %v700_v1, 9  ;;  %v9846_v51 = vrot.slane %v708_v56, 9  ;;  %v9847_v2 = vrot.slane %v707_v13, 9 }
 0x3d0   : > { %v1490_v23 = vadd.f32 %v9833_v19, %v649_v63  ;;  %11362 = vmatmul.mubr.msk.f32.gmra.mxu1 %vm1716_vm1, %v15321_v50  ;;  %v9848_v5 = vrot.slane %v709_v27, 9  ;;  %v1491_v52 = vadd.f32 %v9834_v0, %v657_v18  ;;  %v1492_v16 = vadd.f32 %v9835_v11, %v656_v61 }
 0x3d1   : > { %v1493_v9 = vadd.f32 %v9836_v7, %v658_v34  ;;  %11364 = vmatprep.mubr.msk.f32.mxu1 %vm1716_vm1, %v15322_v62  ;;  %v1494_v4 = vadd.f32 %v9837_v6, %v666_v32  ;;  %v1495_v39 = vadd.f32 %v9838_v28, %v674_v36  ;;  %v1496_v40 = vadd.f32 %v9839_v30, %v673_v37  ;;  %v11430_v28 = vld [vmem:[%s11596_s17 + $0xa0] sm:$0xff]  ;;  %v11431_v30 = vld [vmem:[%s11596_s17 + $0xa8] sm:$0xff] }
 0x3d2   : > { %v1497_v57 = vadd.f32 %v9840_v47, %v675_v48  ;;  %v1498_v42 = vadd.f32 %v9841_v12, %v683_v29  ;;  %v1499_v14 = vadd.f32 %v9842_v58, %v691_v55  ;;  %v1500_v21 = vadd.f32 %v9843_v20, %v690_v54 }
 0x3d3   : > { %v1501_v46 = vadd.f32 %v9844_v25, %v692_v59  ;;  %v1502_v63 = vadd.f32 %v9845_v15, %v700_v1  ;;  %v1503_v49 = vadd.f32 %v9846_v51, %v708_v56  ;;  %v1504_v31 = vadd.f32 %v9847_v2, %v707_v13  ;;  %v15324_v59 = vld [vmem:[#allocation26_spill] sm:$0xff] }
 0x3d4   : > { %v1505_v22 = vadd.f32 %v9848_v5, %v709_v27  ;;  %11365 = vmatmul.mubr.msk.f32.gmra.mxu1 %vm1716_vm1, %v8890_v43  ;;  %v1586_v60 = vadd.f32 %v1498_v42, %v1490_v23  ;;  %v1587_v44 = vadd.f32 %v1499_v14, %v1491_v52  ;;  %v1588_v61 = vadd.f32 %v1500_v21, %v1492_v16  ;;  %v11432_v27 = vld [vmem:[%s11596_s17 + $0xb0] sm:$0xff]  ;;  %v11433_v43 = vld [vmem:[%s11596_s17 + $0xb8] sm:$0xff] }
 0x3d5   : > { %v1589_v18 = vadd.f32 %v1501_v46, %v1493_v9  ;;  %11383 = vmatprep.mubr.msk.f32.mxu1 %vm1716_vm1, %v15323_v38  ;;  %v1590_v32 = vadd.f32 %v1502_v63, %v1494_v4  ;;  %v1591_v37 = vadd.f32 %v1503_v49, %v1495_v39  ;;  %v1592_v36 = vadd.f32 %v1504_v31, %v1496_v40 }
 0x3d6   : > { %v1593_v29 = vadd.f32 %v1505_v22, %v1497_v57  ;;  %v1650_v33 = vmul.f32 0.25, %v1586_v60  ;;  %v1651_v54 = vmul.f32 0.25, %v1587_v44  ;;  %v1652_v8 = vmul.f32 0.25, %v1588_v61 }
 0x3d7   : > { %v1653_v34 = vmul.f32 0.25, %v1589_v18  ;;  %v1654_v55 = vmul.f32 0.25, %v1590_v32  ;;  %v1655_v19 = vmul.f32 0.25, %v1591_v37  ;;  %v1656_v41 = vmul.f32 0.25, %v1592_v36 }
 0x3d8   : > { %v1657_v48 = vmul.f32 0.25, %v1593_v29  ;;  %11384 = vmatmul.mubr.msk.f32.vlgmr.msra.gmra.mxu1 %vm1716_vm1, %v15324_v59  ;;  %v9391_v26 = vrot.slane %v1650_v33, %v15194_v10  ;;  %v9395_v3 = vrot.slane %v1651_v54, %v15194_v10  ;;  %v9399_v1 = vrot.slane %v1652_v8, %v15194_v10 }
 0x3d9   : > { %v9403_v0 = vrot.slane %v1653_v34, %v15194_v10  ;;  %11386 = vmatprep.mubr.msk.f32.mxu1 %vm1716_vm1, %v14714_v24  ;;  %v9407_v11 = vrot.slane %v1654_v55, %v15194_v10  ;;  %v9411_v17 = vrot.slane %v1655_v19, %v15194_v10  ;;  %v9415_v13 = vrot.slane %v1656_v41, %v15194_v10 }
 0x3da   : > { %v9419_v7 = vrot.slane %v1657_v48, %v15194_v10  ;;  %v9544_v6 = vsel %vm7211_vm4, %v9395_v3, %v9391_v26  ;;  %v710_v45 = vcombine.high %v11430_v28, %v11430_v28  ;;  %v717_v56 = vrot.slane %v11430_v28, %v13268_v35 }
 0x3db   : > { %v727_v47 = vcombine.high %v11431_v30, %v11431_v30  ;;  %v9545_v12 = vsel %vm7213_vm5, %v9399_v1, %v9544_v6  ;;  %v734_v24 = vrot.slane %v11431_v30, %v13268_v35  ;;  %v744_v58 = vcombine.high %v11432_v27, %v11432_v27 }
 0x3dc   : > { %v751_v20 = vrot.slane %v11432_v27, %v13268_v35  ;;  %11387 = vmatmul.mubr.msk.f32.gmra.mxu1 %vm1716_vm1, %v14773_v53  ;;  %v9546_v25 = vsel %vm7215_vm6, %v9403_v0, %v9545_v12  ;;  %v724_v15 = vrot.slane %v710_v45, %v13268_v35  ;;  %v725_v51 = vcombine.high %v717_v56, %v717_v56 }
 0x3dd   : > { %v741_v2 = vrot.slane %v727_v47, %v13268_v35  ;;  %v9547_v23 = vsel %vm7217_vm7, %v9407_v11, %v9546_v25  ;;  %v742_v50 = vcombine.high %v734_v24, %v734_v24  ;;  %v758_v5 = vrot.slane %v744_v58, %v13268_v35 }
 0x3de   : > { %v759_v52 = vcombine.high %v751_v20, %v751_v20  ;;  %v9548_v16 = vsel %vm7219_vm8, %v9411_v17, %v9547_v23  ;;  %v726_v9 = vcombine.high %v724_v15, %v724_v15  ;;  %v761_v4 = vcombine.high %v11433_v43, %v11433_v43 }
 0x3df   : > { %v743_v62 = vcombine.high %v741_v2, %v741_v2  ;;  %v9549_v53 = vsel %vm7221_vm9, %v9415_v13, %v9548_v16  ;;  %v760_v39 = vcombine.high %v758_v5, %v758_v5  ;;  %v768_v40 = vrot.slane %v11433_v43, %v13268_v35 }
 0x3e0   : > { %v9849_v57 = vrot.slane %v717_v56, 9  ;;  %v9550_v42 = vsel %vm7223_vm10, %v9419_v7, %v9549_v53  ;;  %v775_v14 = vrot.slane %v761_v4, %v13268_v35  ;;  %v9850_v21 = vrot.slane %v725_v51, 9 }
 0x3e1   : > { %v9851_v46 = vrot.slane %v724_v15, 9  ;;  %11389 = vmatprep.mubr.msk.f32.mxu1 %vm1716_vm1, %v9550_v42  ;;  %v776_v63 = vcombine.high %v768_v40, %v768_v40  ;;  %v9852_v49 = vrot.slane %v726_v9, 9  ;;  %v9853_v31 = vrot.slane %v734_v24, 9 }
 0x3e2   : > { %v9854_v22 = vrot.slane %v742_v50, 9  ;;  %v777_v60 = vcombine.high %v775_v14, %v775_v14  ;;  %v9855_v44 = vrot.slane %v741_v2, 9  ;;  %v9856_v61 = vrot.slane %v743_v62, 9 }
 0x3e3   : > { %v9857_v18 = vrot.slane %v751_v20, 9  ;;  %v9858_v38 = vrot.slane %v759_v52, 9  ;;  %v9859_v32 = vrot.slane %v758_v5, 9  ;;  %v9860_v37 = vrot.slane %v760_v39, 9 }
 0x3e4   : > { %v9861_v36 = vrot.slane %v768_v40, 9  ;;  %v9862_v29 = vrot.slane %v776_v63, 9  ;;  %v9863_v33 = vrot.slane %v775_v14, 9  ;;  %v9864_v54 = vrot.slane %v777_v60, 9 }
 0x3e5   : > { %v1506_v8 = vadd.f32 %v9849_v57, %v717_v56  ;;  %v1507_v34 = vadd.f32 %v9850_v21, %v725_v51  ;;  %v1508_v55 = vadd.f32 %v9851_v46, %v724_v15  ;;  %v1509_v19 = vadd.f32 %v9852_v49, %v726_v9 }
 0x3e6   : > { %v1510_v41 = vadd.f32 %v9853_v31, %v734_v24  ;;  %v1511_v48 = vadd.f32 %v9854_v22, %v742_v50  ;;  %v1512_v59 = vadd.f32 %v9855_v44, %v741_v2  ;;  %v1513_v26 = vadd.f32 %v9856_v61, %v743_v62  ;;  %v11436_v31 = vld [vmem:[%s11596_s17 + $0xd0] sm:$0xff] }
 0x3e7   : > { %v1514_v3 = vadd.f32 %v9857_v18, %v751_v20  ;;  %v1515_v1 = vadd.f32 %v9858_v38, %v759_v52  ;;  %v1516_v0 = vadd.f32 %v9859_v32, %v758_v5  ;;  %v1517_v11 = vadd.f32 %v9860_v37, %v760_v39  ;;  %v11434_v39 = vld [vmem:[%s11596_s17 + $0xc0] sm:$0xff] }
 0x3e8   : > { %v1518_v17 = vadd.f32 %v9861_v36, %v768_v40  ;;  %v1519_v13 = vadd.f32 %v9862_v29, %v776_v63  ;;  %v1520_v7 = vadd.f32 %v9863_v33, %v775_v14  ;;  %v1521_v6 = vadd.f32 %v9864_v54, %v777_v60  ;;  %v11435_v14 = vld [vmem:[%s11596_s17 + $0xc8] sm:$0xff] }
 0x3e9   : > { %v1594_v28 = vadd.f32 %v1514_v3, %v1506_v8  ;;  %v1595_v45 = vadd.f32 %v1515_v1, %v1507_v34  ;;  %v1596_v30 = vadd.f32 %v1516_v0, %v1508_v55  ;;  %v1597_v47 = vadd.f32 %v1517_v11, %v1509_v19  ;;  %v11437_v8 = vld [vmem:[%s11596_s17 + $0xd8] sm:$0xff] }
 0x3ea   : > { %v1598_v56 = vadd.f32 %v1518_v17, %v1510_v41  ;;  %v1599_v12 = vadd.f32 %v1519_v13, %v1511_v48  ;;  %v1600_v27 = vadd.f32 %v1520_v7, %v1512_v59  ;;  %v1601_v58 = vadd.f32 %v1521_v6, %v1513_v26 }
 0x3eb   : > { %v1658_v24 = vmul.f32 0.25, %v1594_v28  ;;  %v1659_v25 = vmul.f32 0.25, %v1595_v45  ;;  %v1660_v15 = vmul.f32 0.25, %v1596_v30  ;;  %v1661_v20 = vmul.f32 0.25, %v1597_v47 }
 0x3ec   : > { %v1662_v51 = vmul.f32 0.25, %v1598_v56  ;;  %v1663_v2 = vmul.f32 0.25, %v1599_v12  ;;  %v1664_v23 = vmul.f32 0.25, %v1600_v27  ;;  %v1665_v50 = vmul.f32 0.25, %v1601_v58 }
 0x3ed   : > { %v9423_v5 = vrot.slane %v1658_v24, %v15194_v10  ;;  %v9427_v52 = vrot.slane %v1659_v25, %v15194_v10  ;;  %v9431_v16 = vrot.slane %v1660_v15, %v15194_v10  ;;  %v9435_v9 = vrot.slane %v1661_v20, %v15194_v10 }
 0x3ee   : > { %v9439_v62 = vrot.slane %v1662_v51, %v15194_v10  ;;  %v9443_v43 = vrot.slane %v1663_v2, %v15194_v10  ;;  %v9447_v4 = vrot.slane %v1664_v23, %v15194_v10  ;;  %v9451_v53 = vrot.slane %v1665_v50, %v15194_v10 }
 0x3ef   : > { %v778_v40 = vcombine.high %v11434_v39, %v11434_v39  ;;  %v9551_v57 = vsel %vm7211_vm4, %v9427_v52, %v9423_v5  ;;  %v785_v42 = vrot.slane %v11434_v39, %v13268_v35  ;;  %v795_v21 = vcombine.high %v11435_v14, %v11435_v14 }
 0x3f0   : > { %v802_v46 = vrot.slane %v11435_v14, %v13268_v35  ;;  %v9552_v63 = vsel %vm7213_vm5, %v9431_v16, %v9551_v57  ;;  %v812_v22 = vcombine.high %v11436_v31, %v11436_v31  ;;  %v819_v60 = vrot.slane %v11436_v31, %v13268_v35 }
 0x3f1   : > { %v792_v49 = vrot.slane %v778_v40, %v13268_v35  ;;  %v9553_v44 = vsel %vm7215_vm6, %v9435_v9, %v9552_v63  ;;  %v793_v61 = vcombine.high %v785_v42, %v785_v42  ;;  %v809_v18 = vrot.slane %v795_v21, %v13268_v35 }
 0x3f2   : > { %v810_v38 = vcombine.high %v802_v46, %v802_v46  ;;  %v9554_v32 = vsel %vm7217_vm7, %v9439_v62, %v9553_v44  ;;  %v826_v36 = vrot.slane %v812_v22, %v13268_v35  ;;  %v827_v29 = vcombine.high %v819_v60, %v819_v60 }
 0x3f3   : > { %v794_v37 = vcombine.high %v792_v49, %v792_v49  ;;  %v9555_v33 = vsel %vm7219_vm8, %v9443_v43, %v9554_v32  ;;  %v811_v54 = vcombine.high %v809_v18, %v809_v18  ;;  %v829_v34 = vcombine.high %v11437_v8, %v11437_v8 }
 0x3f4   : > { %v836_v55 = vrot.slane %v11437_v8, %v13268_v35  ;;  %v9556_v19 = vsel %vm7221_vm9, %v9447_v4, %v9555_v33  ;;  %v828_v41 = vcombine.high %v826_v36, %v826_v36  ;;  %v9865_v48 = vrot.slane %v785_v42, 9 }
 0x3f5   : > { %v9866_v59 = vrot.slane %v793_v61, 9  ;;  %v9557_v26 = vsel %vm7223_vm10, %v9451_v53, %v9556_v19  ;;  %v843_v3 = vrot.slane %v829_v34, %v13268_v35  ;;  %v9867_v0 = vrot.slane %v792_v49, 9 }
 0x3f6   : > { %v844_v1 = vcombine.high %v836_v55, %v836_v55  ;;  %11390 = vmatmul.mubr.msk.f32.gmra.mxu1 %vm1716_vm1, %v9557_v26  ;;  %v9868_v11 = vrot.slane %v794_v37, 9  ;;  %v9869_v17 = vrot.slane %v802_v46, 9  ;;  %v9870_v13 = vrot.slane %v810_v38, 9 }
 0x3f7   : > { %v9871_v7 = vrot.slane %v809_v18, 9  ;;  %v845_v6 = vcombine.high %v843_v3, %v843_v3  ;;  %v9872_v28 = vrot.slane %v811_v54, 9  ;;  %v9873_v45 = vrot.slane %v819_v60, 9 }
 0x3f8   : > { %v9874_v30 = vrot.slane %v827_v29, 9  ;;  %v9875_v47 = vrot.slane %v826_v36, 9  ;;  %v9876_v56 = vrot.slane %v828_v41, 9  ;;  %v9877_v12 = vrot.slane %v836_v55, 9 }
 0x3f9   : > { %v9878_v27 = vrot.slane %v844_v1, 9  ;;  %v9879_v58 = vrot.slane %v843_v3, 9  ;;  %v9880_v24 = vrot.slane %v845_v6, 9  ;;  %v1522_v25 = vadd.f32 %v9865_v48, %v785_v42 }
 0x3fa   : > { %v1523_v15 = vadd.f32 %v9866_v59, %v793_v61  ;;  %v1524_v20 = vadd.f32 %v9867_v0, %v792_v49  ;;  %v1525_v51 = vadd.f32 %v9868_v11, %v794_v37  ;;  %v1526_v2 = vadd.f32 %v9869_v17, %v802_v46 }
 0x3fb   : > { %v1527_v23 = vadd.f32 %v9870_v13, %v810_v38  ;;  %v1528_v50 = vadd.f32 %v9871_v7, %v809_v18  ;;  %v1529_v5 = vadd.f32 %v9872_v28, %v811_v54  ;;  %v1530_v52 = vadd.f32 %v9873_v45, %v819_v60  ;;  %v11440_v13 = vld [vmem:[%s11596_s17 + $0xf0] sm:$0xff] }
 0x3fc   : > { %v1531_v16 = vadd.f32 %v9874_v30, %v827_v29  ;;  %v1532_v9 = vadd.f32 %v9875_v47, %v826_v36  ;;  %v1533_v62 = vadd.f32 %v9876_v56, %v828_v41  ;;  %v1534_v43 = vadd.f32 %v9877_v12, %v836_v55  ;;  %v11438_v41 = vld [vmem:[%s11596_s17 + $0xe0] sm:$0xff] }
 0x3fd   : > { %v1535_v4 = vadd.f32 %v9878_v27, %v844_v1  ;;  %v1536_v53 = vadd.f32 %v9879_v58, %v843_v3  ;;  %v1537_v39 = vadd.f32 %v9880_v24, %v845_v6  ;;  %v1602_v40 = vadd.f32 %v1530_v52, %v1522_v25  ;;  %v11439_v3 = vld [vmem:[%s11596_s17 + $0xe8] sm:$0xff] }
 0x3fe   : > { %v1603_v57 = vadd.f32 %v1531_v16, %v1523_v15  ;;  %v1604_v14 = vadd.f32 %v1532_v9, %v1524_v20  ;;  %v1605_v21 = vadd.f32 %v1533_v62, %v1525_v51  ;;  %v1606_v42 = vadd.f32 %v1534_v43, %v1526_v2  ;;  %v11441_v15 = vld [vmem:[%s11596_s17 + $0xf8] sm:$0xff] }
 0x3ff   : > { %v1607_v63 = vadd.f32 %v1535_v4, %v1527_v23  ;;  %v1608_v49 = vadd.f32 %v1536_v53, %v1528_v50  ;;  %v1609_v31 = vadd.f32 %v1537_v39, %v1529_v5  ;;  %v1666_v46 = vmul.f32 0.25, %v1602_v40 }
 0x400   : > { %v1667_v22 = vmul.f32 0.25, %v1603_v57  ;;  %v1668_v44 = vmul.f32 0.25, %v1604_v14  ;;  %v1669_v60 = vmul.f32 0.25, %v1605_v21  ;;  %v1670_v61 = vmul.f32 0.25, %v1606_v42 }
 0x401   : > { %v1671_v18 = vmul.f32 0.25, %v1607_v63  ;;  %v1672_v38 = vmul.f32 0.25, %v1608_v49  ;;  %v1673_v32 = vmul.f32 0.25, %v1609_v31  ;;  %v9455_v37 = vrot.slane %v1666_v46, %v15194_v10 }
 0x402   : > { %v9459_v36 = vrot.slane %v1667_v22, %v15194_v10  ;;  %v9463_v29 = vrot.slane %v1668_v44, %v15194_v10  ;;  %v9467_v33 = vrot.slane %v1669_v60, %v15194_v10  ;;  %v9471_v54 = vrot.slane %v1670_v61, %v15194_v10 }
 0x403   : > { %v9475_v8 = vrot.slane %v1671_v18, %v15194_v10  ;;  %v9479_v34 = vrot.slane %v1672_v38, %v15194_v10  ;;  %v9483_v55 = vrot.slane %v1673_v32, %v15194_v10  ;;  %v846_v48 = vcombine.high %v11438_v41, %v11438_v41 }
 0x404   : > { %v9558_v19 = vsel %vm7211_vm4, %v9459_v36, %v9455_v37  ;;  %v853_v26 = vrot.slane %v11438_v41, %v13268_v35  ;;  %v863_v1 = vcombine.high %v11439_v3, %v11439_v3  ;;  %v870_v0 = vrot.slane %v11439_v3, %v13268_v35 }
 0x405   : > { %v9559_v59 = vsel %vm7213_vm5, %v9463_v29, %v9558_v19  ;;  %v860_v17 = vrot.slane %v846_v48, %v13268_v35  ;;  %v880_v7 = vcombine.high %v11440_v13, %v11440_v13  ;;  %v887_v6 = vrot.slane %v11440_v13, %v13268_v35 }
 0x406   : > { %v9560_v11 = vsel %vm7215_vm6, %v9467_v33, %v9559_v59  ;;  %v861_v45 = vcombine.high %v853_v26, %v853_v26  ;;  %v877_v30 = vrot.slane %v863_v1, %v13268_v35  ;;  %v878_v47 = vcombine.high %v870_v0, %v870_v0 }
 0x407   : > { %v9561_v28 = vsel %vm7217_vm7, %v9471_v54, %v9560_v11  ;;  %v862_v12 = vcombine.high %v860_v17, %v860_v17  ;;  %v894_v27 = vrot.slane %v880_v7, %v13268_v35  ;;  %v895_v58 = vcombine.high %v887_v6, %v887_v6 }
 0x408   : > { %v9562_v56 = vsel %vm7219_vm8, %v9475_v8, %v9561_v28  ;;  %v879_v25 = vcombine.high %v877_v30, %v877_v30  ;;  %v897_v20 = vcombine.high %v11441_v15, %v11441_v15  ;;  %v904_v51 = vrot.slane %v11441_v15, %v13268_v35 }
 0x409   : > { %v9563_v24 = vsel %vm7221_vm9, %v9479_v34, %v9562_v56  ;;  %v896_v23 = vcombine.high %v894_v27, %v894_v27  ;;  %v9881_v50 = vrot.slane %v853_v26, 9  ;;  %v9882_v5 = vrot.slane %v861_v45, 9 }
 0x40a   : > { %v9564_v2 = vsel %vm7223_vm10, %v9483_v55, %v9563_v24  ;;  %v911_v52 = vrot.slane %v897_v20, %v13268_v35  ;;  %v912_v16 = vcombine.high %v904_v51, %v904_v51  ;;  %v9883_v9 = vrot.slane %v860_v17, 9 }
 0x40b   : > { %11392 = vmatprep.mubr.msk.f32.mxu1 %vm1716_vm1, %v9564_v2  ;;  %v9884_v62 = vrot.slane %v862_v12, 9  ;;  %v9885_v43 = vrot.slane %v870_v0, 9  ;;  %v9886_v4 = vrot.slane %v878_v47, 9  ;;  %v9887_v53 = vrot.slane %v877_v30, 9 }
 0x40c   : > { %v9888_v39 = vrot.slane %v879_v25, 9  ;;  %v913_v40 = vcombine.high %v911_v52, %v911_v52  ;;  %v9889_v57 = vrot.slane %v887_v6, 9  ;;  %v9890_v14 = vrot.slane %v895_v58, 9 }
 0x40d   : > { %v9891_v21 = vrot.slane %v894_v27, 9  ;;  %v9892_v42 = vrot.slane %v896_v23, 9  ;;  %v9893_v63 = vrot.slane %v904_v51, 9  ;;  %v9894_v49 = vrot.slane %v912_v16, 9 }
 0x40e   : > { %v9895_v31 = vrot.slane %v911_v52, 9  ;;  %v9896_v46 = vrot.slane %v913_v40, 9  ;;  %v1538_v22 = vadd.f32 %v9881_v50, %v853_v26  ;;  %v1539_v44 = vadd.f32 %v9882_v5, %v861_v45 }
 0x40f   : > { %v1540_v60 = vadd.f32 %v9883_v9, %v860_v17  ;;  %v1541_v35 = vadd.f32 %v9884_v62, %v862_v12  ;;  %v1542_v61 = vadd.f32 %v9885_v43, %v870_v0  ;;  %v1543_v18 = vadd.f32 %v9886_v4, %v878_v47 }
 0x410   : > { %v1544_v38 = vadd.f32 %v9887_v53, %v877_v30  ;;  %v1545_v32 = vadd.f32 %v9888_v39, %v879_v25  ;;  %v1546_v37 = vadd.f32 %v9889_v57, %v887_v6  ;;  %v1547_v36 = vadd.f32 %v9890_v14, %v895_v58 }
 0x411   : > { %v1548_v29 = vadd.f32 %v9891_v21, %v894_v27  ;;  %v1549_v33 = vadd.f32 %v9892_v42, %v896_v23  ;;  %v1550_v54 = vadd.f32 %v9893_v63, %v904_v51  ;;  %v1551_v8 = vadd.f32 %v9894_v49, %v912_v16 }
 0x412   : > { %v1552_v34 = vadd.f32 %v9895_v31, %v911_v52  ;;  %v1553_v55 = vadd.f32 %v9896_v46, %v913_v40  ;;  %v1610_v19 = vadd.f32 %v1546_v37, %v1538_v22  ;;  %v1611_v41 = vadd.f32 %v1547_v36, %v1539_v44 }
 0x413   : > { %v1612_v48 = vadd.f32 %v1548_v29, %v1540_v60  ;;  %v1613_v59 = vadd.f32 %v1549_v33, %v1541_v35  ;;  %v1614_v26 = vadd.f32 %v1550_v54, %v1542_v61  ;;  %v1615_v3 = vadd.f32 %v1551_v8, %v1543_v18 }
 0x414   : > { %v1616_v1 = vadd.f32 %v1552_v34, %v1544_v38  ;;  %v1617_v11 = vadd.f32 %v1553_v55, %v1545_v32  ;;  %v1674_v0 = vmul.f32 0.25, %v1610_v19  ;;  %v1675_v17 = vmul.f32 0.25, %v1611_v41 }
 0x415   : > { %v1676_v13 = vmul.f32 0.25, %v1612_v48  ;;  %v1677_v7 = vmul.f32 0.25, %v1613_v59  ;;  %v1678_v6 = vmul.f32 0.25, %v1614_v26  ;;  %v1679_v28 = vmul.f32 0.25, %v1615_v3 }
 0x416   : > { %v1680_v45 = vmul.f32 0.25, %v1616_v1  ;;  %v1681_v30 = vmul.f32 0.25, %v1617_v11  ;;  %v9487_v47 = vrot.slane %v1674_v0, %v15194_v10  ;;  %v9491_v56 = vrot.slane %v1675_v17, %v15194_v10 }
 0x417   : > { %v9495_v12 = vrot.slane %v1676_v13, %v15194_v10  ;;  %v9499_v27 = vrot.slane %v1677_v7, %v15194_v10  ;;  %v9503_v58 = vrot.slane %v1678_v6, %v15194_v10  ;;  %v9507_v24 = vrot.slane %v1679_v28, %v15194_v10 }
 0x418   : > { %v9565_v25 = vsel %vm7211_vm4, %v9491_v56, %v9487_v47  ;;  %v9511_v15 = vrot.slane %v1680_v45, %v15194_v10  ;;  %v9515_v51 = vrot.slane %v1681_v30, %v15194_v10 }
 0x419   : > { %v9566_v20 = vsel %vm7213_vm5, %v9495_v12, %v9565_v25 }
 0x41a   : > { %v9567_v2 = vsel %vm7215_vm6, %v9499_v27, %v9566_v20 }
 0x41b   : > { %v9568_v23 = vsel %vm7217_vm7, %v9503_v58, %v9567_v2 }
 0x41c   : > { %v9569_v50 = vsel %vm7219_vm8, %v9507_v24, %v9568_v23  ;;  %v14894_v16 = vpop.f32.mrf.mxu1 }
 0x41d   : > { %v9570_v5 = vsel %vm7221_vm9, %v9511_v15, %v9569_v50 }
 0x41e   : > { %v9571_v52 = vsel %vm7223_vm10, %v9515_v51, %v9570_v5  ;;  %v14896_v9 = vpop.f32.mrf.mxu1 }
 0x41f   : > { %11393 = vmatmul.mubr.msk.f32.gmra.mxu1 %vm1716_vm1, %v9571_v52 }
 0x423   : > { %v14902_v10 = vpop.f32.mrf.mxu0 }
 0x425   : > { %v14904_v53 = vpop.f32.mrf.mxu0 }
 0x429   : > { %v14898_v62 = vpop.f32.mrf.mxu1 }
 0x42b   : > { %v14900_v43 = vpop.f32.mrf.mxu1 }
 0x430   : > { %v14906_v40 = vpop.f32.mrf.mxu0 }
 0x432   : > { %v14908_v21 = vpop.f32.mrf.mxu0 }
 0x436   : > { %v11265_v4 = vpop.f32.mrf.mxu1 }
 0x438   : > { %v7986_v39 = vpop.f32.mrf.mxu1 }
 0x43d   : > { %v14910_v49 = vpop.f32.mrf.mxu0 }
 0x43f   : > { %v14912_v22 = vpop.f32.mrf.mxu0 }
 0x444   : > { %v11268_v57 = vpop.f32.mrf.mxu1 }
 0x445   : > { %v11324_v18 = vpop.f32.mrf.mxu0 }
 0x446   : > { %v7996_v14 = vpop.f32.mrf.mxu1 }
 0x447   : > { %v8567_v29 = vpop.f32.mrf.mxu0 }
 0x448   : > { %v11273_v42 = vpop.f32.mrf.mxu1 }
 0x44a   : > { %v8098_v63 = vpop.f32.mrf.mxu1  ;;  %v14914_v8 = vpop.f32.mrf.mxu0 }
 0x44c   : > { %v11276_v31 = vpop.f32.mrf.mxu1  ;;  %v14916_v19 = vpop.f32.mrf.mxu0 }
 0x44e   : > { %v8108_v46 = vpop.f32.mrf.mxu1  ;;  %v14922_v3 = vpop.f32.mrf.mxu0 }
 0x450   : > { %v11279_v44 = vpop.f32.mrf.mxu1  ;;  %v14924_v13 = vpop.f32.mrf.mxu0 }
 0x451   : > { %v8124_v60 = vadd.f32 %v11279_v44, %v11265_v4 }
 0x452   : > { %v8118_v35 = vpop.f32.mrf.mxu1  ;;  %v14926_v28 = vpop.f32.mrf.mxu0 }
 0x453   : > { %v8119_v61 = vadd.f32 %v8118_v35, %v7986_v39  ;;  %v8104_v39 = vadd.f32 %v11273_v42, %v14894_v16 }
 0x454   : > { %v11282_v38 = vpop.f32.mrf.mxu1  ;;  %v14928_v47 = vpop.f32.mrf.mxu0 }
 0x455   : > { %v8134_v32 = vadd.f32 %v11282_v38, %v11268_v57  ;;  %v8099_v57 = vadd.f32 %v8098_v63, %v14896_v9 }
 0x456   : > { %v8128_v37 = vpop.f32.mrf.mxu1  ;;  %v11352_v27 = vpop.f32.mrf.mxu0 }
 0x457   : > { %v8129_v36 = vadd.f32 %v8128_v37, %v7996_v14 }
 0x458   : > { %v11287_v33 = vpop.f32.mrf.mxu1  ;;  %v8866_v51 = vpop.f32.mrf.mxu0 }
 0x45a   : > { %v8239_v54 = vpop.f32.mrf.mxu1  ;;  %v11371_v5 = vpop.f32.mrf.mxu0 }
 0x45b   : > { %v8278_v35 = vadd.f32 %v8239_v54, %v8099_v57 }
 0x45c   : > { %v11290_v34 = vpop.f32.mrf.mxu1  ;;  %v9134_v14 = vpop.f32.mrf.mxu0 }
 0x45e   : > { %v8249_v55 = vpop.f32.mrf.mxu1  ;;  %v11374_v37 = vpop.f32.mrf.mxu0 }
 0x460   : > { %v11293_v41 = vpop.f32.mrf.mxu1  ;;  %v9144_v54 = vpop.f32.mrf.mxu0 }
 0x461   : > { %v14918_v48 = vadd.f32 %v11293_v41, %v8124_v60  ;;  %v8279_v60 = vadd.f32 %v11287_v33, %v8104_v39 }
 0x462   : > { %v8259_v59 = vpop.f32.mrf.mxu1 }
 0x463   : > { %v14920_v26 = vadd.f32 %v8259_v59, %v8119_v61 }
 0x464   : > { %v11296_v1 = vpop.f32.mrf.mxu1 }
 0x465   : > { %v8285_v11 = vadd.f32 %v11296_v1, %v8134_v32  ;;  %v8109_v32 = vadd.f32 %v8108_v46, %v14900_v43 }
 0x466   : > { %v8269_v0 = vpop.f32.mrf.mxu1 }
 0x467   : > { %v8284_v17 = vadd.f32 %v8269_v0, %v8129_v36  ;;  %v8280_v16 = vadd.f32 %v8249_v55, %v8109_v32 }
 0x468   : > { %v11301_v7 = vpop.f32.mrf.mxu1 }
 0x469   : > { %v8428_v38 = vadd.f32 %v11301_v7, %v8279_v60 }
 0x46a   : > { %v8388_v6 = vpop.f32.mrf.mxu1 }
 0x46b   : > { %v8427_v36 = vadd.f32 %v8388_v6, %v8278_v35  ;;  %v8577_v63 = vadd.f32 %v14902_v10, %v8428_v38 }
 0x46c   : > { %v11304_v45 = vpop.f32.mrf.mxu1 }
 0x46e   : > { %v8398_v30 = vpop.f32.mrf.mxu1 }
 0x470   : > { %v14930_v56 = vpop.f32.mrf.mxu1 }
 0x472   : > { %v14932_v12 = vpop.f32.mrf.mxu1 }
 0x474   : > { %v11310_v58 = vpop.f32.mrf.mxu1 }
 0x475   : > { %v8434_v24 = vadd.f32 %v11310_v58, %v8285_v11  ;;  %v8576_v11 = vadd.f32 %v14904_v53, %v8427_v36 }
 0x476   : > { %v8418_v25 = vpop.f32.mrf.mxu1 }
 0x477   : > { %v8433_v15 = vadd.f32 %v8418_v25, %v8284_v17  ;;  %v8583_v20 = vadd.f32 %v11324_v18, %v8434_v24  ;;  %v8114_v18 = vadd.f32 %v11276_v31, %v14898_v62  ;;  %v8429_v62 = vadd.f32 %v8398_v30, %v8280_v16 }
 0x478   : > { %v11329_v2 = vpop.f32.mrf.mxu1 }
 0x479   : > { %v8582_v23 = vadd.f32 %v8567_v29, %v8433_v15  ;;  %v8281_v41 = vadd.f32 %v11290_v34, %v8114_v18  ;;  %v8726_v31 = vadd.f32 %v11329_v2, %v8577_v63  ;;  %v11377_v34 = vpop.f32.mrf.mxu0 }
 0x47a   : > { %v8686_v50 = vpop.f32.mrf.mxu1 }
 0x47b   : > { %v8430_v9 = vadd.f32 %v11304_v45, %v8281_v41  ;;  %v8725_v43 = vadd.f32 %v8686_v50, %v8576_v11  ;;  %v8578_v45 = vadd.f32 %v14908_v21, %v8429_v62  ;;  %v8876_v10 = vadd.f32 %v14914_v8, %v8726_v31  ;;  %v9154_v30 = vpop.f32.mrf.mxu0  ;;  %v10404_v8 = vld [vmem:[%s14994_s6] ss:$0 sm:$0xff] }
 0x47c   : > { %v11332_v52 = vpop.f32.mrf.mxu1 }
 0x47d   : > { %v8579_v7 = vadd.f32 %v14906_v40, %v8430_v9  ;;  %v11380_v40 = vpop.f32.mrf.mxu0 }
 0x47e   : > { %v8696_v4 = vpop.f32.mrf.mxu1 }
 0x47f   : > { %v8728_v55 = vadd.f32 %v11332_v52, %v8579_v7  ;;  %v8727_v24 = vadd.f32 %v8696_v4, %v8578_v45  ;;  %v9164_v57 = vpop.f32.mrf.mxu0 }
 0x480   : > { %v14936_v44 = vpop.f32.mrf.mxu1 }
 0x481   : > { %v8877_v50 = vadd.f32 %v14924_v13, %v8727_v24 }
 0x482   : > { %v14938_v61 = vpop.f32.mrf.mxu1 }
 0x484   : > { %v11338_v29 = vpop.f32.mrf.mxu1 }
 0x485   : > { %v8732_v59 = vadd.f32 %v11338_v29, %v8583_v20  ;;  %v8878_v20 = vadd.f32 %v14922_v3, %v8728_v55 }
 0x486   : > { %v8716_v42 = vpop.f32.mrf.mxu1 }
 0x487   : > { %v8731_v1 = vadd.f32 %v8716_v42, %v8582_v23  ;;  %v8882_v33 = vadd.f32 %v11352_v27, %v8732_v59  ;;  %v8875_v27 = vadd.f32 %v14916_v19, %v8725_v43 }
 0x488   : > { %v11357_v0 = vpop.f32.mrf.mxu1 }
 0x489   : > { %v8881_v17 = vadd.f32 %v8866_v51, %v8731_v1  ;;  %v9025_v53 = vadd.f32 %v11357_v0, %v8876_v10 }
 0x48a   : > { %v8985_v46 = vpop.f32.mrf.mxu1 }
 0x48b   : > { %v9024_v25 = vadd.f32 %v8985_v46, %v8875_v27  ;;  %v9174_v2 = vadd.f32 %v11371_v5, %v9025_v53 }
 0x48c   : > { %v11360_v6 = vpop.f32.mrf.mxu1 }
 0x48d   : > { %v9027_v23 = vadd.f32 %v11360_v6, %v8878_v20  ;;  %v9173_v21 = vadd.f32 %v9134_v14, %v9024_v25  ;;  %v9189_v18 = vadd.f32 %v10404_v8, %v9174_v2 }
 0x48e   : > { %v8995_v58 = vpop.f32.mrf.mxu1 }
 0x48f   : > { %v9026_v19 = vadd.f32 %v8995_v58, %v8877_v50  ;;  %v9176_v60 = vadd.f32 %v11374_v37, %v9027_v23  ;;  %v9188_v5 = vadd.f32 %v10404_v8, %v9173_v21 }
 0x490   : > { %v11363_v15 = vpop.f32.mrf.mxu1 }
 0x491   : > { %v9175_v14 = vadd.f32 %v9144_v54, %v9026_v19  ;;  %v9191_v41 = vadd.f32 %v10404_v8, %v9176_v60  ;;  %v8431_v54 = vadd.f32 %v14932_v12, %v14920_v26 }
 0x492   : > { %v9005_v51 = vpop.f32.mrf.mxu1 }
 0x493   : > { %v9190_v9 = vadd.f32 %v10404_v8, %v9175_v14  ;;  %v8580_v62 = vadd.f32 %v14912_v22, %v8431_v54 }
 0x494   : > { %v11366_v52 = vpop.f32.mrf.mxu1 }
 0x495   : > { %v9031_v4 = vadd.f32 %v11366_v52, %v8882_v33  ;;  %v8432_v33 = vadd.f32 %v14930_v56, %v14918_v48  ;;  %v8729_v31 = vadd.f32 %v14938_v61, %v8580_v62 }
 0x496   : > { %v9015_v39 = vpop.f32.mrf.mxu1 }
 0x497   : > { %v9030_v35 = vadd.f32 %v9015_v39, %v8881_v17  ;;  %v9180_v3 = vadd.f32 %v11380_v40, %v9031_v4  ;;  %v8581_v11 = vadd.f32 %v14910_v49, %v8432_v33  ;;  %v8879_v48 = vadd.f32 %v14928_v47, %v8729_v31 }
 0x498   : > { %v11385_v13 = vpop.f32.mrf.mxu1 }
 0x499   : > { %v9179_v38 = vadd.f32 %v9164_v57, %v9030_v35  ;;  %v9663_v32 = vadd.f32 %v11385_v13, %v9189_v18  ;;  %v9195_v36 = vadd.f32 %v10404_v8, %v9180_v3  ;;  %v8730_v0 = vadd.f32 %v14936_v44, %v8581_v11 }
 0x49a   : > { %v9657_v37 = vpop.f32.mrf.mxu1  ;;  %v9028_v56 = vadd.f32 %v9005_v51, %v8879_v48 }
 0x49b   : > { %9698 = vst.msk [vmem:[%s14957_s24 + $0x8] sm:$0xff] %vm9696_vm11, %v9663_v32  ;;  %v9658_v29 = vadd.f32 %v9657_v37, %v9188_v5  ;;  %v9194_v59 = vadd.f32 %v10404_v8, %v9179_v38  ;;  %v8880_v17 = vadd.f32 %v14926_v28, %v8730_v0 }
 0x49c   : > { %v11388_v16 = vpop.f32.mrf.mxu1  ;;  %v9177_v26 = vadd.f32 %v9154_v30, %v9028_v56 }
 0x49d   : > { %9697 = vst.msk [vmem:[%s14957_s24] sm:$0xff] %vm9696_vm11, %v9658_v29  ;;  %v9673_v42 = vadd.f32 %v11388_v16, %v9191_v41  ;;  %v9029_v43 = vadd.f32 %v11363_v15, %v8880_v17 }
 0x49e   : > { %v9667_v63 = vpop.f32.mrf.mxu1  ;;  %v9192_v6 = vadd.f32 %v10404_v8, %v9177_v26 }
 0x49f   : > { %9700 = vst.msk [vmem:[%s14957_s24 + $0x18] sm:$0xff] %vm9696_vm11, %v9673_v42  ;;  %v9668_v1 = vadd.f32 %v9667_v63, %v9190_v9  ;;  %v9178_v46 = vadd.f32 %v11377_v34, %v9029_v43 }
 0x4a1   : > { %9699 = vst.msk [vmem:[%s14957_s24 + $0x10] sm:$0xff] %vm9696_vm11, %v9668_v1  ;;  %v9193_v12 = vadd.f32 %v10404_v8, %v9178_v46 }
 0x4b6   : > { %v11391_v7 = vpop.f32.mrf.mxu1 }
 0x4b7   : > { %v9683_v49 = vadd.f32 %v11391_v7, %v9193_v12 }
 0x4b8   : > { %v9677_v44 = vpop.f32.mrf.mxu1 }
 0x4b9   : > { %9702 = vst.msk [vmem:[%s14957_s24 + $0x28] sm:$0xff] %vm9696_vm11, %v9683_v49  ;;  %v9678_v22 = vadd.f32 %v9677_v44, %v9192_v6 }
 0x4bb   : > { %9701 = vst.msk [vmem:[%s14957_s24 + $0x20] sm:$0xff] %vm9696_vm11, %v9678_v22 }
 0x4df   : > { %v11394_v61 = vpop.f32.mrf.mxu1 }
 0x4e0   : > { %v9693_v28 = vadd.f32 %v11394_v61, %v9195_v36 }
 0x4e1   : > { %v9687_v55 = vpop.f32.mrf.mxu1 }
 0x4e2   : > { %9704 = vst.msk [vmem:[%s14957_s24 + $0x38] sm:$0xff] %vm9696_vm11, %v9693_v28  ;;  %v9688_v47 = vadd.f32 %v9687_v55, %v9194_v59 }
 0x4e4   : > { %9703 = vst.msk [vmem:[%s14957_s24 + $0x30] sm:$0xff] %vm9696_vm11, %v9688_v47 }
 0x4e5 PF: > { %s18_s27 = sadd.s32 1, %s11448_s27  }
 0x4e6   : > { %p15_p4 = scmp.ge.s32.totalorder %s18_s27, 4  }
 0x4e8   :  { %17 = sbr.rel (!%p15_p4) target bundleno = 1 (0x1), region = 88 }

</bundles_post_ra>
